<compile_context>
chip_gen: v6e
topology: v6e:2x2x1
jax: 0.10.0
libtpu: 0.0.40
codegen_flags: <defaults>
</compile_context>

<pallas_src>
import functools
import math

import jax
import jax.numpy as jnp
from jax import lax
from jax.experimental import pallas as pl
from jax.experimental.pallas import tpu as pltpu


_VMEM_LIMIT = 48 * 1024 * 1024  # above scoped defaults, below v7x physical 64 MiB


def _largest_divisor(n, cap, multiple=1):
    """Largest d <= cap with n % d == 0 and d % multiple == 0 (else n itself)."""
    for d in range(min(n, cap), 0, -1):
        if n % d == 0 and d % multiple == 0:
            return d
    return n


# --------------------------- batched linear (MXU) ----------------------------
def _linear_kernel(x_ref, w_ref, b_ref, o_ref):
    x = x_ref[...].astype(jnp.bfloat16)              # cast in-kernel (f32 DMA in)
    o_ref[...] = (jnp.dot(x, w_ref[...], preferred_element_type=jnp.float32)
                  + b_ref[...])


def linear_pallas(x2d, w_t_bf16, bias_f32):
    """(M, K) f32 @ (K, N) bf16 + (1, N) f32 -> (M, N) f32."""
    M, K = x2d.shape
    N = w_t_bf16.shape[1]
    tm = _largest_divisor(M, 256, multiple=8)
    return pl.pallas_call(
        _linear_kernel,
        out_shape=jax.ShapeDtypeStruct((M, N), jnp.float32),
        grid_spec=pltpu.PrefetchScalarGridSpec(
            num_scalar_prefetch=0,
            grid=(M // tm,),
            in_specs=[
                pl.BlockSpec((tm, K), lambda i: (i, 0)),
                pl.BlockSpec((K, N), lambda i: (0, 0)),   # invariant weight block
                pl.BlockSpec((1, N), lambda i: (0, 0)),
            ],
            out_specs=pl.BlockSpec((tm, N), lambda i: (i, 0)),
        ),
        compiler_params=pltpu.CompilerParams(
            dimension_semantics=("parallel",),
            vmem_limit_bytes=_VMEM_LIMIT),
    )(x2d, w_t_bf16, bias_f32)


# -------------------- embedding: HBM row-gather via DMA ----------------------
def _embed_kernel(ids_ref, table_ref, o_ref, row_buf, sems):
    t = pl.program_id(0)
    n_rows = row_buf.shape[0]                        # B rows per decoder step

    copies = []
    for b in range(n_rows):                          # static unroll: LLO visibility
        tok = ids_ref[t * n_rows + b]
        cp = pltpu.make_async_copy(table_ref.at[pl.ds(tok, 1)],
                                   row_buf.at[pl.ds(b, 1)],
                                   sems.at[b])
        cp.start()
        copies.append(cp)
    for cp in copies:
        cp.wait()
    o_ref[0] = row_buf[...]


def embedding_pallas(ids, table):
    # ids: (T, B) int32; table: (V, H) f32 stays in HBM (padding_idx=0 row is 0).
    T, B = ids.shape
    V, H = table.shape
    return pl.pallas_call(
        _embed_kernel,
        out_shape=jax.ShapeDtypeStruct((T, B, H), table.dtype),
        grid_spec=pltpu.PrefetchScalarGridSpec(
            num_scalar_prefetch=1,                   # token ids land in SMEM
            grid=(T,),
            in_specs=[pl.BlockSpec(memory_space=pl.ANY)],   # table in HBM
            out_specs=pl.BlockSpec((1, B, H), lambda t, ids: (t, 0, 0)),
            scratch_shapes=[pltpu.VMEM((B, H), table.dtype),
                            pltpu.SemaphoreType.DMA((B,))],
        ),
        compiler_params=pltpu.CompilerParams(
            dimension_semantics=("parallel",),
            vmem_limit_bytes=_VMEM_LIMIT),
    )(ids.reshape(-1).astype(jnp.int32), table)


# ------------------------- LSTM recurrence (h @ W_hh) ------------------------
def _lstm_rec_kernel(gx_ref, whh_ref, o_ref, h_scr, c_scr):
    @pl.when(pl.program_id(1) == 0)                  # new batch block: zero state
    def _():
        h_scr[...] = jnp.zeros_like(h_scr)
        c_scr[...] = jnp.zeros_like(c_scr)

    hdim = h_scr.shape[-1]
    whh = whh_ref[...]                               # (H, 4H) bf16, invariant

    def step(t, carry):
        h, c = carry
        gates = gx_ref[t] + jnp.dot(h.astype(jnp.bfloat16), whh,
                                    preferred_element_type=jnp.float32)
        i = jax.nn.sigmoid(gates[:, 0:hdim])
        f = jax.nn.sigmoid(gates[:, hdim:2 * hdim])
        g = jnp.tanh(gates[:, 2 * hdim:3 * hdim])
        o = jax.nn.sigmoid(gates[:, 3 * hdim:4 * hdim])
        c_new = f * c + i * g
        h_new = o * jnp.tanh(c_new)
        o_ref[t] = h_new
        return (h_new, c_new)

    h_fin, c_fin = lax.fori_loop(0, o_ref.shape[0], step,
                                 (h_scr[...], c_scr[...]), unroll=True)
    h_scr[...] = h_fin
    c_scr[...] = c_fin


def lstm_recurrent_pallas(gates_x, whh_bf16, *, t_chunk=None, b_chunk=None):
    # gates_x: (T, B, 4H) f32 = x@W_ih + b_ih + b_hh ;  whh_bf16: (H, 4H)
    T, B, G = gates_x.shape
    H = G // 4
    if t_chunk is None:
        t_chunk = _largest_divisor(T, 4)             # amortize grid-step overhead
    if b_chunk is None:
        b_chunk = B                                  # at scale: B//2 per TC (v7x)
    return pl.pallas_call(
        _lstm_rec_kernel,
        out_shape=jax.ShapeDtypeStruct((T, B, H), jnp.float32),
        grid_spec=pltpu.PrefetchScalarGridSpec(
            num_scalar_prefetch=0,
            grid=(B // b_chunk, T // t_chunk),
            in_specs=[
                pl.BlockSpec((t_chunk, b_chunk, G), lambda bi, ti: (ti, bi, 0)),
                # invariant weight block (constant index; bf16 halves residency)
                pl.BlockSpec((H, G), lambda bi, ti: (0, 0)),
            ],
            out_specs=pl.BlockSpec((t_chunk, b_chunk, H),
                                   lambda bi, ti: (ti, bi, 0)),
            scratch_shapes=[pltpu.VMEM((b_chunk, H), jnp.float32),   # h state
                            pltpu.VMEM((b_chunk, H), jnp.float32)],  # c state
        ),
        compiler_params=pltpu.CompilerParams(
            dimension_semantics=("parallel", "arbitrary"),
            vmem_limit_bytes=_VMEM_LIMIT),
    )(gates_x, whh_bf16)


def lstm_layer(x_seq, wih_bf16, whh_bf16, bias, *, residual):
    T, B, H = x_seq.shape
    gates_x = linear_pallas(x_seq.reshape(T * B, H), wih_bf16, bias)
    gates_x = gates_x.reshape(T, B, 4 * H)
    h_seq = lstm_recurrent_pallas(gates_x, whh_bf16)
    return h_seq + x_seq if residual else h_seq      # residual add: XLA fuses it


# ------------------ Bahdanau attention scores + context ----------------------
def _attn_kernel(ctx_len_ref, pq_ref, pk_ref, k_ref, va_ref, o_ref):
    b = pl.program_id(0)
    pq = pq_ref[0]                                   # (tq, H), normalize_bias folded
    pk = pk_ref[0]                                   # (S, H) projected keys
    va = va_ref[...]                                 # (1, H) normalized linear_att

    # score[t, s] = sum_h tanh(pq[t,h] + pk[s,h]) * va[h]
    summed = pq[:, None, :] + pk[None, :, :]         # (tq, S, H) bounded by tq
    scores = jnp.sum(jnp.tanh(summed) * va[None, :, :], axis=-1)   # (tq, S) f32

    seqlen = ctx_len_ref[b]
    tk_idx = lax.broadcasted_iota(jnp.int32, scores.shape, 1)
    scores = jnp.where(tk_idx >= seqlen, -65504.0, scores)         # masked_fill
    m = jnp.max(scores, axis=-1, keepdims=True)
    e = jnp.exp(scores - m)
    p = e * pl.reciprocal(jnp.sum(e, axis=-1, keepdims=True), approx=True)
    ctx = jnp.dot(p.astype(jnp.bfloat16), k_ref[0].astype(jnp.bfloat16),
                  preferred_element_type=jnp.float32)               # (tq, H)
    o_ref[...] = ctx[None, :, :]


def attention_pallas(ctx_len, pq_bf, pk_bf, k_bf, va, *, tq=None):
    # pq_bf: (B, T, H); pk_bf/k_bf: (B, S, H); ctx_len: (B,) int32 (scalar prefetch)
    B, T, H = pq_bf.shape
    S = k_bf.shape[1]
    if tq is None:
        tq = _largest_divisor(T, 32, multiple=8)     # query tile (falls back to T)
    return pl.pallas_call(
        _attn_kernel,
        out_shape=jax.ShapeDtypeStruct((B, T, H), jnp.float32),
        grid_spec=pltpu.PrefetchScalarGridSpec(
            num_scalar_prefetch=1,
            grid=(B, T // tq),
            in_specs=[
                pl.BlockSpec((1, tq, H), lambda b, q, c: (b, q, 0)),
                pl.BlockSpec((1, S, H), lambda b, q, c: (b, 0, 0)),  # resident
                pl.BlockSpec((1, S, H), lambda b, q, c: (b, 0, 0)),  # resident
                pl.BlockSpec((1, H), lambda b, q, c: (0, 0)),
            ],
            out_specs=pl.BlockSpec((1, tq, H), lambda b, q, c: (b, q, 0)),
        ),
        compiler_params=pltpu.CompilerParams(
            dimension_semantics=("parallel", "parallel"),
            vmem_limit_bytes=_VMEM_LIMIT),
    )(ctx_len, pq_bf, pk_bf, k_bf, va)


# ------------------------------ parameters -----------------------------------
def init_params(key, vocab, hidden):
    ks = jax.random.split(key, 16)

    def u(k, shape, a):
        return jax.random.uniform(k, shape, jnp.float32, -a, a)

    emb = u(ks[0], (vocab, hidden), 0.1)
    emb = emb.at[0].set(0.0)                         # padding_idx=0

    def lstm_p(k0, k1, k2, in_dim, h):
        a = 1.0 / math.sqrt(h)
        k2a, k2b = jax.random.split(k2)
        return (u(k0, (in_dim, 4 * h), a).astype(jnp.bfloat16),   # W_ih^T
                u(k1, (h, 4 * h), a).astype(jnp.bfloat16),        # W_hh^T
                u(k2a, (1, 4 * h), a) + u(k2b, (1, 4 * h), a))    # b_ih+b_hh f32

    return {
        "emb": emb,
        "lstm1": lstm_p(ks[1], ks[2], ks[3], hidden, hidden),
        "lstm2": lstm_p(ks[4], ks[5], ks[6], hidden, hidden),
        "lstm_dec": lstm_p(ks[7], ks[8], ks[9], hidden, hidden),
        "att_wq_t": u(ks[10], (hidden, hidden), 0.1).astype(jnp.bfloat16),
        "att_wk_t": u(ks[11], (hidden, hidden), 0.1).astype(jnp.bfloat16),
        "att_v": u(ks[12], (hidden,), 0.1),                   # linear_att
        "att_scale": jnp.float32(1.0 / math.sqrt(hidden)),    # normalize_scalar
        "att_bias": jnp.zeros((hidden,), jnp.float32),        # normalize_bias
    }


# -------------------------------- forward ------------------------------------
def stage2_forward(params, input2, input1, input0, input3):
    # Dropout layers (layer10/14/21 + RecurrentAttention's) are identity here.
    out7 = input0 + input1                               # residual stream (XLA)
    out8 = embedding_pallas(input3, params["emb"])       # (T, B, H)

    out12 = lstm_layer(out7, *params["lstm1"], residual=True)
    out16 = lstm_layer(out12, *params["lstm2"], residual=True)   # encoder context
    rnn_out = lstm_layer(out8, *params["lstm_dec"], residual=False)

    T, B, H = rnn_out.shape
    S = out16.shape[0]

    # BahdanauAttention(normalize=True): query=rnn_out, keys=out16.
    v = params["att_v"]
    va = (v / jnp.linalg.norm(v)) * params["att_scale"]
    # normalize_bias enters tanh(pq + pk + b) once -> fold into the q projection.
    pq = linear_pallas(rnn_out.reshape(T * B, H), params["att_wq_t"],
                       params["att_bias"][None, :])
    pk = linear_pallas(out16.reshape(S * B, H), params["att_wk_t"],
                       jnp.zeros((1, H), jnp.float32))
    pq_bf = jnp.transpose(pq.reshape(T, B, H), (1, 0, 2))
    pk_bf = jnp.transpose(pk.reshape(S, B, H), (1, 0, 2))
    k_bf = jnp.transpose(out16, (1, 0, 2))
    ctx_bf = attention_pallas(input2, pq_bf, pk_bf, k_bf, va[None, :])
    out19 = jnp.transpose(ctx_bf, (1, 0, 2))             # attention context
    out21 = rnn_out                                      # dropout == identity
    return out19, out21


if __name__ == "__main__":
    key = jax.random.PRNGKey(0)
    H = 128   # hidden size (module uses 1024)
    V = 128   # vocab size  (module uses 32320)
    B = 8     # batch
    S = 16    # encoder sequence length
    T = 8     # decoder sequence length

    k0, k1, k2, k3, kp = jax.random.split(key, 5)
    input0 = jax.random.normal(k0, (S, B, H), jnp.float32) * 0.1
    input1 = jax.random.normal(k1, (S, B, H), jnp.float32) * 0.1
    input2 = jax.random.randint(k2, (B,), 1, S + 1).astype(jnp.int32)  # ctx len
    input3 = jax.random.randint(k3, (T, B), 0, V).astype(jnp.int32)    # tokens

    params = init_params(kp, V, H)

    fwd = jax.jit(functools.partial(stage2_forward, params))
    out19, out21 = fwd(input2, input1, input0, input3)
    jax.block_until_ready((out19, out21))
    assert out19.shape == (T, B, H) and out21.shape == (T, B, H)
    assert bool(jnp.all(jnp.isfinite(out19))) and bool(jnp.all(jnp.isfinite(out21)))
    print("KERNEL_OK")
</pallas_src>

<mosaic_0001>
module attributes {stable_mosaic.version = 11 : i64} {
  func.func @_linear_kernel(%arg0: i32, %arg1: memref<128x128xf32, #tpu.memory_space<vmem>>, %arg2: memref<128x512xbf16, #tpu.memory_space<vmem>>, %arg3: memref<1x512xf32, #tpu.memory_space<vmem>>, %arg4: memref<128x512xf32, #tpu.memory_space<vmem>>) attributes {dimension_semantics = [#tpu.dimension_semantics<parallel>], iteration_bounds = array<i64: 1>, scalar_prefetch = 0 : i64, scratch_operands = 0 : i64, tpu.core_type = #tpu.core_type<tc>, window_params = [{transform_indices = @transform_0, window_bounds = array<i64: 128, 128>}, {pipeline_mode = #tpu.pipeline_mode<synchronous>, transform_indices = @transform_1, window_bounds = array<i64: 128, 512>}, {pipeline_mode = #tpu.pipeline_mode<synchronous>, transform_indices = @transform_2, window_bounds = array<i64: 1, 512>}, {transform_indices = @transform_3, window_bounds = array<i64: 128, 512>}]} {
    %c0 = arith.constant 0 : index
    %c0_0 = arith.constant 0 : index
    %0 = vector.load %arg1[%c0, %c0_0] : memref<128x128xf32, #tpu.memory_space<vmem>>, vector<128x128xf32>
    %1 = arith.truncf %0 : vector<128x128xf32> to vector<128x128xbf16>
    %c0_1 = arith.constant 0 : index
    %c0_2 = arith.constant 0 : index
    %2 = vector.load %arg2[%c0_1, %c0_2] : memref<128x512xbf16, #tpu.memory_space<vmem>>, vector<128x512xbf16>
    %cst = arith.constant dense<0.000000e+00> : vector<128x512xf32>
    %3 = tpu.matmul %1, %2, %cst {dimension_numbers = #tpu.dot_dimension_numbers<[1], [0], [0], [1], [0, 0, 1, 1], [], []>} : vector<128x128xbf16>, vector<128x512xbf16>, vector<128x512xf32> -> vector<128x512xf32>
    %c0_3 = arith.constant 0 : index
    %c0_4 = arith.constant 0 : index
    %4 = vector.load %arg3[%c0_3, %c0_4] : memref<1x512xf32, #tpu.memory_space<vmem>>, vector<1x512xf32>
    %5 = vector.broadcast %4 : vector<1x512xf32> to vector<128x512xf32>
    %6 = arith.addf %3, %5 : vector<128x512xf32>
    %c0_5 = arith.constant 0 : index
    %c0_6 = arith.constant 0 : index
    %7 = vector.load %arg4[%c0_5, %c0_6] : memref<128x512xf32, #tpu.memory_space<vmem>>, vector<128x512xf32>
    tpu.vector_store %arg4[%c0_5, %c0_6], %6 {strides = array<i32>} : memref<128x512xf32, #tpu.memory_space<vmem>>, vector<128x512xf32>,
    return
  }
  func.func @transform_0(%arg0: i32) -> (i32, i32) {
    %c0_i32 = arith.constant 0 : i32
    %c0_i32_0 = arith.constant 0 : i32
    return %arg0, %c0_i32 : i32, i32
  }
  func.func @transform_1(%arg0: i32) -> (i32, i32) {
    %c0_i32 = arith.constant 0 : i32
    %c0_i32_0 = arith.constant 0 : i32
    %c0_i32_1 = arith.constant 0 : i32
    return %c0_i32, %c0_i32_0 : i32, i32
  }
  func.func @transform_2(%arg0: i32) -> (i32, i32) {
    %c0_i32 = arith.constant 0 : i32
    %c0_i32_0 = arith.constant 0 : i32
    %c0_i32_1 = arith.constant 0 : i32
    return %c0_i32, %c0_i32_0 : i32, i32
  }
  func.func @transform_3(%arg0: i32) -> (i32, i32) {
    %c0_i32 = arith.constant 0 : i32
    %c0_i32_0 = arith.constant 0 : i32
    return %arg0, %c0_i32 : i32, i32
  }
}

module attributes {stable_mosaic.version = 11 : i64} {
  func.func @_lstm_rec_kernel(%arg0: i32, %arg1: i32, %arg2: memref<4x8x512xf32, #tpu.memory_space<vmem>>, %arg3: memref<128x512xbf16, #tpu.memory_space<vmem>>, %arg4: memref<4x8x128xf32, #tpu.memory_space<vmem>>, %arg5: memref<8x128xf32, #tpu.memory_space<vmem>>, %arg6: memref<8x128xf32, #tpu.memory_space<vmem>>) attributes {dimension_semantics = [#tpu.dimension_semantics<parallel>, #tpu.dimension_semantics<arbitrary>], iteration_bounds = array<i64: 1, 4>, scalar_prefetch = 0 : i64, scratch_operands = 2 : i64, tpu.core_type = #tpu.core_type<tc>, window_params = [{transform_indices = @transform_0, window_bounds = array<i64: 4, 8, 512>}, {pipeline_mode = #tpu.pipeline_mode<synchronous>, transform_indices = @transform_1, window_bounds = array<i64: 128, 512>}, {transform_indices = @transform_2, window_bounds = array<i64: 4, 8, 128>}]} {
    %c0_i32 = arith.constant 0 : i32
    %0 = arith.cmpi eq, %arg1, %c0_i32 : i32
    %1 = arith.extui %0 : i1 to i32
    %c0_i32_0 = arith.constant 0 : i32
    %2 = arith.cmpi ne, %1, %c0_i32_0 : i32
    scf.if %2 {
      %cst_42 = arith.constant 0.000000e+00 : f32
      %148 = vector.broadcast %cst_42 : f32 to vector<8x128xf32>
      %c0_43 = arith.constant 0 : index
      %c0_44 = arith.constant 0 : index
      %149 = vector.load %arg5[%c0_43, %c0_44] : memref<8x128xf32, #tpu.memory_space<vmem>>, vector<8x128xf32>
      tpu.vector_store %arg5[%c0_43, %c0_44], %148 {strides = array<i32>} : memref<8x128xf32, #tpu.memory_space<vmem>>, vector<8x128xf32>,
      %cst_45 = arith.constant 0.000000e+00 : f32
      %150 = vector.broadcast %cst_45 : f32 to vector<8x128xf32>
      %c0_46 = arith.constant 0 : index
      %c0_47 = arith.constant 0 : index
      %151 = vector.load %arg6[%c0_46, %c0_47] : memref<8x128xf32, #tpu.memory_space<vmem>>, vector<8x128xf32>
      tpu.vector_store %arg6[%c0_46, %c0_47], %150 {strides = array<i32>} : memref<8x128xf32, #tpu.memory_space<vmem>>, vector<8x128xf32>,
    } else {
    }
    %c0 = arith.constant 0 : index
    %c0_1 = arith.constant 0 : index
    %3 = vector.load %arg3[%c0, %c0_1] : memref<128x512xbf16, #tpu.memory_space<vmem>>, vector<128x512xbf16>
    %c0_2 = arith.constant 0 : index
    %c0_3 = arith.constant 0 : index
    %4 = vector.load %arg5[%c0_2, %c0_3] : memref<8x128xf32, #tpu.memory_space<vmem>>, vector<8x128xf32>
    %c0_4 = arith.constant 0 : index
    %c0_5 = arith.constant 0 : index
    %5 = vector.load %arg6[%c0_4, %c0_5] : memref<8x128xf32, #tpu.memory_space<vmem>>, vector<8x128xf32>
    %c0_i32_6 = arith.constant 0 : i32
    %6 = arith.index_cast %c0_i32_6 : i32 to index
    %c0_7 = arith.constant 0 : index
    %c0_8 = arith.constant 0 : index
    %7 = vector.load %arg2[%6, %c0_7, %c0_8] : memref<4x8x512xf32, #tpu.memory_space<vmem>>, vector<1x8x512xf32>
    %8 = vector.shape_cast %7 : vector<1x8x512xf32> to vector<8x512xf32>
    %9 = arith.truncf %4 : vector<8x128xf32> to vector<8x128xbf16>
    %cst = arith.constant dense<0.000000e+00> : vector<8x512xf32>
    %10 = tpu.matmul %9, %3, %cst {dimension_numbers = #tpu.dot_dimension_numbers<[1], [0], [0], [1], [0, 0, 1, 1], [], []>} : vector<8x128xbf16>, vector<128x512xbf16>, vector<8x512xf32> -> vector<8x512xf32>
    %11 = arith.addf %8, %10 : vector<8x512xf32>
    %12 = vector.extract_strided_slice %11 {offsets = [0, 0], sizes = [8, 128], strides = [1, 1]} : vector<8x512xf32> to vector<8x128xf32>
    %13 = arith.negf %12 : vector<8x128xf32>
    %14 = math.exp %13 : vector<8x128xf32>
    %cst_9 = arith.constant 1.000000e+00 : f32
    %15 = vector.broadcast %cst_9 : f32 to vector<8x128xf32>
    %16 = arith.addf %15, %14 : vector<8x128xf32>
    %17 = arith.divf %15, %16 : vector<8x128xf32>
    %18 = vector.extract_strided_slice %11 {offsets = [0, 128], sizes = [8, 128], strides = [1, 1]} : vector<8x512xf32> to vector<8x128xf32>
    %19 = arith.negf %18 : vector<8x128xf32>
    %20 = math.exp %19 : vector<8x128xf32>
    %cst_10 = arith.constant 1.000000e+00 : f32
    %21 = vector.broadcast %cst_10 : f32 to vector<8x128xf32>
    %22 = arith.addf %21, %20 : vector<8x128xf32>
    %23 = arith.divf %21, %22 : vector<8x128xf32>
    %24 = vector.extract_strided_slice %11 {offsets = [0, 256], sizes = [8, 128], strides = [1, 1]} : vector<8x512xf32> to vector<8x128xf32>
    %25 = math.tanh %24 : vector<8x128xf32>
    %26 = vector.extract_strided_slice %11 {offsets = [0, 384], sizes = [8, 128], strides = [1, 1]} : vector<8x512xf32> to vector<8x128xf32>
    %27 = arith.negf %26 : vector<8x128xf32>
    %28 = math.exp %27 : vector<8x128xf32>
    %cst_11 = arith.constant 1.000000e+00 : f32
    %29 = vector.broadcast %cst_11 : f32 to vector<8x128xf32>
    %30 = arith.addf %29, %28 : vector<8x128xf32>
    %31 = arith.divf %29, %30 : vector<8x128xf32>
    %32 = arith.mulf %23, %5 : vector<8x128xf32>
    %33 = arith.mulf %17, %25 : vector<8x128xf32>
    %34 = arith.addf %32, %33 : vector<8x128xf32>
    %35 = math.tanh %34 : vector<8x128xf32>
    %36 = arith.mulf %31, %35 : vector<8x128xf32>
    %37 = arith.index_cast %c0_i32_6 : i32 to index
    %c0_12 = arith.constant 0 : index
    %c0_13 = arith.constant 0 : index
    %38 = vector.load %arg4[%37, %c0_12, %c0_13] : memref<4x8x128xf32, #tpu.memory_space<vmem>>, vector<1x8x128xf32>
    %39 = vector.shape_cast %38 : vector<1x8x128xf32> to vector<8x128xf32>
    %40 = vector.shape_cast %36 : vector<8x128xf32> to vector<1x8x128xf32>
    tpu.vector_store %arg4[%37, %c0_12, %c0_13], %40 {strides = array<i32>} : memref<4x8x128xf32, #tpu.memory_space<vmem>>, vector<1x8x128xf32>,
    %c1_i32 = arith.constant 1 : i32
    %41 = arith.index_cast %c1_i32 : i32 to index
    %c0_14 = arith.constant 0 : index
    %c0_15 = arith.constant 0 : index
    %42 = vector.load %arg2[%41, %c0_14, %c0_15] : memref<4x8x512xf32, #tpu.memory_space<vmem>>, vector<1x8x512xf32>
    %43 = vector.shape_cast %42 : vector<1x8x512xf32> to vector<8x512xf32>
    %44 = arith.truncf %36 : vector<8x128xf32> to vector<8x128xbf16>
    %cst_16 = arith.constant dense<0.000000e+00> : vector<8x512xf32>
    %45 = tpu.matmul %44, %3, %cst_16 {dimension_numbers = #tpu.dot_dimension_numbers<[1], [0], [0], [1], [0, 0, 1, 1], [], []>} : vector<8x128xbf16>, vector<128x512xbf16>, vector<8x512xf32> -> vector<8x512xf32>
    %46 = arith.addf %43, %45 : vector<8x512xf32>
    %47 = vector.extract_strided_slice %46 {offsets = [0, 0], sizes = [8, 128], strides = [1, 1]} : vector<8x512xf32> to vector<8x128xf32>
    %48 = arith.negf %47 : vector<8x128xf32>
    %49 = math.exp %48 : vector<8x128xf32>
    %cst_17 = arith.constant 1.000000e+00 : f32
    %50 = vector.broadcast %cst_17 : f32 to vector<8x128xf32>
    %51 = arith.addf %50, %49 : vector<8x128xf32>
    %52 = arith.divf %50, %51 : vector<8x128xf32>
    %53 = vector.extract_strided_slice %46 {offsets = [0, 128], sizes = [8, 128], strides = [1, 1]} : vector<8x512xf32> to vector<8x128xf32>
    %54 = arith.negf %53 : vector<8x128xf32>
    %55 = math.exp %54 : vector<8x128xf32>
    %cst_18 = arith.constant 1.000000e+00 : f32
    %56 = vector.broadcast %cst_18 : f32 to vector<8x128xf32>
    %57 = arith.addf %56, %55 : vector<8x128xf32>
    %58 = arith.divf %56, %57 : vector<8x128xf32>
    %59 = vector.extract_strided_slice %46 {offsets = [0, 256], sizes = [8, 128], strides = [1, 1]} : vector<8x512xf32> to vector<8x128xf32>
    %60 = math.tanh %59 : vector<8x128xf32>
    %61 = vector.extract_strided_slice %46 {offsets = [0, 384], sizes = [8, 128], strides = [1, 1]} : vector<8x512xf32> to vector<8x128xf32>
    %62 = arith.negf %61 : vector<8x128xf32>
    %63 = math.exp %62 : vector<8x128xf32>
    %cst_19 = arith.constant 1.000000e+00 : f32
    %64 = vector.broadcast %cst_19 : f32 to vector<8x128xf32>
    %65 = arith.addf %64, %63 : vector<8x128xf32>
    %66 = arith.divf %64, %65 : vector<8x128xf32>
    %67 = arith.mulf %58, %34 : vector<8x128xf32>
    %68 = arith.mulf %52, %60 : vector<8x128xf32>
    %69 = arith.addf %67, %68 : vector<8x128xf32>
    %70 = math.tanh %69 : vector<8x128xf32>
    %71 = arith.mulf %66, %70 : vector<8x128xf32>
    %72 = arith.index_cast %c1_i32 : i32 to index
    %c0_20 = arith.constant 0 : index
    %c0_21 = arith.constant 0 : index
    %73 = vector.load %arg4[%72, %c0_20, %c0_21] : memref<4x8x128xf32, #tpu.memory_space<vmem>>, vector<1x8x128xf32>
    %74 = vector.shape_cast %73 : vector<1x8x128xf32> to vector<8x128xf32>
    %75 = vector.shape_cast %71 : vector<8x128xf32> to vector<1x8x128xf32>
    tpu.vector_store %arg4[%72, %c0_20, %c0_21], %75 {strides = array<i32>} : memref<4x8x128xf32, #tpu.memory_space<vmem>>, vector<1x8x128xf32>,
    %c2_i32 = arith.constant 2 : i32
    %76 = arith.index_cast %c2_i32 : i32 to index
    %c0_22 = arith.constant 0 : index
    %c0_23 = arith.constant 0 : index
    %77 = vector.load %arg2[%76, %c0_22, %c0_23] : memref<4x8x512xf32, #tpu.memory_space<vmem>>, vector<1x8x512xf32>
    %78 = vector.shape_cast %77 : vector<1x8x512xf32> to vector<8x512xf32>
    %79 = arith.truncf %71 : vector<8x128xf32> to vector<8x128xbf16>
    %cst_24 = arith.constant dense<0.000000e+00> : vector<8x512xf32>
    %80 = tpu.matmul %79, %3, %cst_24 {dimension_numbers = #tpu.dot_dimension_numbers<[1], [0], [0], [1], [0, 0, 1, 1], [], []>} : vector<8x128xbf16>, vector<128x512xbf16>, vector<8x512xf32> -> vector<8x512xf32>
    %81 = arith.addf %78, %80 : vector<8x512xf32>
    %82 = vector.extract_strided_slice %81 {offsets = [0, 0], sizes = [8, 128], strides = [1, 1]} : vector<8x512xf32> to vector<8x128xf32>
    %83 = arith.negf %82 : vector<8x128xf32>
    %84 = math.exp %83 : vector<8x128xf32>
    %cst_25 = arith.constant 1.000000e+00 : f32
    %85 = vector.broadcast %cst_25 : f32 to vector<8x128xf32>
    %86 = arith.addf %85, %84 : vector<8x128xf32>
    %87 = arith.divf %85, %86 : vector<8x128xf32>
    %88 = vector.extract_strided_slice %81 {offsets = [0, 128], sizes = [8, 128], strides = [1, 1]} : vector<8x512xf32> to vector<8x128xf32>
    %89 = arith.negf %88 : vector<8x128xf32>
    %90 = math.exp %89 : vector<8x128xf32>
    %cst_26 = arith.constant 1.000000e+00 : f32
    %91 = vector.broadcast %cst_26 : f32 to vector<8x128xf32>
    %92 = arith.addf %91, %90 : vector<8x128xf32>
    %93 = arith.divf %91, %92 : vector<8x128xf32>
    %94 = vector.extract_strided_slice %81 {offsets = [0, 256], sizes = [8, 128], strides = [1, 1]} : vector<8x512xf32> to vector<8x128xf32>
    %95 = math.tanh %94 : vector<8x128xf32>
    %96 = vector.extract_strided_slice %81 {offsets = [0, 384], sizes = [8, 128], strides = [1, 1]} : vector<8x512xf32> to vector<8x128xf32>
    %97 = arith.negf %96 : vector<8x128xf32>
    %98 = math.exp %97 : vector<8x128xf32>
    %cst_27 = arith.constant 1.000000e+00 : f32
    %99 = vector.broadcast %cst_27 : f32 to vector<8x128xf32>
    %100 = arith.addf %99, %98 : vector<8x128xf32>
    %101 = arith.divf %99, %100 : vector<8x128xf32>
    %102 = arith.mulf %93, %69 : vector<8x128xf32>
    %103 = arith.mulf %87, %95 : vector<8x128xf32>
    %104 = arith.addf %102, %103 : vector<8x128xf32>
    %105 = math.tanh %104 : vector<8x128xf32>
    %106 = arith.mulf %101, %105 : vector<8x128xf32>
    %107 = arith.index_cast %c2_i32 : i32 to index
    %c0_28 = arith.constant 0 : index
    %c0_29 = arith.constant 0 : index
    %108 = vector.load %arg4[%107, %c0_28, %c0_29] : memref<4x8x128xf32, #tpu.memory_space<vmem>>, vector<1x8x128xf32>
    %109 = vector.shape_cast %108 : vector<1x8x128xf32> to vector<8x128xf32>
    %110 = vector.shape_cast %106 : vector<8x128xf32> to vector<1x8x128xf32>
    tpu.vector_store %arg4[%107, %c0_28, %c0_29], %110 {strides = array<i32>} : memref<4x8x128xf32, #tpu.memory_space<vmem>>, vector<1x8x128xf32>,
    %c3_i32 = arith.constant 3 : i32
    %111 = arith.index_cast %c3_i32 : i32 to index
    %c0_30 = arith.constant 0 : index
    %c0_31 = arith.constant 0 : index
    %112 = vector.load %arg2[%111, %c0_30, %c0_31] : memref<4x8x512xf32, #tpu.memory_space<vmem>>, vector<1x8x512xf32>
    %113 = vector.shape_cast %112 : vector<1x8x512xf32> to vector<8x512xf32>
    %114 = arith.truncf %106 : vector<8x128xf32> to vector<8x128xbf16>
    %cst_32 = arith.constant dense<0.000000e+00> : vector<8x512xf32>
    %115 = tpu.matmul %114, %3, %cst_32 {dimension_numbers = #tpu.dot_dimension_numbers<[1], [0], [0], [1], [0, 0, 1, 1], [], []>} : vector<8x128xbf16>, vector<128x512xbf16>, vector<8x512xf32> -> vector<8x512xf32>
    %116 = arith.addf %113, %115 : vector<8x512xf32>
    %117 = vector.extract_strided_slice %116 {offsets = [0, 0], sizes = [8, 128], strides = [1, 1]} : vector<8x512xf32> to vector<8x128xf32>
    %118 = arith.negf %117 : vector<8x128xf32>
    %119 = math.exp %118 : vector<8x128xf32>
    %cst_33 = arith.constant 1.000000e+00 : f32
    %120 = vector.broadcast %cst_33 : f32 to vector<8x128xf32>
    %121 = arith.addf %120, %119 : vector<8x128xf32>
    %122 = arith.divf %120, %121 : vector<8x128xf32>
    %123 = vector.extract_strided_slice %116 {offsets = [0, 128], sizes = [8, 128], strides = [1, 1]} : vector<8x512xf32> to vector<8x128xf32>
    %124 = arith.negf %123 : vector<8x128xf32>
    %125 = math.exp %124 : vector<8x128xf32>
    %cst_34 = arith.constant 1.000000e+00 : f32
    %126 = vector.broadcast %cst_34 : f32 to vector<8x128xf32>
    %127 = arith.addf %126, %125 : vector<8x128xf32>
    %128 = arith.divf %126, %127 : vector<8x128xf32>
    %129 = vector.extract_strided_slice %116 {offsets = [0, 256], sizes = [8, 128], strides = [1, 1]} : vector<8x512xf32> to vector<8x128xf32>
    %130 = math.tanh %129 : vector<8x128xf32>
    %131 = vector.extract_strided_slice %116 {offsets = [0, 384], sizes = [8, 128], strides = [1, 1]} : vector<8x512xf32> to vector<8x128xf32>
    %132 = arith.negf %131 : vector<8x128xf32>
    %133 = math.exp %132 : vector<8x128xf32>
    %cst_35 = arith.constant 1.000000e+00 : f32
    %134 = vector.broadcast %cst_35 : f32 to vector<8x128xf32>
    %135 = arith.addf %134, %133 : vector<8x128xf32>
    %136 = arith.divf %134, %135 : vector<8x128xf32>
    %137 = arith.mulf %128, %104 : vector<8x128xf32>
    %138 = arith.mulf %122, %130 : vector<8x128xf32>
    %139 = arith.addf %137, %138 : vector<8x128xf32>
    %140 = math.tanh %139 : vector<8x128xf32>
    %141 = arith.mulf %136, %140 : vector<8x128xf32>
    %142 = arith.index_cast %c3_i32 : i32 to index
    %c0_36 = arith.constant 0 : index
    %c0_37 = arith.constant 0 : index
    %143 = vector.load %arg4[%142, %c0_36, %c0_37] : memref<4x8x128xf32, #tpu.memory_space<vmem>>, vector<1x8x128xf32>
    %144 = vector.shape_cast %143 : vector<1x8x128xf32> to vector<8x128xf32>
    %145 = vector.shape_cast %141 : vector<8x128xf32> to vector<1x8x128xf32>
    tpu.vector_store %arg4[%142, %c0_36, %c0_37], %145 {strides = array<i32>} : memref<4x8x128xf32, #tpu.memory_space<vmem>>, vector<1x8x128xf32>,
    %c4_i32 = arith.constant 4 : i32
    %c0_38 = arith.constant 0 : index
    %c0_39 = arith.constant 0 : index
    %146 = vector.load %arg5[%c0_38, %c0_39] : memref<8x128xf32, #tpu.memory_space<vmem>>, vector<8x128xf32>
    tpu.vector_store %arg5[%c0_38, %c0_39], %141 {strides = array<i32>} : memref<8x128xf32, #tpu.memory_space<vmem>>, vector<8x128xf32>,
    %c0_40 = arith.constant 0 : index
    %c0_41 = arith.constant 0 : index
    %147 = vector.load %arg6[%c0_40, %c0_41] : memref<8x128xf32, #tpu.memory_space<vmem>>, vector<8x128xf32>
    tpu.vector_store %arg6[%c0_40, %c0_41], %139 {strides = array<i32>} : memref<8x128xf32, #tpu.memory_space<vmem>>, vector<8x128xf32>,
    return
  }
  func.func @transform_0(%arg0: i32, %arg1: i32) -> (i32, i32, i32) {
    %c0_i32 = arith.constant 0 : i32
    %c0_i32_0 = arith.constant 0 : i32
    return %arg1, %arg0, %c0_i32 : i32, i32, i32
  }
  func.func @transform_1(%arg0: i32, %arg1: i32) -> (i32, i32) {
    %c0_i32 = arith.constant 0 : i32
    %c0_i32_0 = arith.constant 0 : i32
    %c0_i32_1 = arith.constant 0 : i32
    return %c0_i32, %c0_i32_0 : i32, i32
  }
  func.func @transform_2(%arg0: i32, %arg1: i32) -> (i32, i32, i32) {
    %c0_i32 = arith.constant 0 : i32
    %c0_i32_0 = arith.constant 0 : i32
    return %arg1, %arg0, %c0_i32 : i32, i32, i32
  }
}

module attributes {stable_mosaic.version = 11 : i64} {
  func.func @_linear_kernel(%arg0: i32, %arg1: memref<128x128xf32, #tpu.memory_space<vmem>>, %arg2: memref<128x128xbf16, #tpu.memory_space<vmem>>, %arg3: memref<1x128xf32, #tpu.memory_space<vmem>>, %arg4: memref<128x128xf32, #tpu.memory_space<vmem>>) attributes {dimension_semantics = [#tpu.dimension_semantics<parallel>], iteration_bounds = array<i64: 1>, scalar_prefetch = 0 : i64, scratch_operands = 0 : i64, tpu.core_type = #tpu.core_type<tc>, window_params = [{transform_indices = @transform_0, window_bounds = array<i64: 128, 128>}, {pipeline_mode = #tpu.pipeline_mode<synchronous>, transform_indices = @transform_1, window_bounds = array<i64: 128, 128>}, {pipeline_mode = #tpu.pipeline_mode<synchronous>, transform_indices = @transform_2, window_bounds = array<i64: 1, 128>}, {transform_indices = @transform_3, window_bounds = array<i64: 128, 128>}]} {
    %c0 = arith.constant 0 : index
    %c0_0 = arith.constant 0 : index
    %0 = vector.load %arg1[%c0, %c0_0] : memref<128x128xf32, #tpu.memory_space<vmem>>, vector<128x128xf32>
    %1 = arith.truncf %0 : vector<128x128xf32> to vector<128x128xbf16>
    %c0_1 = arith.constant 0 : index
    %c0_2 = arith.constant 0 : index
    %2 = vector.load %arg2[%c0_1, %c0_2] : memref<128x128xbf16, #tpu.memory_space<vmem>>, vector<128x128xbf16>
    %cst = arith.constant dense<0.000000e+00> : vector<128x128xf32>
    %3 = tpu.matmul %1, %2, %cst {dimension_numbers = #tpu.dot_dimension_numbers<[1], [0], [0], [1], [0, 0, 1, 1], [], []>} : vector<128x128xbf16>, vector<128x128xbf16>, vector<128x128xf32> -> vector<128x128xf32>
    %c0_3 = arith.constant 0 : index
    %c0_4 = arith.constant 0 : index
    %4 = vector.load %arg3[%c0_3, %c0_4] : memref<1x128xf32, #tpu.memory_space<vmem>>, vector<1x128xf32>
    %5 = vector.broadcast %4 : vector<1x128xf32> to vector<128x128xf32>
    %6 = arith.addf %3, %5 : vector<128x128xf32>
    %c0_5 = arith.constant 0 : index
    %c0_6 = arith.constant 0 : index
    %7 = vector.load %arg4[%c0_5, %c0_6] : memref<128x128xf32, #tpu.memory_space<vmem>>, vector<128x128xf32>
    tpu.vector_store %arg4[%c0_5, %c0_6], %6 {strides = array<i32>} : memref<128x128xf32, #tpu.memory_space<vmem>>, vector<128x128xf32>,
    return
  }
  func.func @transform_0(%arg0: i32) -> (i32, i32) {
    %c0_i32 = arith.constant 0 : i32
    %c0_i32_0 = arith.constant 0 : i32
    return %arg0, %c0_i32 : i32, i32
  }
  func.func @transform_1(%arg0: i32) -> (i32, i32) {
    %c0_i32 = arith.constant 0 : i32
    %c0_i32_0 = arith.constant 0 : i32
    %c0_i32_1 = arith.constant 0 : i32
    return %c0_i32, %c0_i32_0 : i32, i32
  }
  func.func @transform_2(%arg0: i32) -> (i32, i32) {
    %c0_i32 = arith.constant 0 : i32
    %c0_i32_0 = arith.constant 0 : i32
    %c0_i32_1 = arith.constant 0 : i32
    return %c0_i32, %c0_i32_0 : i32, i32
  }
  func.func @transform_3(%arg0: i32) -> (i32, i32) {
    %c0_i32 = arith.constant 0 : i32
    %c0_i32_0 = arith.constant 0 : i32
    return %arg0, %c0_i32 : i32, i32
  }
}

module attributes {stable_mosaic.version = 11 : i64} {
  func.func @_embed_kernel(%arg0: i32, %arg1: memref<64xi32, #tpu.memory_space<smem>>, %arg2: memref<128x128xf32, #tpu.memory_space<any>>, %arg3: memref<1x8x128xf32, #tpu.memory_space<vmem>>, %arg4: memref<8x128xf32, #tpu.memory_space<vmem>>, %arg5: memref<8x!tpu.dma_semaphore, #tpu.memory_space<semaphore_mem>>) attributes {dimension_semantics = [#tpu.dimension_semantics<parallel>], iteration_bounds = array<i64: 8>, scalar_prefetch = 1 : i64, scratch_operands = 2 : i64, tpu.core_type = #tpu.core_type<tc>, window_params = [{}, {transform_indices = @transform_1, window_bounds = array<i64: 1, 8, 128>}]} {
    %c8_i32 = arith.constant 8 : i32
    %0 = arith.muli %arg0, %c8_i32 : i32
    %c0_i32 = arith.constant 0 : i32
    %1 = arith.addi %0, %c0_i32 : i32
    %2 = arith.index_cast %1 : i32 to index
    %3 = memref.load %arg1[%2] : memref<64xi32, #tpu.memory_space<smem>>
    %c0_i32_0 = arith.constant 0 : i32
    %c0_i32_1 = arith.constant 0 : i32
    %4 = tpu.memref_slice %arg2[%3, %c0_i32_1] : memref<128x128xf32, #tpu.memory_space<any>> -> memref<1x128xf32, #tpu.memory_space<any>>
    %c0_i32_2 = arith.constant 0 : i32
    %c0_i32_3 = arith.constant 0 : i32
    %5 = tpu.memref_slice %arg4[%c0_i32_2, %c0_i32_3] : memref<8x128xf32, #tpu.memory_space<vmem>> -> memref<1x128xf32, #tpu.memory_space<vmem>>
    %6 = tpu.memref_slice %arg5[%c0_i32_0] : memref<8x!tpu.dma_semaphore, #tpu.memory_space<semaphore_mem>> -> memref<1x!tpu.dma_semaphore, #tpu.memory_space<semaphore_mem>>
    %7 = tpu.memref_squeeze %6 : memref<1x!tpu.dma_semaphore, #tpu.memory_space<semaphore_mem>> -> memref<!tpu.dma_semaphore, #tpu.memory_space<semaphore_mem>>
    tpu.enqueue_dma source(%4 : memref<1x128xf32, #tpu.memory_space<any>>) target(%5 : memref<1x128xf32, #tpu.memory_space<vmem>>) target_semaphore(%7 : memref<!tpu.dma_semaphore, #tpu.memory_space<semaphore_mem>>)
    %c8_i32_4 = arith.constant 8 : i32
    %8 = arith.muli %arg0, %c8_i32_4 : i32
    %c1_i32 = arith.constant 1 : i32
    %9 = arith.addi %8, %c1_i32 : i32
    %10 = arith.index_cast %9 : i32 to index
    %11 = memref.load %arg1[%10] : memref<64xi32, #tpu.memory_space<smem>>
    %c1_i32_5 = arith.constant 1 : i32
    %c0_i32_6 = arith.constant 0 : i32
    %12 = tpu.memref_slice %arg2[%11, %c0_i32_6] : memref<128x128xf32, #tpu.memory_space<any>> -> memref<1x128xf32, #tpu.memory_space<any>>
    %c1_i32_7 = arith.constant 1 : i32
    %c0_i32_8 = arith.constant 0 : i32
    %13 = tpu.memref_slice %arg4[%c1_i32_7, %c0_i32_8] : memref<8x128xf32, #tpu.memory_space<vmem>> -> memref<1x128xf32, #tpu.memory_space<vmem>>
    %14 = tpu.memref_slice %arg5[%c1_i32_5] : memref<8x!tpu.dma_semaphore, #tpu.memory_space<semaphore_mem>> -> memref<1x!tpu.dma_semaphore, #tpu.memory_space<semaphore_mem>>
    %15 = tpu.memref_squeeze %14 : memref<1x!tpu.dma_semaphore, #tpu.memory_space<semaphore_mem>> -> memref<!tpu.dma_semaphore, #tpu.memory_space<semaphore_mem>>
    tpu.enqueue_dma source(%12 : memref<1x128xf32, #tpu.memory_space<any>>) target(%13 : memref<1x128xf32, #tpu.memory_space<vmem>>) target_semaphore(%15 : memref<!tpu.dma_semaphore, #tpu.memory_space<semaphore_mem>>)
    %c8_i32_9 = arith.constant 8 : i32
    %16 = arith.muli %arg0, %c8_i32_9 : i32
    %c2_i32 = arith.constant 2 : i32
    %17 = arith.addi %16, %c2_i32 : i32
    %18 = arith.index_cast %17 : i32 to index
    %19 = memref.load %arg1[%18] : memref<64xi32, #tpu.memory_space<smem>>
    %c2_i32_10 = arith.constant 2 : i32
    %c0_i32_11 = arith.constant 0 : i32
    %20 = tpu.memref_slice %arg2[%19, %c0_i32_11] : memref<128x128xf32, #tpu.memory_space<any>> -> memref<1x128xf32, #tpu.memory_space<any>>
    %c2_i32_12 = arith.constant 2 : i32
    %c0_i32_13 = arith.constant 0 : i32
    %21 = tpu.memref_slice %arg4[%c2_i32_12, %c0_i32_13] : memref<8x128xf32, #tpu.memory_space<vmem>> -> memref<1x128xf32, #tpu.memory_space<vmem>>
    %22 = tpu.memref_slice %arg5[%c2_i32_10] : memref<8x!tpu.dma_semaphore, #tpu.memory_space<semaphore_mem>> -> memref<1x!tpu.dma_semaphore, #tpu.memory_space<semaphore_mem>>
    %23 = tpu.memref_squeeze %22 : memref<1x!tpu.dma_semaphore, #tpu.memory_space<semaphore_mem>> -> memref<!tpu.dma_semaphore, #tpu.memory_space<semaphore_mem>>
    tpu.enqueue_dma source(%20 : memref<1x128xf32, #tpu.memory_space<any>>) target(%21 : memref<1x128xf32, #tpu.memory_space<vmem>>) target_semaphore(%23 : memref<!tpu.dma_semaphore, #tpu.memory_space<semaphore_mem>>)
    %c8_i32_14 = arith.constant 8 : i32
    %24 = arith.muli %arg0, %c8_i32_14 : i32
    %c3_i32 = arith.constant 3 : i32
    %25 = arith.addi %24, %c3_i32 : i32
    %26 = arith.index_cast %25 : i32 to index
    %27 = memref.load %arg1[%26] : memref<64xi32, #tpu.memory_space<smem>>
    %c3_i32_15 = arith.constant 3 : i32
    %c0_i32_16 = arith.constant 0 : i32
    %28 = tpu.memref_slice %arg2[%27, %c0_i32_16] : memref<128x128xf32, #tpu.memory_space<any>> -> memref<1x128xf32, #tpu.memory_space<any>>
    %c3_i32_17 = arith.constant 3 : i32
    %c0_i32_18 = arith.constant 0 : i32
    %29 = tpu.memref_slice %arg4[%c3_i32_17, %c0_i32_18] : memref<8x128xf32, #tpu.memory_space<vmem>> -> memref<1x128xf32, #tpu.memory_space<vmem>>
    %30 = tpu.memref_slice %arg5[%c3_i32_15] : memref<8x!tpu.dma_semaphore, #tpu.memory_space<semaphore_mem>> -> memref<1x!tpu.dma_semaphore, #tpu.memory_space<semaphore_mem>>
    %31 = tpu.memref_squeeze %30 : memref<1x!tpu.dma_semaphore, #tpu.memory_space<semaphore_mem>> -> memref<!tpu.dma_semaphore, #tpu.memory_space<semaphore_mem>>
    tpu.enqueue_dma source(%28 : memref<1x128xf32, #tpu.memory_space<any>>) target(%29 : memref<1x128xf32, #tpu.memory_space<vmem>>) target_semaphore(%31 : memref<!tpu.dma_semaphore, #tpu.memory_space<semaphore_mem>>)
    %c8_i32_19 = arith.constant 8 : i32
    %32 = arith.muli %arg0, %c8_i32_19 : i32
    %c4_i32 = arith.constant 4 : i32
    %33 = arith.addi %32, %c4_i32 : i32
    %34 = arith.index_cast %33 : i32 to index
    %35 = memref.load %arg1[%34] : memref<64xi32, #tpu.memory_space<smem>>
    %c4_i32_20 = arith.constant 4 : i32
    %c0_i32_21 = arith.constant 0 : i32
    %36 = tpu.memref_slice %arg2[%35, %c0_i32_21] : memref<128x128xf32, #tpu.memory_space<any>> -> memref<1x128xf32, #tpu.memory_space<any>>
    %c4_i32_22 = arith.constant 4 : i32
    %c0_i32_23 = arith.constant 0 : i32
    %37 = tpu.memref_slice %arg4[%c4_i32_22, %c0_i32_23] : memref<8x128xf32, #tpu.memory_space<vmem>> -> memref<1x128xf32, #tpu.memory_space<vmem>>
    %38 = tpu.memref_slice %arg5[%c4_i32_20] : memref<8x!tpu.dma_semaphore, #tpu.memory_space<semaphore_mem>> -> memref<1x!tpu.dma_semaphore, #tpu.memory_space<semaphore_mem>>
    %39 = tpu.memref_squeeze %38 : memref<1x!tpu.dma_semaphore, #tpu.memory_space<semaphore_mem>> -> memref<!tpu.dma_semaphore, #tpu.memory_space<semaphore_mem>>
    tpu.enqueue_dma source(%36 : memref<1x128xf32, #tpu.memory_space<any>>) target(%37 : memref<1x128xf32, #tpu.memory_space<vmem>>) target_semaphore(%39 : memref<!tpu.dma_semaphore, #tpu.memory_space<semaphore_mem>>)
    %c8_i32_24 = arith.constant 8 : i32
    %40 = arith.muli %arg0, %c8_i32_24 : i32
    %c5_i32 = arith.constant 5 : i32
    %41 = arith.addi %40, %c5_i32 : i32
    %42 = arith.index_cast %41 : i32 to index
    %43 = memref.load %arg1[%42] : memref<64xi32, #tpu.memory_space<smem>>
    %c5_i32_25 = arith.constant 5 : i32
    %c0_i32_26 = arith.constant 0 : i32
    %44 = tpu.memref_slice %arg2[%43, %c0_i32_26] : memref<128x128xf32, #tpu.memory_space<any>> -> memref<1x128xf32, #tpu.memory_space<any>>
    %c5_i32_27 = arith.constant 5 : i32
    %c0_i32_28 = arith.constant 0 : i32
    %45 = tpu.memref_slice %arg4[%c5_i32_27, %c0_i32_28] : memref<8x128xf32, #tpu.memory_space<vmem>> -> memref<1x128xf32, #tpu.memory_space<vmem>>
    %46 = tpu.memref_slice %arg5[%c5_i32_25] : memref<8x!tpu.dma_semaphore, #tpu.memory_space<semaphore_mem>> -> memref<1x!tpu.dma_semaphore, #tpu.memory_space<semaphore_mem>>
    %47 = tpu.memref_squeeze %46 : memref<1x!tpu.dma_semaphore, #tpu.memory_space<semaphore_mem>> -> memref<!tpu.dma_semaphore, #tpu.memory_space<semaphore_mem>>
    tpu.enqueue_dma source(%44 : memref<1x128xf32, #tpu.memory_space<any>>) target(%45 : memref<1x128xf32, #tpu.memory_space<vmem>>) target_semaphore(%47 : memref<!tpu.dma_semaphore, #tpu.memory_space<semaphore_mem>>)
    %c8_i32_29 = arith.constant 8 : i32
    %48 = arith.muli %arg0, %c8_i32_29 : i32
    %c6_i32 = arith.constant 6 : i32
    %49 = arith.addi %48, %c6_i32 : i32
    %50 = arith.index_cast %49 : i32 to index
    %51 = memref.load %arg1[%50] : memref<64xi32, #tpu.memory_space<smem>>
    %c6_i32_30 = arith.constant 6 : i32
    %c0_i32_31 = arith.constant 0 : i32
    %52 = tpu.memref_slice %arg2[%51, %c0_i32_31] : memref<128x128xf32, #tpu.memory_space<any>> -> memref<1x128xf32, #tpu.memory_space<any>>
    %c6_i32_32 = arith.constant 6 : i32
    %c0_i32_33 = arith.constant 0 : i32
    %53 = tpu.memref_slice %arg4[%c6_i32_32, %c0_i32_33] : memref<8x128xf32, #tpu.memory_space<vmem>> -> memref<1x128xf32, #tpu.memory_space<vmem>>
    %54 = tpu.memref_slice %arg5[%c6_i32_30] : memref<8x!tpu.dma_semaphore, #tpu.memory_space<semaphore_mem>> -> memref<1x!tpu.dma_semaphore, #tpu.memory_space<semaphore_mem>>
    %55 = tpu.memref_squeeze %54 : memref<1x!tpu.dma_semaphore, #tpu.memory_space<semaphore_mem>> -> memref<!tpu.dma_semaphore, #tpu.memory_space<semaphore_mem>>
    tpu.enqueue_dma source(%52 : memref<1x128xf32, #tpu.memory_space<any>>) target(%53 : memref<1x128xf32, #tpu.memory_space<vmem>>) target_semaphore(%55 : memref<!tpu.dma_semaphore, #tpu.memory_space<semaphore_mem>>)
    %c8_i32_34 = arith.constant 8 : i32
    %56 = arith.muli %arg0, %c8_i32_34 : i32
    %c7_i32 = arith.constant 7 : i32
    %57 = arith.addi %56, %c7_i32 : i32
    %58 = arith.index_cast %57 : i32 to index
    %59 = memref.load %arg1[%58] : memref<64xi32, #tpu.memory_space<smem>>
    %c7_i32_35 = arith.constant 7 : i32
    %c0_i32_36 = arith.constant 0 : i32
    %60 = tpu.memref_slice %arg2[%59, %c0_i32_36] : memref<128x128xf32, #tpu.memory_space<any>> -> memref<1x128xf32, #tpu.memory_space<any>>
    %c7_i32_37 = arith.constant 7 : i32
    %c0_i32_38 = arith.constant 0 : i32
    %61 = tpu.memref_slice %arg4[%c7_i32_37, %c0_i32_38] : memref<8x128xf32, #tpu.memory_space<vmem>> -> memref<1x128xf32, #tpu.memory_space<vmem>>
    %62 = tpu.memref_slice %arg5[%c7_i32_35] : memref<8x!tpu.dma_semaphore, #tpu.memory_space<semaphore_mem>> -> memref<1x!tpu.dma_semaphore, #tpu.memory_space<semaphore_mem>>
    %63 = tpu.memref_squeeze %62 : memref<1x!tpu.dma_semaphore, #tpu.memory_space<semaphore_mem>> -> memref<!tpu.dma_semaphore, #tpu.memory_space<semaphore_mem>>
    tpu.enqueue_dma source(%60 : memref<1x128xf32, #tpu.memory_space<any>>) target(%61 : memref<1x128xf32, #tpu.memory_space<vmem>>) target_semaphore(%63 : memref<!tpu.dma_semaphore, #tpu.memory_space<semaphore_mem>>)
    %c0_i32_39 = arith.constant 0 : i32
    %c0_i32_40 = arith.constant 0 : i32
    %64 = tpu.memref_slice %arg2[%3, %c0_i32_40] : memref<128x128xf32, #tpu.memory_space<any>> -> memref<1x128xf32, #tpu.memory_space<any>>
    %c0_i32_41 = arith.constant 0 : i32
    %c0_i32_42 = arith.constant 0 : i32
    %65 = tpu.memref_slice %arg4[%c0_i32_41, %c0_i32_42] : memref<8x128xf32, #tpu.memory_space<vmem>> -> memref<1x128xf32, #tpu.memory_space<vmem>>
    %66 = tpu.memref_slice %arg5[%c0_i32_39] : memref<8x!tpu.dma_semaphore, #tpu.memory_space<semaphore_mem>> -> memref<1x!tpu.dma_semaphore, #tpu.memory_space<semaphore_mem>>
    %67 = tpu.memref_squeeze %66 : memref<1x!tpu.dma_semaphore, #tpu.memory_space<semaphore_mem>> -> memref<!tpu.dma_semaphore, #tpu.memory_space<semaphore_mem>>
    tpu.wait_dma2 semaphore(%67 : memref<!tpu.dma_semaphore, #tpu.memory_space<semaphore_mem>>) src(%64 : memref<1x128xf32, #tpu.memory_space<any>>) dst(%65 : memref<1x128xf32, #tpu.memory_space<vmem>>)
    %c1_i32_43 = arith.constant 1 : i32
    %c0_i32_44 = arith.constant 0 : i32
    %68 = tpu.memref_slice %arg2[%11, %c0_i32_44] : memref<128x128xf32, #tpu.memory_space<any>> -> memref<1x128xf32, #tpu.memory_space<any>>
    %c1_i32_45 = arith.constant 1 : i32
    %c0_i32_46 = arith.constant 0 : i32
    %69 = tpu.memref_slice %arg4[%c1_i32_45, %c0_i32_46] : memref<8x128xf32, #tpu.memory_space<vmem>> -> memref<1x128xf32, #tpu.memory_space<vmem>>
    %70 = tpu.memref_slice %arg5[%c1_i32_43] : memref<8x!tpu.dma_semaphore, #tpu.memory_space<semaphore_mem>> -> memref<1x!tpu.dma_semaphore, #tpu.memory_space<semaphore_mem>>
    %71 = tpu.memref_squeeze %70 : memref<1x!tpu.dma_semaphore, #tpu.memory_space<semaphore_mem>> -> memref<!tpu.dma_semaphore, #tpu.memory_space<semaphore_mem>>
    tpu.wait_dma2 semaphore(%71 : memref<!tpu.dma_semaphore, #tpu.memory_space<semaphore_mem>>) src(%68 : memref<1x128xf32, #tpu.memory_space<any>>) dst(%69 : memref<1x128xf32, #tpu.memory_space<vmem>>)
    %c2_i32_47 = arith.constant 2 : i32
    %c0_i32_48 = arith.constant 0 : i32
    %72 = tpu.memref_slice %arg2[%19, %c0_i32_48] : memref<128x128xf32, #tpu.memory_space<any>> -> memref<1x128xf32, #tpu.memory_space<any>>
    %c2_i32_49 = arith.constant 2 : i32
    %c0_i32_50 = arith.constant 0 : i32
    %73 = tpu.memref_slice %arg4[%c2_i32_49, %c0_i32_50] : memref<8x128xf32, #tpu.memory_space<vmem>> -> memref<1x128xf32, #tpu.memory_space<vmem>>
    %74 = tpu.memref_slice %arg5[%c2_i32_47] : memref<8x!tpu.dma_semaphore, #tpu.memory_space<semaphore_mem>> -> memref<1x!tpu.dma_semaphore, #tpu.memory_space<semaphore_mem>>
    %75 = tpu.memref_squeeze %74 : memref<1x!tpu.dma_semaphore, #tpu.memory_space<semaphore_mem>> -> memref<!tpu.dma_semaphore, #tpu.memory_space<semaphore_mem>>
    tpu.wait_dma2 semaphore(%75 : memref<!tpu.dma_semaphore, #tpu.memory_space<semaphore_mem>>) src(%72 : memref<1x128xf32, #tpu.memory_space<any>>) dst(%73 : memref<1x128xf32, #tpu.memory_space<vmem>>)
    %c3_i32_51 = arith.constant 3 : i32
    %c0_i32_52 = arith.constant 0 : i32
    %76 = tpu.memref_slice %arg2[%27, %c0_i32_52] : memref<128x128xf32, #tpu.memory_space<any>> -> memref<1x128xf32, #tpu.memory_space<any>>
    %c3_i32_53 = arith.constant 3 : i32
    %c0_i32_54 = arith.constant 0 : i32
    %77 = tpu.memref_slice %arg4[%c3_i32_53, %c0_i32_54] : memref<8x128xf32, #tpu.memory_space<vmem>> -> memref<1x128xf32, #tpu.memory_space<vmem>>
    %78 = tpu.memref_slice %arg5[%c3_i32_51] : memref<8x!tpu.dma_semaphore, #tpu.memory_space<semaphore_mem>> -> memref<1x!tpu.dma_semaphore, #tpu.memory_space<semaphore_mem>>
    %79 = tpu.memref_squeeze %78 : memref<1x!tpu.dma_semaphore, #tpu.memory_space<semaphore_mem>> -> memref<!tpu.dma_semaphore, #tpu.memory_space<semaphore_mem>>
    tpu.wait_dma2 semaphore(%79 : memref<!tpu.dma_semaphore, #tpu.memory_space<semaphore_mem>>) src(%76 : memref<1x128xf32, #tpu.memory_space<any>>) dst(%77 : memref<1x128xf32, #tpu.memory_space<vmem>>)
    %c4_i32_55 = arith.constant 4 : i32
    %c0_i32_56 = arith.constant 0 : i32
    %80 = tpu.memref_slice %arg2[%35, %c0_i32_56] : memref<128x128xf32, #tpu.memory_space<any>> -> memref<1x128xf32, #tpu.memory_space<any>>
    %c4_i32_57 = arith.constant 4 : i32
    %c0_i32_58 = arith.constant 0 : i32
    %81 = tpu.memref_slice %arg4[%c4_i32_57, %c0_i32_58] : memref<8x128xf32, #tpu.memory_space<vmem>> -> memref<1x128xf32, #tpu.memory_space<vmem>>
    %82 = tpu.memref_slice %arg5[%c4_i32_55] : memref<8x!tpu.dma_semaphore, #tpu.memory_space<semaphore_mem>> -> memref<1x!tpu.dma_semaphore, #tpu.memory_space<semaphore_mem>>
    %83 = tpu.memref_squeeze %82 : memref<1x!tpu.dma_semaphore, #tpu.memory_space<semaphore_mem>> -> memref<!tpu.dma_semaphore, #tpu.memory_space<semaphore_mem>>
    tpu.wait_dma2 semaphore(%83 : memref<!tpu.dma_semaphore, #tpu.memory_space<semaphore_mem>>) src(%80 : memref<1x128xf32, #tpu.memory_space<any>>) dst(%81 : memref<1x128xf32, #tpu.memory_space<vmem>>)
    %c5_i32_59 = arith.constant 5 : i32
    %c0_i32_60 = arith.constant 0 : i32
    %84 = tpu.memref_slice %arg2[%43, %c0_i32_60] : memref<128x128xf32, #tpu.memory_space<any>> -> memref<1x128xf32, #tpu.memory_space<any>>
    %c5_i32_61 = arith.constant 5 : i32
    %c0_i32_62 = arith.constant 0 : i32
    %85 = tpu.memref_slice %arg4[%c5_i32_61, %c0_i32_62] : memref<8x128xf32, #tpu.memory_space<vmem>> -> memref<1x128xf32, #tpu.memory_space<vmem>>
    %86 = tpu.memref_slice %arg5[%c5_i32_59] : memref<8x!tpu.dma_semaphore, #tpu.memory_space<semaphore_mem>> -> memref<1x!tpu.dma_semaphore, #tpu.memory_space<semaphore_mem>>
    %87 = tpu.memref_squeeze %86 : memref<1x!tpu.dma_semaphore, #tpu.memory_space<semaphore_mem>> -> memref<!tpu.dma_semaphore, #tpu.memory_space<semaphore_mem>>
    tpu.wait_dma2 semaphore(%87 : memref<!tpu.dma_semaphore, #tpu.memory_space<semaphore_mem>>) src(%84 : memref<1x128xf32, #tpu.memory_space<any>>) dst(%85 : memref<1x128xf32, #tpu.memory_space<vmem>>)
    %c6_i32_63 = arith.constant 6 : i32
    %c0_i32_64 = arith.constant 0 : i32
    %88 = tpu.memref_slice %arg2[%51, %c0_i32_64] : memref<128x128xf32, #tpu.memory_space<any>> -> memref<1x128xf32, #tpu.memory_space<any>>
    %c6_i32_65 = arith.constant 6 : i32
    %c0_i32_66 = arith.constant 0 : i32
    %89 = tpu.memref_slice %arg4[%c6_i32_65, %c0_i32_66] : memref<8x128xf32, #tpu.memory_space<vmem>> -> memref<1x128xf32, #tpu.memory_space<vmem>>
    %90 = tpu.memref_slice %arg5[%c6_i32_63] : memref<8x!tpu.dma_semaphore, #tpu.memory_space<semaphore_mem>> -> memref<1x!tpu.dma_semaphore, #tpu.memory_space<semaphore_mem>>
    %91 = tpu.memref_squeeze %90 : memref<1x!tpu.dma_semaphore, #tpu.memory_space<semaphore_mem>> -> memref<!tpu.dma_semaphore, #tpu.memory_space<semaphore_mem>>
    tpu.wait_dma2 semaphore(%91 : memref<!tpu.dma_semaphore, #tpu.memory_space<semaphore_mem>>) src(%88 : memref<1x128xf32, #tpu.memory_space<any>>) dst(%89 : memref<1x128xf32, #tpu.memory_space<vmem>>)
    %c7_i32_67 = arith.constant 7 : i32
    %c0_i32_68 = arith.constant 0 : i32
    %92 = tpu.memref_slice %arg2[%59, %c0_i32_68] : memref<128x128xf32, #tpu.memory_space<any>> -> memref<1x128xf32, #tpu.memory_space<any>>
    %c7_i32_69 = arith.constant 7 : i32
    %c0_i32_70 = arith.constant 0 : i32
    %93 = tpu.memref_slice %arg4[%c7_i32_69, %c0_i32_70] : memref<8x128xf32, #tpu.memory_space<vmem>> -> memref<1x128xf32, #tpu.memory_space<vmem>>
    %94 = tpu.memref_slice %arg5[%c7_i32_67] : memref<8x!tpu.dma_semaphore, #tpu.memory_space<semaphore_mem>> -> memref<1x!tpu.dma_semaphore, #tpu.memory_space<semaphore_mem>>
    %95 = tpu.memref_squeeze %94 : memref<1x!tpu.dma_semaphore, #tpu.memory_space<semaphore_mem>> -> memref<!tpu.dma_semaphore, #tpu.memory_space<semaphore_mem>>
    tpu.wait_dma2 semaphore(%95 : memref<!tpu.dma_semaphore, #tpu.memory_space<semaphore_mem>>) src(%92 : memref<1x128xf32, #tpu.memory_space<any>>) dst(%93 : memref<1x128xf32, #tpu.memory_space<vmem>>)
    %c0 = arith.constant 0 : index
    %c0_71 = arith.constant 0 : index
    %96 = vector.load %arg4[%c0, %c0_71] : memref<8x128xf32, #tpu.memory_space<vmem>>, vector<8x128xf32>
    %c0_72 = arith.constant 0 : index
    %c0_73 = arith.constant 0 : index
    %c0_74 = arith.constant 0 : index
    %97 = vector.load %arg3[%c0_72, %c0_73, %c0_74] : memref<1x8x128xf32, #tpu.memory_space<vmem>>, vector<1x8x128xf32>
    %98 = vector.shape_cast %97 : vector<1x8x128xf32> to vector<8x128xf32>
    %99 = vector.shape_cast %96 : vector<8x128xf32> to vector<1x8x128xf32>
    tpu.vector_store %arg3[%c0_72, %c0_73, %c0_74], %99 {strides = array<i32>} : memref<1x8x128xf32, #tpu.memory_space<vmem>>, vector<1x8x128xf32>,
    return
  }
  func.func @transform_1(%arg0: i32, %arg1: memref<64xi32, #tpu.memory_space<smem>>) -> (i32, i32, i32) {
    %c0_i32 = arith.constant 0 : i32
    %c0_i32_0 = arith.constant 0 : i32
    %c0_i32_1 = arith.constant 0 : i32
    return %arg0, %c0_i32, %c0_i32_0 : i32, i32, i32
  }
}

module attributes {stable_mosaic.version = 11 : i64} {
  func.func @_linear_kernel(%arg0: i32, %arg1: memref<64x128xf32, #tpu.memory_space<vmem>>, %arg2: memref<128x512xbf16, #tpu.memory_space<vmem>>, %arg3: memref<1x512xf32, #tpu.memory_space<vmem>>, %arg4: memref<64x512xf32, #tpu.memory_space<vmem>>) attributes {dimension_semantics = [#tpu.dimension_semantics<parallel>], iteration_bounds = array<i64: 1>, scalar_prefetch = 0 : i64, scratch_operands = 0 : i64, tpu.core_type = #tpu.core_type<tc>, window_params = [{transform_indices = @transform_0, window_bounds = array<i64: 64, 128>}, {pipeline_mode = #tpu.pipeline_mode<synchronous>, transform_indices = @transform_1, window_bounds = array<i64: 128, 512>}, {pipeline_mode = #tpu.pipeline_mode<synchronous>, transform_indices = @transform_2, window_bounds = array<i64: 1, 512>}, {transform_indices = @transform_3, window_bounds = array<i64: 64, 512>}]} {
    %c0 = arith.constant 0 : index
    %c0_0 = arith.constant 0 : index
    %0 = vector.load %arg1[%c0, %c0_0] : memref<64x128xf32, #tpu.memory_space<vmem>>, vector<64x128xf32>
    %1 = arith.truncf %0 : vector<64x128xf32> to vector<64x128xbf16>
    %c0_1 = arith.constant 0 : index
    %c0_2 = arith.constant 0 : index
    %2 = vector.load %arg2[%c0_1, %c0_2] : memref<128x512xbf16, #tpu.memory_space<vmem>>, vector<128x512xbf16>
    %cst = arith.constant dense<0.000000e+00> : vector<64x512xf32>
    %3 = tpu.matmul %1, %2, %cst {dimension_numbers = #tpu.dot_dimension_numbers<[1], [0], [0], [1], [0, 0, 1, 1], [], []>} : vector<64x128xbf16>, vector<128x512xbf16>, vector<64x512xf32> -> vector<64x512xf32>
    %c0_3 = arith.constant 0 : index
    %c0_4 = arith.constant 0 : index
    %4 = vector.load %arg3[%c0_3, %c0_4] : memref<1x512xf32, #tpu.memory_space<vmem>>, vector<1x512xf32>
    %5 = vector.broadcast %4 : vector<1x512xf32> to vector<64x512xf32>
    %6 = arith.addf %3, %5 : vector<64x512xf32>
    %c0_5 = arith.constant 0 : index
    %c0_6 = arith.constant 0 : index
    %7 = vector.load %arg4[%c0_5, %c0_6] : memref<64x512xf32, #tpu.memory_space<vmem>>, vector<64x512xf32>
    tpu.vector_store %arg4[%c0_5, %c0_6], %6 {strides = array<i32>} : memref<64x512xf32, #tpu.memory_space<vmem>>, vector<64x512xf32>,
    return
  }
  func.func @transform_0(%arg0: i32) -> (i32, i32) {
    %c0_i32 = arith.constant 0 : i32
    %c0_i32_0 = arith.constant 0 : i32
    return %arg0, %c0_i32 : i32, i32
  }
  func.func @transform_1(%arg0: i32) -> (i32, i32) {
    %c0_i32 = arith.constant 0 : i32
    %c0_i32_0 = arith.constant 0 : i32
    %c0_i32_1 = arith.constant 0 : i32
    return %c0_i32, %c0_i32_0 : i32, i32
  }
  func.func @transform_2(%arg0: i32) -> (i32, i32) {
    %c0_i32 = arith.constant 0 : i32
    %c0_i32_0 = arith.constant 0 : i32
    %c0_i32_1 = arith.constant 0 : i32
    return %c0_i32, %c0_i32_0 : i32, i32
  }
  func.func @transform_3(%arg0: i32) -> (i32, i32) {
    %c0_i32 = arith.constant 0 : i32
    %c0_i32_0 = arith.constant 0 : i32
    return %arg0, %c0_i32 : i32, i32
  }
}

module attributes {stable_mosaic.version = 11 : i64} {
  func.func @_linear_kernel(%arg0: i32, %arg1: memref<64x128xf32, #tpu.memory_space<vmem>>, %arg2: memref<128x128xbf16, #tpu.memory_space<vmem>>, %arg3: memref<1x128xf32, #tpu.memory_space<vmem>>, %arg4: memref<64x128xf32, #tpu.memory_space<vmem>>) attributes {dimension_semantics = [#tpu.dimension_semantics<parallel>], iteration_bounds = array<i64: 1>, scalar_prefetch = 0 : i64, scratch_operands = 0 : i64, tpu.core_type = #tpu.core_type<tc>, window_params = [{transform_indices = @transform_0, window_bounds = array<i64: 64, 128>}, {pipeline_mode = #tpu.pipeline_mode<synchronous>, transform_indices = @transform_1, window_bounds = array<i64: 128, 128>}, {pipeline_mode = #tpu.pipeline_mode<synchronous>, transform_indices = @transform_2, window_bounds = array<i64: 1, 128>}, {transform_indices = @transform_3, window_bounds = array<i64: 64, 128>}]} {
    %c0 = arith.constant 0 : index
    %c0_0 = arith.constant 0 : index
    %0 = vector.load %arg1[%c0, %c0_0] : memref<64x128xf32, #tpu.memory_space<vmem>>, vector<64x128xf32>
    %1 = arith.truncf %0 : vector<64x128xf32> to vector<64x128xbf16>
    %c0_1 = arith.constant 0 : index
    %c0_2 = arith.constant 0 : index
    %2 = vector.load %arg2[%c0_1, %c0_2] : memref<128x128xbf16, #tpu.memory_space<vmem>>, vector<128x128xbf16>
    %cst = arith.constant dense<0.000000e+00> : vector<64x128xf32>
    %3 = tpu.matmul %1, %2, %cst {dimension_numbers = #tpu.dot_dimension_numbers<[1], [0], [0], [1], [0, 0, 1, 1], [], []>} : vector<64x128xbf16>, vector<128x128xbf16>, vector<64x128xf32> -> vector<64x128xf32>
    %c0_3 = arith.constant 0 : index
    %c0_4 = arith.constant 0 : index
    %4 = vector.load %arg3[%c0_3, %c0_4] : memref<1x128xf32, #tpu.memory_space<vmem>>, vector<1x128xf32>
    %5 = vector.broadcast %4 : vector<1x128xf32> to vector<64x128xf32>
    %6 = arith.addf %3, %5 : vector<64x128xf32>
    %c0_5 = arith.constant 0 : index
    %c0_6 = arith.constant 0 : index
    %7 = vector.load %arg4[%c0_5, %c0_6] : memref<64x128xf32, #tpu.memory_space<vmem>>, vector<64x128xf32>
    tpu.vector_store %arg4[%c0_5, %c0_6], %6 {strides = array<i32>} : memref<64x128xf32, #tpu.memory_space<vmem>>, vector<64x128xf32>,
    return
  }
  func.func @transform_0(%arg0: i32) -> (i32, i32) {
    %c0_i32 = arith.constant 0 : i32
    %c0_i32_0 = arith.constant 0 : i32
    return %arg0, %c0_i32 : i32, i32
  }
  func.func @transform_1(%arg0: i32) -> (i32, i32) {
    %c0_i32 = arith.constant 0 : i32
    %c0_i32_0 = arith.constant 0 : i32
    %c0_i32_1 = arith.constant 0 : i32
    return %c0_i32, %c0_i32_0 : i32, i32
  }
  func.func @transform_2(%arg0: i32) -> (i32, i32) {
    %c0_i32 = arith.constant 0 : i32
    %c0_i32_0 = arith.constant 0 : i32
    %c0_i32_1 = arith.constant 0 : i32
    return %c0_i32, %c0_i32_0 : i32, i32
  }
  func.func @transform_3(%arg0: i32) -> (i32, i32) {
    %c0_i32 = arith.constant 0 : i32
    %c0_i32_0 = arith.constant 0 : i32
    return %arg0, %c0_i32 : i32, i32
  }
}

module attributes {stable_mosaic.version = 11 : i64} {
  func.func @_attn_kernel(%arg0: i32, %arg1: i32, %arg2: memref<8xi32, #tpu.memory_space<smem>>, %arg3: memref<1x8x128xf32, #tpu.memory_space<vmem>>, %arg4: memref<1x16x128xf32, #tpu.memory_space<vmem>>, %arg5: memref<1x16x128xf32, #tpu.memory_space<vmem>>, %arg6: memref<1x128xf32, #tpu.memory_space<vmem>>, %arg7: memref<1x8x128xf32, #tpu.memory_space<vmem>>) attributes {dimension_semantics = [#tpu.dimension_semantics<parallel>, #tpu.dimension_semantics<parallel>], iteration_bounds = array<i64: 8, 1>, scalar_prefetch = 1 : i64, scratch_operands = 0 : i64, tpu.core_type = #tpu.core_type<tc>, window_params = [{transform_indices = @transform_0, window_bounds = array<i64: 1, 8, 128>}, {transform_indices = @transform_1, window_bounds = array<i64: 1, 16, 128>}, {transform_indices = @transform_2, window_bounds = array<i64: 1, 16, 128>}, {pipeline_mode = #tpu.pipeline_mode<synchronous>, transform_indices = @transform_3, window_bounds = array<i64: 1, 128>}, {transform_indices = @transform_4, window_bounds = array<i64: 1, 8, 128>}]} {
    %c0 = arith.constant 0 : index
    %c0_0 = arith.constant 0 : index
    %c0_1 = arith.constant 0 : index
    %0 = vector.load %arg3[%c0, %c0_0, %c0_1] : memref<1x8x128xf32, #tpu.memory_space<vmem>>, vector<1x8x128xf32>
    %1 = vector.shape_cast %0 : vector<1x8x128xf32> to vector<8x128xf32>
    %c0_2 = arith.constant 0 : index
    %c0_3 = arith.constant 0 : index
    %c0_4 = arith.constant 0 : index
    %2 = vector.load %arg4[%c0_2, %c0_3, %c0_4] : memref<1x16x128xf32, #tpu.memory_space<vmem>>, vector<1x16x128xf32>
    %3 = vector.shape_cast %2 : vector<1x16x128xf32> to vector<16x128xf32>
    %c0_5 = arith.constant 0 : index
    %c0_6 = arith.constant 0 : index
    %4 = vector.load %arg6[%c0_5, %c0_6] : memref<1x128xf32, #tpu.memory_space<vmem>>, vector<1x128xf32>
    %5 = vector.shape_cast %1 : vector<8x128xf32> to vector<8x1x128xf32>
    %6 = vector.shape_cast %3 : vector<16x128xf32> to vector<1x16x128xf32>
    %7 = vector.broadcast %5 : vector<8x1x128xf32> to vector<8x16x128xf32>
    %8 = vector.broadcast %6 : vector<1x16x128xf32> to vector<8x16x128xf32>
    %9 = arith.addf %7, %8 : vector<8x16x128xf32>
    %10 = math.tanh %9 : vector<8x16x128xf32>
    %11 = vector.shape_cast %4 : vector<1x128xf32> to vector<1x1x128xf32>
    %12 = vector.broadcast %11 : vector<1x1x128xf32> to vector<8x16x128xf32>
    %13 = arith.mulf %10, %12 : vector<8x16x128xf32>
    %cst = arith.constant dense<0.000000e+00> : vector<8x16xf32>
    %14 = vector.multi_reduction <add>, %13, %cst [2] : vector<8x16x128xf32> to vector<8x16xf32>
    %15 = arith.index_cast %arg0 : i32 to index
    %16 = memref.load %arg2[%15] : memref<8xi32, #tpu.memory_space<smem>>
    %17 = tpu.iota {dimensions = array<i32: 1>} : vector<8x16xi32>
    %18 = vector.broadcast %16 : i32 to vector<8x16xi32>
    %19 = arith.cmpi sge, %17, %18 : vector<8x16xi32>
    %cst_7 = arith.constant -6.550400e+04 : f32
    %20 = vector.broadcast %cst_7 : f32 to vector<8x16xf32>
    %21 = arith.select %19, %20, %14 : vector<8x16xi1>, vector<8x16xf32>
    %cst_8 = arith.constant dense<0xFF800000> : vector<8xf32>
    %22 = vector.multi_reduction <maximumf>, %21, %cst_8 [1] : vector<8x16xf32> to vector<8xf32>
    %23 = vector.shape_cast %22 : vector<8xf32> to vector<8x1xf32>
    %24 = vector.broadcast %23 : vector<8x1xf32> to vector<8x16xf32>
    %25 = arith.subf %21, %24 : vector<8x16xf32>
    %26 = math.exp %25 : vector<8x16xf32>
    %cst_9 = arith.constant dense<0.000000e+00> : vector<8xf32>
    %27 = vector.multi_reduction <add>, %26, %cst_9 [1] : vector<8x16xf32> to vector<8xf32>
    %28 = vector.shape_cast %27 : vector<8xf32> to vector<8x1xf32>
    %29 = tpu.reciprocal %28 {approx = true} : vector<8x1xf32> -> vector<8x1xf32>
    %30 = vector.broadcast %29 : vector<8x1xf32> to vector<8x16xf32>
    %31 = arith.mulf %26, %30 : vector<8x16xf32>
    %32 = arith.truncf %31 : vector<8x16xf32> to vector<8x16xbf16>
    %c0_10 = arith.constant 0 : index
    %c0_11 = arith.constant 0 : index
    %c0_12 = arith.constant 0 : index
    %33 = vector.load %arg5[%c0_10, %c0_11, %c0_12] : memref<1x16x128xf32, #tpu.memory_space<vmem>>, vector<1x16x128xf32>
    %34 = vector.shape_cast %33 : vector<1x16x128xf32> to vector<16x128xf32>
    %35 = arith.truncf %34 : vector<16x128xf32> to vector<16x128xbf16>
    %cst_13 = arith.constant dense<0.000000e+00> : vector<8x128xf32>
    %36 = tpu.matmul %32, %35, %cst_13 {dimension_numbers = #tpu.dot_dimension_numbers<[1], [0], [0], [1], [0, 0, 1, 1], [], []>} : vector<8x16xbf16>, vector<16x128xbf16>, vector<8x128xf32> -> vector<8x128xf32>
    %37 = vector.shape_cast %36 : vector<8x128xf32> to vector<1x8x128xf32>
    %c0_14 = arith.constant 0 : index
    %c0_15 = arith.constant 0 : index
    %c0_16 = arith.constant 0 : index
    %38 = vector.load %arg7[%c0_14, %c0_15, %c0_16] : memref<1x8x128xf32, #tpu.memory_space<vmem>>, vector<1x8x128xf32>
    tpu.vector_store %arg7[%c0_14, %c0_15, %c0_16], %37 {strides = array<i32>} : memref<1x8x128xf32, #tpu.memory_space<vmem>>, vector<1x8x128xf32>,
    return
  }
  func.func @transform_0(%arg0: i32, %arg1: i32, %arg2: memref<8xi32, #tpu.memory_space<smem>>) -> (i32, i32, i32) {
    %c0_i32 = arith.constant 0 : i32
    %c0_i32_0 = arith.constant 0 : i32
    return %arg0, %arg1, %c0_i32 : i32, i32, i32
  }
  func.func @transform_1(%arg0: i32, %arg1: i32, %arg2: memref<8xi32, #tpu.memory_space<smem>>) -> (i32, i32, i32) {
    %c0_i32 = arith.constant 0 : i32
    %c0_i32_0 = arith.constant 0 : i32
    %c0_i32_1 = arith.constant 0 : i32
    return %arg0, %c0_i32, %c0_i32_0 : i32, i32, i32
  }
  func.func @transform_2(%arg0: i32, %arg1: i32, %arg2: memref<8xi32, #tpu.memory_space<smem>>) -> (i32, i32, i32) {
    %c0_i32 = arith.constant 0 : i32
    %c0_i32_0 = arith.constant 0 : i32
    %c0_i32_1 = arith.constant 0 : i32
    return %arg0, %c0_i32, %c0_i32_0 : i32, i32, i32
  }
  func.func @transform_3(%arg0: i32, %arg1: i32, %arg2: memref<8xi32, #tpu.memory_space<smem>>) -> (i32, i32) {
    %c0_i32 = arith.constant 0 : i32
    %c0_i32_0 = arith.constant 0 : i32
    %c0_i32_1 = arith.constant 0 : i32
    return %c0_i32, %c0_i32_0 : i32, i32
  }
  func.func @transform_4(%arg0: i32, %arg1: i32, %arg2: memref<8xi32, #tpu.memory_space<smem>>) -> (i32, i32, i32) {
    %c0_i32 = arith.constant 0 : i32
    %c0_i32_0 = arith.constant 0 : i32
    return %arg0, %arg1, %c0_i32 : i32, i32, i32
  }
}

module attributes {stable_mosaic.version = 11 : i64} {
  func.func @_lstm_rec_kernel(%arg0: i32, %arg1: i32, %arg2: memref<4x8x512xf32, #tpu.memory_space<vmem>>, %arg3: memref<128x512xbf16, #tpu.memory_space<vmem>>, %arg4: memref<4x8x128xf32, #tpu.memory_space<vmem>>, %arg5: memref<8x128xf32, #tpu.memory_space<vmem>>, %arg6: memref<8x128xf32, #tpu.memory_space<vmem>>) attributes {dimension_semantics = [#tpu.dimension_semantics<parallel>, #tpu.dimension_semantics<arbitrary>], iteration_bounds = array<i64: 1, 2>, scalar_prefetch = 0 : i64, scratch_operands = 2 : i64, tpu.core_type = #tpu.core_type<tc>, window_params = [{transform_indices = @transform_0, window_bounds = array<i64: 4, 8, 512>}, {pipeline_mode = #tpu.pipeline_mode<synchronous>, transform_indices = @transform_1, window_bounds = array<i64: 128, 512>}, {transform_indices = @transform_2, window_bounds = array<i64: 4, 8, 128>}]} {
    %c0_i32 = arith.constant 0 : i32
    %0 = arith.cmpi eq, %arg1, %c0_i32 : i32
    %1 = arith.extui %0 : i1 to i32
    %c0_i32_0 = arith.constant 0 : i32
    %2 = arith.cmpi ne, %1, %c0_i32_0 : i32
    scf.if %2 {
      %cst_42 = arith.constant 0.000000e+00 : f32
      %148 = vector.broadcast %cst_42 : f32 to vector<8x128xf32>
      %c0_43 = arith.constant 0 : index
      %c0_44 = arith.constant 0 : index
      %149 = vector.load %arg5[%c0_43, %c0_44] : memref<8x128xf32, #tpu.memory_space<vmem>>, vector<8x128xf32>
      tpu.vector_store %arg5[%c0_43, %c0_44], %148 {strides = array<i32>} : memref<8x128xf32, #tpu.memory_space<vmem>>, vector<8x128xf32>,
      %cst_45 = arith.constant 0.000000e+00 : f32
      %150 = vector.broadcast %cst_45 : f32 to vector<8x128xf32>
      %c0_46 = arith.constant 0 : index
      %c0_47 = arith.constant 0 : index
      %151 = vector.load %arg6[%c0_46, %c0_47] : memref<8x128xf32, #tpu.memory_space<vmem>>, vector<8x128xf32>
      tpu.vector_store %arg6[%c0_46, %c0_47], %150 {strides = array<i32>} : memref<8x128xf32, #tpu.memory_space<vmem>>, vector<8x128xf32>,
    } else {
    }
    %c0 = arith.constant 0 : index
    %c0_1 = arith.constant 0 : index
    %3 = vector.load %arg3[%c0, %c0_1] : memref<128x512xbf16, #tpu.memory_space<vmem>>, vector<128x512xbf16>
    %c0_2 = arith.constant 0 : index
    %c0_3 = arith.constant 0 : index
    %4 = vector.load %arg5[%c0_2, %c0_3] : memref<8x128xf32, #tpu.memory_space<vmem>>, vector<8x128xf32>
    %c0_4 = arith.constant 0 : index
    %c0_5 = arith.constant 0 : index
    %5 = vector.load %arg6[%c0_4, %c0_5] : memref<8x128xf32, #tpu.memory_space<vmem>>, vector<8x128xf32>
    %c0_i32_6 = arith.constant 0 : i32
    %6 = arith.index_cast %c0_i32_6 : i32 to index
    %c0_7 = arith.constant 0 : index
    %c0_8 = arith.constant 0 : index
    %7 = vector.load %arg2[%6, %c0_7, %c0_8] : memref<4x8x512xf32, #tpu.memory_space<vmem>>, vector<1x8x512xf32>
    %8 = vector.shape_cast %7 : vector<1x8x512xf32> to vector<8x512xf32>
    %9 = arith.truncf %4 : vector<8x128xf32> to vector<8x128xbf16>
    %cst = arith.constant dense<0.000000e+00> : vector<8x512xf32>
    %10 = tpu.matmul %9, %3, %cst {dimension_numbers = #tpu.dot_dimension_numbers<[1], [0], [0], [1], [0, 0, 1, 1], [], []>} : vector<8x128xbf16>, vector<128x512xbf16>, vector<8x512xf32> -> vector<8x512xf32>
    %11 = arith.addf %8, %10 : vector<8x512xf32>
    %12 = vector.extract_strided_slice %11 {offsets = [0, 0], sizes = [8, 128], strides = [1, 1]} : vector<8x512xf32> to vector<8x128xf32>
    %13 = arith.negf %12 : vector<8x128xf32>
    %14 = math.exp %13 : vector<8x128xf32>
    %cst_9 = arith.constant 1.000000e+00 : f32
    %15 = vector.broadcast %cst_9 : f32 to vector<8x128xf32>
    %16 = arith.addf %15, %14 : vector<8x128xf32>
    %17 = arith.divf %15, %16 : vector<8x128xf32>
    %18 = vector.extract_strided_slice %11 {offsets = [0, 128], sizes = [8, 128], strides = [1, 1]} : vector<8x512xf32> to vector<8x128xf32>
    %19 = arith.negf %18 : vector<8x128xf32>
    %20 = math.exp %19 : vector<8x128xf32>
    %cst_10 = arith.constant 1.000000e+00 : f32
    %21 = vector.broadcast %cst_10 : f32 to vector<8x128xf32>
    %22 = arith.addf %21, %20 : vector<8x128xf32>
    %23 = arith.divf %21, %22 : vector<8x128xf32>
    %24 = vector.extract_strided_slice %11 {offsets = [0, 256], sizes = [8, 128], strides = [1, 1]} : vector<8x512xf32> to vector<8x128xf32>
    %25 = math.tanh %24 : vector<8x128xf32>
    %26 = vector.extract_strided_slice %11 {offsets = [0, 384], sizes = [8, 128], strides = [1, 1]} : vector<8x512xf32> to vector<8x128xf32>
    %27 = arith.negf %26 : vector<8x128xf32>
    %28 = math.exp %27 : vector<8x128xf32>
    %cst_11 = arith.constant 1.000000e+00 : f32
    %29 = vector.broadcast %cst_11 : f32 to vector<8x128xf32>
    %30 = arith.addf %29, %28 : vector<8x128xf32>
    %31 = arith.divf %29, %30 : vector<8x128xf32>
    %32 = arith.mulf %23, %5 : vector<8x128xf32>
    %33 = arith.mulf %17, %25 : vector<8x128xf32>
    %34 = arith.addf %32, %33 : vector<8x128xf32>
    %35 = math.tanh %34 : vector<8x128xf32>
    %36 = arith.mulf %31, %35 : vector<8x128xf32>
    %37 = arith.index_cast %c0_i32_6 : i32 to index
    %c0_12 = arith.constant 0 : index
    %c0_13 = arith.constant 0 : index
    %38 = vector.load %arg4[%37, %c0_12, %c0_13] : memref<4x8x128xf32, #tpu.memory_space<vmem>>, vector<1x8x128xf32>
    %39 = vector.shape_cast %38 : vector<1x8x128xf32> to vector<8x128xf32>
    %40 = vector.shape_cast %36 : vector<8x128xf32> to vector<1x8x128xf32>
    tpu.vector_store %arg4[%37, %c0_12, %c0_13], %40 {strides = array<i32>} : memref<4x8x128xf32, #tpu.memory_space<vmem>>, vector<1x8x128xf32>,
    %c1_i32 = arith.constant 1 : i32
    %41 = arith.index_cast %c1_i32 : i32 to index
    %c0_14 = arith.constant 0 : index
    %c0_15 = arith.constant 0 : index
    %42 = vector.load %arg2[%41, %c0_14, %c0_15] : memref<4x8x512xf32, #tpu.memory_space<vmem>>, vector<1x8x512xf32>
    %43 = vector.shape_cast %42 : vector<1x8x512xf32> to vector<8x512xf32>
    %44 = arith.truncf %36 : vector<8x128xf32> to vector<8x128xbf16>
    %cst_16 = arith.constant dense<0.000000e+00> : vector<8x512xf32>
    %45 = tpu.matmul %44, %3, %cst_16 {dimension_numbers = #tpu.dot_dimension_numbers<[1], [0], [0], [1], [0, 0, 1, 1], [], []>} : vector<8x128xbf16>, vector<128x512xbf16>, vector<8x512xf32> -> vector<8x512xf32>
    %46 = arith.addf %43, %45 : vector<8x512xf32>
    %47 = vector.extract_strided_slice %46 {offsets = [0, 0], sizes = [8, 128], strides = [1, 1]} : vector<8x512xf32> to vector<8x128xf32>
    %48 = arith.negf %47 : vector<8x128xf32>
    %49 = math.exp %48 : vector<8x128xf32>
    %cst_17 = arith.constant 1.000000e+00 : f32
    %50 = vector.broadcast %cst_17 : f32 to vector<8x128xf32>
    %51 = arith.addf %50, %49 : vector<8x128xf32>
    %52 = arith.divf %50, %51 : vector<8x128xf32>
    %53 = vector.extract_strided_slice %46 {offsets = [0, 128], sizes = [8, 128], strides = [1, 1]} : vector<8x512xf32> to vector<8x128xf32>
    %54 = arith.negf %53 : vector<8x128xf32>
    %55 = math.exp %54 : vector<8x128xf32>
    %cst_18 = arith.constant 1.000000e+00 : f32
    %56 = vector.broadcast %cst_18 : f32 to vector<8x128xf32>
    %57 = arith.addf %56, %55 : vector<8x128xf32>
    %58 = arith.divf %56, %57 : vector<8x128xf32>
    %59 = vector.extract_strided_slice %46 {offsets = [0, 256], sizes = [8, 128], strides = [1, 1]} : vector<8x512xf32> to vector<8x128xf32>
    %60 = math.tanh %59 : vector<8x128xf32>
    %61 = vector.extract_strided_slice %46 {offsets = [0, 384], sizes = [8, 128], strides = [1, 1]} : vector<8x512xf32> to vector<8x128xf32>
    %62 = arith.negf %61 : vector<8x128xf32>
    %63 = math.exp %62 : vector<8x128xf32>
    %cst_19 = arith.constant 1.000000e+00 : f32
    %64 = vector.broadcast %cst_19 : f32 to vector<8x128xf32>
    %65 = arith.addf %64, %63 : vector<8x128xf32>
    %66 = arith.divf %64, %65 : vector<8x128xf32>
    %67 = arith.mulf %58, %34 : vector<8x128xf32>
    %68 = arith.mulf %52, %60 : vector<8x128xf32>
    %69 = arith.addf %67, %68 : vector<8x128xf32>
    %70 = math.tanh %69 : vector<8x128xf32>
    %71 = arith.mulf %66, %70 : vector<8x128xf32>
    %72 = arith.index_cast %c1_i32 : i32 to index
    %c0_20 = arith.constant 0 : index
    %c0_21 = arith.constant 0 : index
    %73 = vector.load %arg4[%72, %c0_20, %c0_21] : memref<4x8x128xf32, #tpu.memory_space<vmem>>, vector<1x8x128xf32>
    %74 = vector.shape_cast %73 : vector<1x8x128xf32> to vector<8x128xf32>
    %75 = vector.shape_cast %71 : vector<8x128xf32> to vector<1x8x128xf32>
    tpu.vector_store %arg4[%72, %c0_20, %c0_21], %75 {strides = array<i32>} : memref<4x8x128xf32, #tpu.memory_space<vmem>>, vector<1x8x128xf32>,
    %c2_i32 = arith.constant 2 : i32
    %76 = arith.index_cast %c2_i32 : i32 to index
    %c0_22 = arith.constant 0 : index
    %c0_23 = arith.constant 0 : index
    %77 = vector.load %arg2[%76, %c0_22, %c0_23] : memref<4x8x512xf32, #tpu.memory_space<vmem>>, vector<1x8x512xf32>
    %78 = vector.shape_cast %77 : vector<1x8x512xf32> to vector<8x512xf32>
    %79 = arith.truncf %71 : vector<8x128xf32> to vector<8x128xbf16>
    %cst_24 = arith.constant dense<0.000000e+00> : vector<8x512xf32>
    %80 = tpu.matmul %79, %3, %cst_24 {dimension_numbers = #tpu.dot_dimension_numbers<[1], [0], [0], [1], [0, 0, 1, 1], [], []>} : vector<8x128xbf16>, vector<128x512xbf16>, vector<8x512xf32> -> vector<8x512xf32>
    %81 = arith.addf %78, %80 : vector<8x512xf32>
    %82 = vector.extract_strided_slice %81 {offsets = [0, 0], sizes = [8, 128], strides = [1, 1]} : vector<8x512xf32> to vector<8x128xf32>
    %83 = arith.negf %82 : vector<8x128xf32>
    %84 = math.exp %83 : vector<8x128xf32>
    %cst_25 = arith.constant 1.000000e+00 : f32
    %85 = vector.broadcast %cst_25 : f32 to vector<8x128xf32>
    %86 = arith.addf %85, %84 : vector<8x128xf32>
    %87 = arith.divf %85, %86 : vector<8x128xf32>
    %88 = vector.extract_strided_slice %81 {offsets = [0, 128], sizes = [8, 128], strides = [1, 1]} : vector<8x512xf32> to vector<8x128xf32>
    %89 = arith.negf %88 : vector<8x128xf32>
    %90 = math.exp %89 : vector<8x128xf32>
    %cst_26 = arith.constant 1.000000e+00 : f32
    %91 = vector.broadcast %cst_26 : f32 to vector<8x128xf32>
    %92 = arith.addf %91, %90 : vector<8x128xf32>
    %93 = arith.divf %91, %92 : vector<8x128xf32>
    %94 = vector.extract_strided_slice %81 {offsets = [0, 256], sizes = [8, 128], strides = [1, 1]} : vector<8x512xf32> to vector<8x128xf32>
    %95 = math.tanh %94 : vector<8x128xf32>
    %96 = vector.extract_strided_slice %81 {offsets = [0, 384], sizes = [8, 128], strides = [1, 1]} : vector<8x512xf32> to vector<8x128xf32>
    %97 = arith.negf %96 : vector<8x128xf32>
    %98 = math.exp %97 : vector<8x128xf32>
    %cst_27 = arith.constant 1.000000e+00 : f32
    %99 = vector.broadcast %cst_27 : f32 to vector<8x128xf32>
    %100 = arith.addf %99, %98 : vector<8x128xf32>
    %101 = arith.divf %99, %100 : vector<8x128xf32>
    %102 = arith.mulf %93, %69 : vector<8x128xf32>
    %103 = arith.mulf %87, %95 : vector<8x128xf32>
    %104 = arith.addf %102, %103 : vector<8x128xf32>
    %105 = math.tanh %104 : vector<8x128xf32>
    %106 = arith.mulf %101, %105 : vector<8x128xf32>
    %107 = arith.index_cast %c2_i32 : i32 to index
    %c0_28 = arith.constant 0 : index
    %c0_29 = arith.constant 0 : index
    %108 = vector.load %arg4[%107, %c0_28, %c0_29] : memref<4x8x128xf32, #tpu.memory_space<vmem>>, vector<1x8x128xf32>
    %109 = vector.shape_cast %108 : vector<1x8x128xf32> to vector<8x128xf32>
    %110 = vector.shape_cast %106 : vector<8x128xf32> to vector<1x8x128xf32>
    tpu.vector_store %arg4[%107, %c0_28, %c0_29], %110 {strides = array<i32>} : memref<4x8x128xf32, #tpu.memory_space<vmem>>, vector<1x8x128xf32>,
    %c3_i32 = arith.constant 3 : i32
    %111 = arith.index_cast %c3_i32 : i32 to index
    %c0_30 = arith.constant 0 : index
    %c0_31 = arith.constant 0 : index
    %112 = vector.load %arg2[%111, %c0_30, %c0_31] : memref<4x8x512xf32, #tpu.memory_space<vmem>>, vector<1x8x512xf32>
    %113 = vector.shape_cast %112 : vector<1x8x512xf32> to vector<8x512xf32>
    %114 = arith.truncf %106 : vector<8x128xf32> to vector<8x128xbf16>
    %cst_32 = arith.constant dense<0.000000e+00> : vector<8x512xf32>
    %115 = tpu.matmul %114, %3, %cst_32 {dimension_numbers = #tpu.dot_dimension_numbers<[1], [0], [0], [1], [0, 0, 1, 1], [], []>} : vector<8x128xbf16>, vector<128x512xbf16>, vector<8x512xf32> -> vector<8x512xf32>
    %116 = arith.addf %113, %115 : vector<8x512xf32>
    %117 = vector.extract_strided_slice %116 {offsets = [0, 0], sizes = [8, 128], strides = [1, 1]} : vector<8x512xf32> to vector<8x128xf32>
    %118 = arith.negf %117 : vector<8x128xf32>
    %119 = math.exp %118 : vector<8x128xf32>
    %cst_33 = arith.constant 1.000000e+00 : f32
    %120 = vector.broadcast %cst_33 : f32 to vector<8x128xf32>
    %121 = arith.addf %120, %119 : vector<8x128xf32>
    %122 = arith.divf %120, %121 : vector<8x128xf32>
    %123 = vector.extract_strided_slice %116 {offsets = [0, 128], sizes = [8, 128], strides = [1, 1]} : vector<8x512xf32> to vector<8x128xf32>
    %124 = arith.negf %123 : vector<8x128xf32>
    %125 = math.exp %124 : vector<8x128xf32>
    %cst_34 = arith.constant 1.000000e+00 : f32
    %126 = vector.broadcast %cst_34 : f32 to vector<8x128xf32>
    %127 = arith.addf %126, %125 : vector<8x128xf32>
    %128 = arith.divf %126, %127 : vector<8x128xf32>
    %129 = vector.extract_strided_slice %116 {offsets = [0, 256], sizes = [8, 128], strides = [1, 1]} : vector<8x512xf32> to vector<8x128xf32>
    %130 = math.tanh %129 : vector<8x128xf32>
    %131 = vector.extract_strided_slice %116 {offsets = [0, 384], sizes = [8, 128], strides = [1, 1]} : vector<8x512xf32> to vector<8x128xf32>
    %132 = arith.negf %131 : vector<8x128xf32>
    %133 = math.exp %132 : vector<8x128xf32>
    %cst_35 = arith.constant 1.000000e+00 : f32
    %134 = vector.broadcast %cst_35 : f32 to vector<8x128xf32>
    %135 = arith.addf %134, %133 : vector<8x128xf32>
    %136 = arith.divf %134, %135 : vector<8x128xf32>
    %137 = arith.mulf %128, %104 : vector<8x128xf32>
    %138 = arith.mulf %122, %130 : vector<8x128xf32>
    %139 = arith.addf %137, %138 : vector<8x128xf32>
    %140 = math.tanh %139 : vector<8x128xf32>
    %141 = arith.mulf %136, %140 : vector<8x128xf32>
    %142 = arith.index_cast %c3_i32 : i32 to index
    %c0_36 = arith.constant 0 : index
    %c0_37 = arith.constant 0 : index
    %143 = vector.load %arg4[%142, %c0_36, %c0_37] : memref<4x8x128xf32, #tpu.memory_space<vmem>>, vector<1x8x128xf32>
    %144 = vector.shape_cast %143 : vector<1x8x128xf32> to vector<8x128xf32>
    %145 = vector.shape_cast %141 : vector<8x128xf32> to vector<1x8x128xf32>
    tpu.vector_store %arg4[%142, %c0_36, %c0_37], %145 {strides = array<i32>} : memref<4x8x128xf32, #tpu.memory_space<vmem>>, vector<1x8x128xf32>,
    %c4_i32 = arith.constant 4 : i32
    %c0_38 = arith.constant 0 : index
    %c0_39 = arith.constant 0 : index
    %146 = vector.load %arg5[%c0_38, %c0_39] : memref<8x128xf32, #tpu.memory_space<vmem>>, vector<8x128xf32>
    tpu.vector_store %arg5[%c0_38, %c0_39], %141 {strides = array<i32>} : memref<8x128xf32, #tpu.memory_space<vmem>>, vector<8x128xf32>,
    %c0_40 = arith.constant 0 : index
    %c0_41 = arith.constant 0 : index
    %147 = vector.load %arg6[%c0_40, %c0_41] : memref<8x128xf32, #tpu.memory_space<vmem>>, vector<8x128xf32>
    tpu.vector_store %arg6[%c0_40, %c0_41], %139 {strides = array<i32>} : memref<8x128xf32, #tpu.memory_space<vmem>>, vector<8x128xf32>,
    return
  }
  func.func @transform_0(%arg0: i32, %arg1: i32) -> (i32, i32, i32) {
    %c0_i32 = arith.constant 0 : i32
    %c0_i32_0 = arith.constant 0 : i32
    return %arg1, %arg0, %c0_i32 : i32, i32, i32
  }
  func.func @transform_1(%arg0: i32, %arg1: i32) -> (i32, i32) {
    %c0_i32 = arith.constant 0 : i32
    %c0_i32_0 = arith.constant 0 : i32
    %c0_i32_1 = arith.constant 0 : i32
    return %c0_i32, %c0_i32_0 : i32, i32
  }
  func.func @transform_2(%arg0: i32, %arg1: i32) -> (i32, i32, i32) {
    %c0_i32 = arith.constant 0 : i32
    %c0_i32_0 = arith.constant 0 : i32
    return %arg1, %arg0, %c0_i32 : i32, i32, i32
  }
}

</mosaic_0001>

<bundles_post_ra>
// kernel: stage2_forward.18
= control target key start
LH: loop header
LB: loop body
LE: loop exit
PB: predicated region body
PF: predicated region fallthrough
CT: control target
= control target key end

     0   :  { %s451_s1 = inlined_call_operand.vmem [shape: bf16[128,128], index: 1, kind: input, shape index: {}]   ;;  %s452_s0 = inlined_call_operand.vmem [shape: f32[128,128], index: 0, kind: input, shape index: {}]   ;;  %s453_s2 = inlined_call_operand.vmem [shape: f32[1,128], index: 2, kind: input, shape index: {}]   ;;  %s454_s3 = inlined_call_operand.vmem [shape: f32[128,128], index: 3, kind: output, shape index: {}]  }
   0x1   :  { %v300_v0 = vld [vmem:[%s451_s1 + $0x38] sm:$0xff]   ;;  %v301_v1 = vld [vmem:[%s451_s1 + $0x30] sm:$0xff]   ;;  %v302_v2 = vld [vmem:[%s451_s1 + $0x28] sm:$0xff]  }
   0x2   :  { %252 = vmatprep.subr.bf16.mxu0 %v300_v0  ;;  %284 = vmatprep.subr.bf16.mxu1 %v300_v0  ;;  %v303_v3 = vld [vmem:[%s451_s1 + $0x20] sm:$0xff]   ;;  %v16_v5 = vld [vmem:[%s452_s0 + $0x8] sm:$0xff]  ;;  %v304_v10 = vld [vmem:[%s451_s1 + $0x18] sm:$0xff]  }
   0x3   :  { %253 = vmatpush3.bf16.msra.mxu0 %v300_v0  ;;  %292 = vmatpush3.bf16.msra.mxu1 %v300_v0  ;;  %v15_v4 = vld [vmem:[%s452_s0] sm:$0xff]  ;;  %v24_v8 = vld [vmem:[%s452_s0 + $0x48] sm:$0xff]  ;;  %v305_v11 = vld [vmem:[%s451_s1 + $0x10] sm:$0xff]  }
   0x4   :  { %254 = vmatprep.subr.bf16.mxu0 %v301_v1  ;;  %285 = vmatprep.subr.bf16.mxu1 %v301_v1  ;;  %v23_v6 = vld [vmem:[%s452_s0 + $0x40] sm:$0xff]  ;;  %v31_v7 = vpack.c.bf16 %v16_v5, %v15_v4  ;;  %v306_v12 = vld [vmem:[%s451_s1 + $0x8] sm:$0xff]   ;;  %v17_v14 = vld [vmem:[%s452_s0 + $0x10] sm:$0xff] }
   0x5   :  { %v35_v9 = vpack.c.bf16 %v24_v8, %v23_v6  ;;  %v307_v13 = vld [vmem:[%s451_s1] sm:$0xff]   ;;  %v18_v15 = vld [vmem:[%s452_s0 + $0x18] sm:$0xff]  ;;  %v25_v16 = vld [vmem:[%s452_s0 + $0x50] sm:$0xff] }
   0x6   :  { %268 = vmatprep.mubr.bf16.mxu0 %v31_v7  ;;  %v26_v17 = vld [vmem:[%s452_s0 + $0x58] sm:$0xff]  ;;  %v19_v18 = vld [vmem:[%s452_s0 + $0x20] sm:$0xff]  ;;  %v20_v19 = vld [vmem:[%s452_s0 + $0x28] sm:$0xff]  ;;  %v32_v22 = vpack.c.bf16 %v18_v15, %v17_v14 }
   0x7   :  { %255 = vmatpush3.bf16.msra.mxu0 %v301_v1  ;;  %293 = vmatpush3.bf16.msra.mxu1 %v301_v1  ;;  %v27_v20 = vld [vmem:[%s452_s0 + $0x60] sm:$0xff]  ;;  %v28_v21 = vld [vmem:[%s452_s0 + $0x68] sm:$0xff]  ;;  %v36_v23 = vpack.c.bf16 %v26_v17, %v25_v16  ;;  %v33_v24 = vpack.c.bf16 %v20_v19, %v19_v18  ;;  %v21_v26 = vld [vmem:[%s452_s0 + $0x30] sm:$0xff] }
   0x8   :  { %256 = vmatprep.subr.bf16.mxu0 %v302_v2  ;;  %286 = vmatprep.subr.bf16.mxu1 %v302_v2  ;;  %v37_v25 = vpack.c.bf16 %v28_v21, %v27_v20  ;;  %v22_v27 = vld [vmem:[%s452_s0 + $0x38] sm:$0xff]  ;;  %v29_v28 = vld [vmem:[%s452_s0 + $0x70] sm:$0xff]  ;;  %v227_v32 = vld [vmem:[%s453_s2] ss:$0 sm:$0xff] }
   0x9   :  { %276 = vmatprep.mubr.bf16.mxu1 %v35_v9  ;;  %v30_v29 = vld [vmem:[%s452_s0 + $0x78] sm:$0xff]  ;;  %v34_v30 = vpack.c.bf16 %v22_v27, %v21_v26 }
   0xa   :  { %v38_v31 = vpack.c.bf16 %v30_v29, %v29_v28 }
   0xb   :  { %257 = vmatpush3.bf16.msra.mxu0 %v302_v2  ;;  %294 = vmatpush3.bf16.msra.mxu1 %v302_v2 }
   0xc   :  { %258 = vmatprep.subr.bf16.mxu0 %v303_v3  ;;  %287 = vmatprep.subr.bf16.mxu1 %v303_v3 }
   0xf   :  { %259 = vmatpush3.bf16.msra.mxu0 %v303_v3  ;;  %295 = vmatpush3.bf16.msra.mxu1 %v303_v3 }
  0x10   :  { %260 = vmatprep.subr.bf16.mxu0 %v304_v10  ;;  %288 = vmatprep.subr.bf16.mxu1 %v304_v10 }
  0x13   :  { %261 = vmatpush3.bf16.msra.mxu0 %v304_v10  ;;  %296 = vmatpush3.bf16.msra.mxu1 %v304_v10 }
  0x14   :  { %262 = vmatprep.subr.bf16.mxu0 %v305_v11  ;;  %289 = vmatprep.subr.bf16.mxu1 %v305_v11 }
  0x17   :  { %263 = vmatpush3.bf16.msra.mxu0 %v305_v11  ;;  %297 = vmatpush3.bf16.msra.mxu1 %v305_v11 }
  0x18   :  { %264 = vmatprep.subr.bf16.mxu0 %v306_v12  ;;  %290 = vmatprep.subr.bf16.mxu1 %v306_v12 }
  0x1b   :  { %265 = vmatpush3.bf16.msra.mxu0 %v306_v12  ;;  %298 = vmatpush3.bf16.msra.mxu1 %v306_v12 }
  0x1c   :  { %266 = vmatprep.subr.bf16.mxu0 %v307_v13  ;;  %291 = vmatprep.subr.bf16.mxu1 %v307_v13 }
  0x1f   :  { %267 = vmatpush3.bf16.msra.mxu0 %v307_v13  ;;  %299 = vmatpush3.bf16.msra.mxu1 %v307_v13 }
  0x22   :  { %269 = vmatmul.mubr.bf16.vlgmr.msra.gmra.mxu0 %v32_v22  ;;  %277 = vmatmul.mubr.bf16.vlgmr.msra.gmra.mxu1 %v36_v23 }
  0x23   :  { %272 = vmatprep.mubr.bf16.mxu0 %v33_v24  ;;  %280 = vmatprep.mubr.bf16.mxu1 %v37_v25 }
  0x2a   :  { %273 = vmatmul.mubr.bf16.gmra.mxu0 %v34_v30  ;;  %281 = vmatmul.mubr.bf16.gmra.mxu1 %v38_v31 }
  0xe2   :  { %v270_v33 = vpop.f32.mrf.mxu0  ;;  %v278_v34 = vpop.f32.mrf.mxu1 }
  0xe3   :  { %v153_v35 = vadd.f32 %v270_v33, %v227_v32  ;;  %v185_v36 = vadd.f32 %v278_v34, %v227_v32 }
  0xe4   :  { %v144_v37 = vpop.f32.mrf.mxu0  ;;  %v176_v38 = vpop.f32.mrf.mxu1 }
  0xe5   :  { %209 = vst [vmem:[%s454_s3 + $0x10] sm:$0xff] %v153_v35  ;;  %217 = vst [vmem:[%s454_s3 + $0x50] sm:$0xff] %v185_v36  ;;  %v145_v39 = vadd.f32 %v227_v32, %v144_v37  ;;  %v177_v40 = vadd.f32 %v227_v32, %v176_v38 }
  0xe6   :  { %v271_v41 = vpop.f32.mrf.mxu0  ;;  %v279_v42 = vpop.f32.mrf.mxu1 }
  0xe7   :  { %207 = vst [vmem:[%s454_s3] sm:$0xff] %v145_v39  ;;  %215 = vst [vmem:[%s454_s3 + $0x40] sm:$0xff] %v177_v40  ;;  %v156_v43 = vadd.f32 %v271_v41, %v227_v32  ;;  %v188_v44 = vadd.f32 %v279_v42, %v227_v32 }
  0xe8   :  { %v147_v45 = vpop.f32.mrf.mxu0  ;;  %v179_v46 = vpop.f32.mrf.mxu1 }
  0xe9   :  { %210 = vst [vmem:[%s454_s3 + $0x18] sm:$0xff] %v156_v43  ;;  %218 = vst [vmem:[%s454_s3 + $0x58] sm:$0xff] %v188_v44  ;;  %v148_v47 = vadd.f32 %v227_v32, %v147_v45  ;;  %v180_v48 = vadd.f32 %v227_v32, %v179_v46 }
  0xea   :  { %v274_v49 = vpop.f32.mrf.mxu0  ;;  %v282_v50 = vpop.f32.mrf.mxu1 }
  0xeb   :  { %208 = vst [vmem:[%s454_s3 + $0x8] sm:$0xff] %v148_v47  ;;  %216 = vst [vmem:[%s454_s3 + $0x48] sm:$0xff] %v180_v48  ;;  %v169_v51 = vadd.f32 %v274_v49, %v227_v32  ;;  %v201_v52 = vadd.f32 %v282_v50, %v227_v32 }
  0xec   :  { %v160_v53 = vpop.f32.mrf.mxu0  ;;  %v192_v54 = vpop.f32.mrf.mxu1 }
  0xed   :  { %213 = vst [vmem:[%s454_s3 + $0x30] sm:$0xff] %v169_v51  ;;  %221 = vst [vmem:[%s454_s3 + $0x70] sm:$0xff] %v201_v52  ;;  %v161_v55 = vadd.f32 %v227_v32, %v160_v53  ;;  %v193_v56 = vadd.f32 %v227_v32, %v192_v54 }
  0xee   :  { %v275_v57 = vpop.f32.mrf.mxu0  ;;  %v283_v58 = vpop.f32.mrf.mxu1 }
  0xef   :  { %211 = vst [vmem:[%s454_s3 + $0x20] sm:$0xff] %v161_v55  ;;  %219 = vst [vmem:[%s454_s3 + $0x60] sm:$0xff] %v193_v56  ;;  %v172_v59 = vadd.f32 %v275_v57, %v227_v32  ;;  %v204_v60 = vadd.f32 %v283_v58, %v227_v32 }
  0xf0   :  { %v163_v61 = vpop.f32.mrf.mxu0  ;;  %v195_v62 = vpop.f32.mrf.mxu1 }
  0xf1   :  { %214 = vst [vmem:[%s454_s3 + $0x38] sm:$0xff] %v172_v59  ;;  %222 = vst [vmem:[%s454_s3 + $0x78] sm:$0xff] %v204_v60  ;;  %v164_v63 = vadd.f32 %v227_v32, %v163_v61  ;;  %v196_v0 = vadd.f32 %v227_v32, %v195_v62 }
  0xf3   :  { %212 = vst [vmem:[%s454_s3 + $0x28] sm:$0xff] %v164_v63  ;;  %220 = vst [vmem:[%s454_s3 + $0x68] sm:$0xff] %v196_v0 }

// kernel: stage2_forward.11
= control target key start
LH: loop header
LB: loop body
LE: loop exit
PB: predicated region body
PF: predicated region fallthrough
CT: control target
= control target key end

     0   :  { %v628_v1 = vmov 0   ;;  %v73_v57 = vlaneseq  ;;  %s1076_s1 = inlined_call_operand.vmem [shape: bf16[128,512], index: 1, kind: input, shape index: {}]   ;;  %s1077_s0 = inlined_call_operand.vmem [shape: f32[128,128], index: 0, kind: input, shape index: {}]   ;;  %s1078_s2 = inlined_call_operand.vmem [shape: f32[1,512], index: 2, kind: input, shape index: {}]   ;;  %s1079_s3 = inlined_call_operand.vmem [shape: f32[128,512], index: 3, kind: output, shape index: {}]  }
   0x1   :  { %v580_v0 = vld [vmem:[%s1076_s1 + $0xe4] ss:$16 sps:$4 sm:$0xff]   ;;  %285 = vmatprep.mubr.bf16.mxu0 %v628_v1  ;;  %398 = vmatprep.mubr.bf16.mxu1 %v628_v1  ;;  %v582_v2 = vld [vmem:[%s1076_s1 + $0xec] ss:$16 sps:$4 sm:$0xff]   ;;  %v584_v3 = vld [vmem:[%s1076_s1 + $0xe0] ss:$16 sps:$4 sm:$0xff]  }
   0x2   :  { %253 = vmatprep.subr.bf16.mxu0 %v580_v0  ;;  %v585_v4 = vld [vmem:[%s1076_s1 + $0xe8] ss:$16 sps:$4 sm:$0xff]   ;;  %366 = vmatprep.subr.bf16.mxu1 %v582_v2  ;;  %v586_v5 = vld [vmem:[%s1076_s1 + $0xc4] ss:$16 sps:$4 sm:$0xff]   ;;  %v588_v6 = vld [vmem:[%s1076_s1 + $0xcc] ss:$16 sps:$4 sm:$0xff]  }
   0x3   :  { %254 = vmatpush1.bf16.msra.mxu0 %v584_v3  ;;  %367 = vmatpush1.bf16.msra.mxu1 %v585_v4  ;;  %v590_v7 = vld [vmem:[%s1076_s1 + $0xc0] ss:$16 sps:$4 sm:$0xff]   ;;  %v591_v8 = vld [vmem:[%s1076_s1 + $0xc8] ss:$16 sps:$4 sm:$0xff]   ;;  %v592_v9 = vld [vmem:[%s1076_s1 + $0xa4] ss:$16 sps:$4 sm:$0xff]  }
   0x4   :  { %255 = vmatprep.subr.bf16.mxu0 %v586_v5  ;;  %368 = vmatprep.subr.bf16.mxu1 %v588_v6  ;;  %v594_v10 = vld [vmem:[%s1076_s1 + $0xac] ss:$16 sps:$4 sm:$0xff]   ;;  %v596_v11 = vld [vmem:[%s1076_s1 + $0xa0] ss:$16 sps:$4 sm:$0xff]   ;;  %v597_v12 = vld [vmem:[%s1076_s1 + $0xa8] ss:$16 sps:$4 sm:$0xff]  }
   0x5   :  { %v598_v13 = vld [vmem:[%s1076_s1 + $0x84] ss:$16 sps:$4 sm:$0xff]   ;;  %v600_v14 = vld [vmem:[%s1076_s1 + $0x8c] ss:$16 sps:$4 sm:$0xff]   ;;  %v602_v15 = vld [vmem:[%s1076_s1 + $0x80] ss:$16 sps:$4 sm:$0xff]  }
   0x6   :  { %v603_v16 = vld [vmem:[%s1076_s1 + $0x88] ss:$16 sps:$4 sm:$0xff]   ;;  %v604_v17 = vld [vmem:[%s1076_s1 + $0x64] ss:$16 sps:$4 sm:$0xff]   ;;  %v606_v18 = vld [vmem:[%s1076_s1 + $0x6c] ss:$16 sps:$4 sm:$0xff]  }
   0x7   :  { %256 = vmatpush1.bf16.msra.mxu0 %v590_v7  ;;  %369 = vmatpush1.bf16.msra.mxu1 %v591_v8  ;;  %v608_v19 = vld [vmem:[%s1076_s1 + $0x60] ss:$16 sps:$4 sm:$0xff]   ;;  %v609_v20 = vld [vmem:[%s1076_s1 + $0x68] ss:$16 sps:$4 sm:$0xff]   ;;  %v610_v21 = vld [vmem:[%s1076_s1 + $0x44] ss:$16 sps:$4 sm:$0xff]  }
   0x8   :  { %257 = vmatprep.subr.bf16.mxu0 %v592_v9  ;;  %370 = vmatprep.subr.bf16.mxu1 %v594_v10  ;;  %v612_v22 = vld [vmem:[%s1076_s1 + $0x4c] ss:$16 sps:$4 sm:$0xff]   ;;  %v614_v23 = vld [vmem:[%s1076_s1 + $0x40] ss:$16 sps:$4 sm:$0xff]   ;;  %v615_v24 = vld [vmem:[%s1076_s1 + $0x48] ss:$16 sps:$4 sm:$0xff]  }
   0x9   :  { %v616_v25 = vld [vmem:[%s1076_s1 + $0x24] ss:$16 sps:$4 sm:$0xff]   ;;  %v618_v26 = vld [vmem:[%s1076_s1 + $0x2c] ss:$16 sps:$4 sm:$0xff]   ;;  %v620_v27 = vld [vmem:[%s1076_s1 + $0x20] ss:$16 sps:$4 sm:$0xff]  }
   0xa   :  { %v621_v28 = vld [vmem:[%s1076_s1 + $0x28] ss:$16 sps:$4 sm:$0xff]   ;;  %v622_v29 = vld [vmem:[%s1076_s1 + $0x4] ss:$16 sps:$4 sm:$0xff]   ;;  %v624_v30 = vld [vmem:[%s1076_s1 + $0xc] ss:$16 sps:$4 sm:$0xff]  }
   0xb   :  { %258 = vmatpush1.bf16.msra.mxu0 %v596_v11  ;;  %371 = vmatpush1.bf16.msra.mxu1 %v597_v12  ;;  %v626_v31 = vld [vmem:[%s1076_s1] ss:$16 sps:$4 sm:$0xff]   ;;  %v627_v32 = vld [vmem:[%s1076_s1 + $0x8] ss:$16 sps:$4 sm:$0xff]   ;;  %v74_v58 = vshrl.u32 %v73_v57, 7 }
   0xc   :  { %259 = vmatprep.subr.bf16.mxu0 %v598_v13  ;;  %372 = vmatprep.subr.bf16.mxu1 %v600_v14  ;;  %v15_v33 = vld [vmem:[%s1077_s0] sm:$0xff]  ;;  %v16_v34 = vld [vmem:[%s1077_s0 + $0x8] sm:$0xff]  ;;  %v17_v36 = vld [vmem:[%s1077_s0 + $0x10] sm:$0xff] }
   0xd   :  { %v31_v35 = vpack.c.bf16 %v16_v34, %v15_v33  ;;  %v18_v37 = vld [vmem:[%s1077_s0 + $0x18] sm:$0xff]  ;;  %v19_v39 = vld [vmem:[%s1077_s0 + $0x20] sm:$0xff]  ;;  %v20_v40 = vld [vmem:[%s1077_s0 + $0x28] sm:$0xff]  ;;  %v75_v59 = vsub.s32 0, %v74_v58  ;;  %v83_v60 = vsub.s32 2, %v74_v58  ;;  %v79_v62 = vsub.s32 1, %v74_v58 }
   0xe   :  { %v32_v38 = vpack.c.bf16 %v18_v37, %v17_v36  ;;  %v33_v41 = vpack.c.bf16 %v20_v40, %v19_v39  ;;  %v21_v42 = vld [vmem:[%s1077_s0 + $0x30] sm:$0xff]  ;;  %v22_v43 = vld [vmem:[%s1077_s0 + $0x38] sm:$0xff]  ;;  %v23_v45 = vld [vmem:[%s1077_s0 + $0x40] sm:$0xff]  ;;  %v87_v63 = vsub.s32 3, %v74_v58 }
   0xf   :  { %260 = vmatpush1.bf16.msra.mxu0 %v602_v15  ;;  %373 = vmatpush1.bf16.msra.mxu1 %v603_v16  ;;  %v34_v44 = vpack.c.bf16 %v22_v43, %v21_v42  ;;  %v24_v46 = vld [vmem:[%s1077_s0 + $0x48] sm:$0xff]  ;;  %v25_v48 = vld [vmem:[%s1077_s0 + $0x50] sm:$0xff]  ;;  %v26_v49 = vld [vmem:[%s1077_s0 + $0x58] sm:$0xff] }
  0x10   :  { %261 = vmatprep.subr.bf16.mxu0 %v604_v17  ;;  %374 = vmatprep.subr.bf16.mxu1 %v606_v18  ;;  %v35_v47 = vpack.c.bf16 %v24_v46, %v23_v45  ;;  %v36_v50 = vpack.c.bf16 %v26_v49, %v25_v48  ;;  %v27_v51 = vld [vmem:[%s1077_s0 + $0x60] sm:$0xff]  ;;  %v28_v52 = vld [vmem:[%s1077_s0 + $0x68] sm:$0xff]  ;;  %v29_v54 = vld [vmem:[%s1077_s0 + $0x70] sm:$0xff] }
  0x11   :  { %v37_v53 = vpack.c.bf16 %v28_v52, %v27_v51  ;;  %v30_v55 = vld [vmem:[%s1077_s0 + $0x78] sm:$0xff]  ;;  %v71_v61 = vld [vmem:[%s1078_s2] sm:$0xf] }
  0x12   :  { %v38_v56 = vpack.c.bf16 %v30_v55, %v29_v54  ;;  %v812_v0 = vrot.slane %v71_v61, %v75_v59  ;;  %v816_v2 = vrot.slane %v71_v61, %v79_v62  ;;  %v818_v3 = vrot.slane %v71_v61, %v87_v63 }
  0x13   :  { %262 = vmatpush1.bf16.msra.mxu0 %v608_v19  ;;  %375 = vmatpush1.bf16.msra.mxu1 %v609_v20 }
  0x14   :  { %263 = vmatprep.subr.bf16.mxu0 %v610_v21  ;;  %376 = vmatprep.subr.bf16.mxu1 %v612_v22 }
  0x17   :  { %264 = vmatpush1.bf16.msra.mxu0 %v614_v23  ;;  %377 = vmatpush1.bf16.msra.mxu1 %v615_v24 }
  0x18   :  { %265 = vmatprep.subr.bf16.mxu0 %v616_v25  ;;  %378 = vmatprep.subr.bf16.mxu1 %v618_v26 }
  0x1b   :  { %266 = vmatpush1.bf16.msra.mxu0 %v620_v27  ;;  %379 = vmatpush1.bf16.msra.mxu1 %v621_v28 }
  0x1c   :  { %267 = vmatprep.subr.bf16.mxu0 %v622_v29  ;;  %380 = vmatprep.subr.bf16.mxu1 %v624_v30 }
  0x1f   :  { %268 = vmatpush1.bf16.msra.mxu0 %v626_v31  ;;  %381 = vmatpush1.bf16.msra.mxu1 %v627_v32 }
  0x22   :  { %286 = vmatmul.mubr.bf16.vlgmr.msra.gmra.mxu0 %v31_v35  ;;  %399 = vmatmul.mubr.bf16.vlgmr.msra.gmra.mxu1 %v31_v35 }
  0x23   :  { %295 = vmatprep.mubr.bf16.mxu0 %v628_v1  ;;  %408 = vmatprep.mubr.bf16.mxu1 %v628_v1 }
  0x2a   :  { %296 = vmatmul.mubr.bf16.gmra.mxu0 %v32_v38  ;;  %409 = vmatmul.mubr.bf16.gmra.mxu1 %v32_v38 }
  0x2b   :  { %305 = vmatprep.mubr.bf16.mxu0 %v628_v1  ;;  %418 = vmatprep.mubr.bf16.mxu1 %v628_v1 }
  0x32   :  { %306 = vmatmul.mubr.bf16.gmra.mxu0 %v33_v41  ;;  %419 = vmatmul.mubr.bf16.gmra.mxu1 %v33_v41 }
  0x33   :  { %315 = vmatprep.mubr.bf16.mxu0 %v628_v1  ;;  %428 = vmatprep.mubr.bf16.mxu1 %v628_v1 }
  0x3a   :  { %316 = vmatmul.mubr.bf16.gmra.mxu0 %v34_v44  ;;  %429 = vmatmul.mubr.bf16.gmra.mxu1 %v34_v44 }
  0x3b   :  { %325 = vmatprep.mubr.bf16.mxu0 %v628_v1  ;;  %438 = vmatprep.mubr.bf16.mxu1 %v628_v1 }
  0x42   :  { %326 = vmatmul.mubr.bf16.gmra.mxu0 %v35_v47  ;;  %439 = vmatmul.mubr.bf16.gmra.mxu1 %v35_v47 }
  0x43   :  { %335 = vmatprep.mubr.bf16.mxu0 %v628_v1  ;;  %448 = vmatprep.mubr.bf16.mxu1 %v628_v1 }
  0x4a   :  { %336 = vmatmul.mubr.bf16.gmra.mxu0 %v36_v50  ;;  %449 = vmatmul.mubr.bf16.gmra.mxu1 %v36_v50 }
  0x4b   :  { %345 = vmatprep.mubr.bf16.mxu0 %v628_v1  ;;  %458 = vmatprep.mubr.bf16.mxu1 %v628_v1 }
  0x52   :  { %346 = vmatmul.mubr.bf16.gmra.mxu0 %v37_v53  ;;  %459 = vmatmul.mubr.bf16.gmra.mxu1 %v37_v53 }
  0x53   :  { %355 = vmatprep.mubr.bf16.mxu0 %v628_v1  ;;  %468 = vmatprep.mubr.bf16.mxu1 %v628_v1  ;;  %v814_v1 = vrot.slane %v71_v61, %v83_v60 }
  0x5a   :  { %356 = vmatmul.mubr.bf16.gmra.mxu0 %v38_v56  ;;  %469 = vmatmul.mubr.bf16.gmra.mxu1 %v38_v56 }
  0xe2   :  { %v287_v4 = vpop.f32.mrf.mxu0  ;;  %v400_v5 = vpop.f32.mrf.mxu1 }
  0xe3   :  { %v288_v6 = vadd.f32 %v287_v4, %v812_v0  ;;  %v401_v7 = vadd.f32 %v400_v5, %v814_v1 }
  0xe4   :  { %v289_v8 = vpop.f32.mrf.mxu0  ;;  %v402_v9 = vpop.f32.mrf.mxu1 }
  0xe5   :  { %479 = vst [vmem:[%s1079_s3] sm:$0xff] %v288_v6  ;;  %481 = vst [vmem:[%s1079_s3 + $0x10] sm:$0xff] %v401_v7  ;;  %v290_v10 = vadd.f32 %v289_v8, %v816_v2  ;;  %v403_v11 = vadd.f32 %v402_v9, %v818_v3 }
  0xe6   :  { %v291_v12 = vpop.f32.mrf.mxu0  ;;  %v404_v13 = vpop.f32.mrf.mxu1 }
  0xe7   :  { %480 = vst [vmem:[%s1079_s3 + $0x8] sm:$0xff] %v290_v10  ;;  %482 = vst [vmem:[%s1079_s3 + $0x18] sm:$0xff] %v403_v11  ;;  %v292_v14 = vadd.f32 %v291_v12, %v812_v0  ;;  %v405_v15 = vadd.f32 %v404_v13, %v814_v1 }
  0xe8   :  { %v293_v16 = vpop.f32.mrf.mxu0  ;;  %v406_v17 = vpop.f32.mrf.mxu1 }
  0xe9   :  { %483 = vst [vmem:[%s1079_s3 + $0x20] sm:$0xff] %v292_v14  ;;  %485 = vst [vmem:[%s1079_s3 + $0x30] sm:$0xff] %v405_v15  ;;  %v294_v18 = vadd.f32 %v293_v16, %v816_v2  ;;  %v407_v19 = vadd.f32 %v406_v17, %v818_v3 }
  0xea   :  { %v297_v20 = vpop.f32.mrf.mxu0  ;;  %v410_v21 = vpop.f32.mrf.mxu1 }
  0xeb   :  { %484 = vst [vmem:[%s1079_s3 + $0x28] sm:$0xff] %v294_v18  ;;  %486 = vst [vmem:[%s1079_s3 + $0x38] sm:$0xff] %v407_v19  ;;  %v298_v22 = vadd.f32 %v297_v20, %v812_v0  ;;  %v411_v23 = vadd.f32 %v410_v21, %v814_v1 }
  0xec   :  { %v299_v24 = vpop.f32.mrf.mxu0  ;;  %v412_v25 = vpop.f32.mrf.mxu1 }
  0xed   :  { %487 = vst [vmem:[%s1079_s3 + $0x40] sm:$0xff] %v298_v22  ;;  %489 = vst [vmem:[%s1079_s3 + $0x50] sm:$0xff] %v411_v23  ;;  %v300_v26 = vadd.f32 %v299_v24, %v816_v2  ;;  %v413_v27 = vadd.f32 %v412_v25, %v818_v3 }
  0xee   :  { %v301_v28 = vpop.f32.mrf.mxu0  ;;  %v414_v29 = vpop.f32.mrf.mxu1 }
  0xef   :  { %488 = vst [vmem:[%s1079_s3 + $0x48] sm:$0xff] %v300_v26  ;;  %490 = vst [vmem:[%s1079_s3 + $0x58] sm:$0xff] %v413_v27  ;;  %v302_v30 = vadd.f32 %v301_v28, %v812_v0  ;;  %v415_v31 = vadd.f32 %v414_v29, %v814_v1 }
  0xf0   :  { %v303_v32 = vpop.f32.mrf.mxu0  ;;  %v416_v33 = vpop.f32.mrf.mxu1 }
  0xf1   :  { %491 = vst [vmem:[%s1079_s3 + $0x60] sm:$0xff] %v302_v30  ;;  %493 = vst [vmem:[%s1079_s3 + $0x70] sm:$0xff] %v415_v31  ;;  %v304_v34 = vadd.f32 %v303_v32, %v816_v2  ;;  %v417_v35 = vadd.f32 %v416_v33, %v818_v3 }
  0xf2   :  { %v307_v36 = vpop.f32.mrf.mxu0  ;;  %v420_v37 = vpop.f32.mrf.mxu1 }
  0xf3   :  { %492 = vst [vmem:[%s1079_s3 + $0x68] sm:$0xff] %v304_v34  ;;  %494 = vst [vmem:[%s1079_s3 + $0x78] sm:$0xff] %v417_v35  ;;  %v308_v38 = vadd.f32 %v307_v36, %v812_v0  ;;  %v421_v39 = vadd.f32 %v420_v37, %v814_v1 }
  0xf4   :  { %v309_v40 = vpop.f32.mrf.mxu0  ;;  %v422_v41 = vpop.f32.mrf.mxu1 }
  0xf5   :  { %495 = vst [vmem:[%s1079_s3 + $0x80] sm:$0xff] %v308_v38  ;;  %497 = vst [vmem:[%s1079_s3 + $0x90] sm:$0xff] %v421_v39  ;;  %v310_v42 = vadd.f32 %v309_v40, %v816_v2  ;;  %v423_v43 = vadd.f32 %v422_v41, %v818_v3 }
  0xf6   :  { %v311_v44 = vpop.f32.mrf.mxu0  ;;  %v424_v45 = vpop.f32.mrf.mxu1 }
  0xf7   :  { %496 = vst [vmem:[%s1079_s3 + $0x88] sm:$0xff] %v310_v42  ;;  %498 = vst [vmem:[%s1079_s3 + $0x98] sm:$0xff] %v423_v43  ;;  %v312_v46 = vadd.f32 %v311_v44, %v812_v0  ;;  %v425_v47 = vadd.f32 %v424_v45, %v814_v1 }
  0xf8   :  { %v313_v48 = vpop.f32.mrf.mxu0  ;;  %v426_v49 = vpop.f32.mrf.mxu1 }
  0xf9   :  { %499 = vst [vmem:[%s1079_s3 + $0xa0] sm:$0xff] %v312_v46  ;;  %501 = vst [vmem:[%s1079_s3 + $0xb0] sm:$0xff] %v425_v47  ;;  %v314_v50 = vadd.f32 %v313_v48, %v816_v2  ;;  %v427_v51 = vadd.f32 %v426_v49, %v818_v3 }
  0xfa   :  { %v317_v52 = vpop.f32.mrf.mxu0  ;;  %v430_v53 = vpop.f32.mrf.mxu1 }
  0xfb   :  { %500 = vst [vmem:[%s1079_s3 + $0xa8] sm:$0xff] %v314_v50  ;;  %502 = vst [vmem:[%s1079_s3 + $0xb8] sm:$0xff] %v427_v51  ;;  %v318_v54 = vadd.f32 %v317_v52, %v812_v0  ;;  %v431_v55 = vadd.f32 %v430_v53, %v814_v1 }
  0xfc   :  { %v319_v56 = vpop.f32.mrf.mxu0  ;;  %v432_v57 = vpop.f32.mrf.mxu1 }
  0xfd   :  { %503 = vst [vmem:[%s1079_s3 + $0xc0] sm:$0xff] %v318_v54  ;;  %505 = vst [vmem:[%s1079_s3 + $0xd0] sm:$0xff] %v431_v55  ;;  %v320_v58 = vadd.f32 %v319_v56, %v816_v2  ;;  %v433_v59 = vadd.f32 %v432_v57, %v818_v3 }
  0xfe   :  { %v321_v60 = vpop.f32.mrf.mxu0  ;;  %v434_v61 = vpop.f32.mrf.mxu1 }
  0xff   :  { %504 = vst [vmem:[%s1079_s3 + $0xc8] sm:$0xff] %v320_v58  ;;  %506 = vst [vmem:[%s1079_s3 + $0xd8] sm:$0xff] %v433_v59  ;;  %v322_v62 = vadd.f32 %v321_v60, %v812_v0  ;;  %v435_v63 = vadd.f32 %v434_v61, %v814_v1 }
 0x100   :  { %v323_v4 = vpop.f32.mrf.mxu0  ;;  %v436_v5 = vpop.f32.mrf.mxu1 }
 0x101   :  { %507 = vst [vmem:[%s1079_s3 + $0xe0] sm:$0xff] %v322_v62  ;;  %509 = vst [vmem:[%s1079_s3 + $0xf0] sm:$0xff] %v435_v63  ;;  %v324_v6 = vadd.f32 %v323_v4, %v816_v2  ;;  %v437_v7 = vadd.f32 %v436_v5, %v818_v3 }
 0x102   :  { %v327_v8 = vpop.f32.mrf.mxu0  ;;  %v440_v9 = vpop.f32.mrf.mxu1 }
 0x103   :  { %508 = vst [vmem:[%s1079_s3 + $0xe8] sm:$0xff] %v324_v6  ;;  %510 = vst [vmem:[%s1079_s3 + $0xf8] sm:$0xff] %v437_v7  ;;  %v328_v10 = vadd.f32 %v327_v8, %v812_v0  ;;  %v441_v11 = vadd.f32 %v440_v9, %v814_v1 }
 0x104   :  { %v329_v12 = vpop.f32.mrf.mxu0  ;;  %v442_v13 = vpop.f32.mrf.mxu1 }
 0x105   :  { %511 = vst [vmem:[%s1079_s3 + $0x100] sm:$0xff] %v328_v10  ;;  %513 = vst [vmem:[%s1079_s3 + $0x110] sm:$0xff] %v441_v11  ;;  %v330_v14 = vadd.f32 %v329_v12, %v816_v2  ;;  %v443_v15 = vadd.f32 %v442_v13, %v818_v3 }
 0x106   :  { %v331_v16 = vpop.f32.mrf.mxu0  ;;  %v444_v17 = vpop.f32.mrf.mxu1 }
 0x107   :  { %512 = vst [vmem:[%s1079_s3 + $0x108] sm:$0xff] %v330_v14  ;;  %514 = vst [vmem:[%s1079_s3 + $0x118] sm:$0xff] %v443_v15  ;;  %v332_v18 = vadd.f32 %v331_v16, %v812_v0  ;;  %v445_v19 = vadd.f32 %v444_v17, %v814_v1 }
 0x108   :  { %v333_v20 = vpop.f32.mrf.mxu0  ;;  %v446_v21 = vpop.f32.mrf.mxu1 }
 0x109   :  { %515 = vst [vmem:[%s1079_s3 + $0x120] sm:$0xff] %v332_v18  ;;  %517 = vst [vmem:[%s1079_s3 + $0x130] sm:$0xff] %v445_v19  ;;  %v334_v22 = vadd.f32 %v333_v20, %v816_v2  ;;  %v447_v23 = vadd.f32 %v446_v21, %v818_v3 }
 0x10a   :  { %v337_v24 = vpop.f32.mrf.mxu0  ;;  %v450_v25 = vpop.f32.mrf.mxu1 }
 0x10b   :  { %516 = vst [vmem:[%s1079_s3 + $0x128] sm:$0xff] %v334_v22  ;;  %518 = vst [vmem:[%s1079_s3 + $0x138] sm:$0xff] %v447_v23  ;;  %v338_v26 = vadd.f32 %v337_v24, %v812_v0  ;;  %v451_v27 = vadd.f32 %v450_v25, %v814_v1 }
 0x10c   :  { %v339_v28 = vpop.f32.mrf.mxu0  ;;  %v452_v29 = vpop.f32.mrf.mxu1 }
 0x10d   :  { %519 = vst [vmem:[%s1079_s3 + $0x140] sm:$0xff] %v338_v26  ;;  %521 = vst [vmem:[%s1079_s3 + $0x150] sm:$0xff] %v451_v27  ;;  %v340_v30 = vadd.f32 %v339_v28, %v816_v2  ;;  %v453_v31 = vadd.f32 %v452_v29, %v818_v3 }
 0x10e   :  { %v341_v32 = vpop.f32.mrf.mxu0  ;;  %v454_v33 = vpop.f32.mrf.mxu1 }
 0x10f   :  { %520 = vst [vmem:[%s1079_s3 + $0x148] sm:$0xff] %v340_v30  ;;  %522 = vst [vmem:[%s1079_s3 + $0x158] sm:$0xff] %v453_v31  ;;  %v342_v34 = vadd.f32 %v341_v32, %v812_v0  ;;  %v455_v35 = vadd.f32 %v454_v33, %v814_v1 }
 0x110   :  { %v343_v36 = vpop.f32.mrf.mxu0  ;;  %v456_v37 = vpop.f32.mrf.mxu1 }
 0x111   :  { %523 = vst [vmem:[%s1079_s3 + $0x160] sm:$0xff] %v342_v34  ;;  %525 = vst [vmem:[%s1079_s3 + $0x170] sm:$0xff] %v455_v35  ;;  %v344_v38 = vadd.f32 %v343_v36, %v816_v2  ;;  %v457_v39 = vadd.f32 %v456_v37, %v818_v3 }
 0x112   :  { %v347_v40 = vpop.f32.mrf.mxu0  ;;  %v460_v41 = vpop.f32.mrf.mxu1 }
 0x113   :  { %524 = vst [vmem:[%s1079_s3 + $0x168] sm:$0xff] %v344_v38  ;;  %526 = vst [vmem:[%s1079_s3 + $0x178] sm:$0xff] %v457_v39  ;;  %v348_v42 = vadd.f32 %v347_v40, %v812_v0  ;;  %v461_v43 = vadd.f32 %v460_v41, %v814_v1 }
 0x114   :  { %v349_v44 = vpop.f32.mrf.mxu0  ;;  %v462_v45 = vpop.f32.mrf.mxu1 }
 0x115   :  { %527 = vst [vmem:[%s1079_s3 + $0x180] sm:$0xff] %v348_v42  ;;  %529 = vst [vmem:[%s1079_s3 + $0x190] sm:$0xff] %v461_v43  ;;  %v350_v46 = vadd.f32 %v349_v44, %v816_v2  ;;  %v463_v47 = vadd.f32 %v462_v45, %v818_v3 }
 0x116   :  { %v351_v48 = vpop.f32.mrf.mxu0  ;;  %v464_v49 = vpop.f32.mrf.mxu1 }
 0x117   :  { %528 = vst [vmem:[%s1079_s3 + $0x188] sm:$0xff] %v350_v46  ;;  %530 = vst [vmem:[%s1079_s3 + $0x198] sm:$0xff] %v463_v47  ;;  %v352_v50 = vadd.f32 %v351_v48, %v812_v0  ;;  %v465_v51 = vadd.f32 %v464_v49, %v814_v1 }
 0x118   :  { %v353_v52 = vpop.f32.mrf.mxu0  ;;  %v466_v53 = vpop.f32.mrf.mxu1 }
 0x119   :  { %531 = vst [vmem:[%s1079_s3 + $0x1a0] sm:$0xff] %v352_v50  ;;  %533 = vst [vmem:[%s1079_s3 + $0x1b0] sm:$0xff] %v465_v51  ;;  %v354_v54 = vadd.f32 %v353_v52, %v816_v2  ;;  %v467_v55 = vadd.f32 %v466_v53, %v818_v3 }
 0x11a   :  { %v357_v56 = vpop.f32.mrf.mxu0  ;;  %v470_v57 = vpop.f32.mrf.mxu1 }
 0x11b   :  { %532 = vst [vmem:[%s1079_s3 + $0x1a8] sm:$0xff] %v354_v54  ;;  %534 = vst [vmem:[%s1079_s3 + $0x1b8] sm:$0xff] %v467_v55  ;;  %v358_v58 = vadd.f32 %v357_v56, %v812_v0  ;;  %v471_v59 = vadd.f32 %v470_v57, %v814_v1 }
 0x11c   :  { %v359_v60 = vpop.f32.mrf.mxu0  ;;  %v472_v61 = vpop.f32.mrf.mxu1 }
 0x11d   :  { %535 = vst [vmem:[%s1079_s3 + $0x1c0] sm:$0xff] %v358_v58  ;;  %537 = vst [vmem:[%s1079_s3 + $0x1d0] sm:$0xff] %v471_v59  ;;  %v360_v62 = vadd.f32 %v359_v60, %v816_v2  ;;  %v473_v63 = vadd.f32 %v472_v61, %v818_v3 }
 0x11e   :  { %v361_v4 = vpop.f32.mrf.mxu0  ;;  %v474_v5 = vpop.f32.mrf.mxu1 }
 0x11f   :  { %536 = vst [vmem:[%s1079_s3 + $0x1c8] sm:$0xff] %v360_v62  ;;  %538 = vst [vmem:[%s1079_s3 + $0x1d8] sm:$0xff] %v473_v63  ;;  %v362_v6 = vadd.f32 %v361_v4, %v812_v0  ;;  %v475_v7 = vadd.f32 %v474_v5, %v814_v1 }
 0x120   :  { %v363_v8 = vpop.f32.mrf.mxu0  ;;  %v476_v9 = vpop.f32.mrf.mxu1 }
 0x121   :  { %539 = vst [vmem:[%s1079_s3 + $0x1e0] sm:$0xff] %v362_v6  ;;  %541 = vst [vmem:[%s1079_s3 + $0x1f0] sm:$0xff] %v475_v7  ;;  %v364_v10 = vadd.f32 %v363_v8, %v816_v2  ;;  %v477_v11 = vadd.f32 %v476_v9, %v818_v3 }
 0x123   :  { %540 = vst [vmem:[%s1079_s3 + $0x1e8] sm:$0xff] %v364_v10  ;;  %542 = vst [vmem:[%s1079_s3 + $0x1f8] sm:$0xff] %v477_v11 }

// kernel: stage2_forward.12
= control target key start
LH: loop header
LB: loop body
LE: loop exit
PB: predicated region body
PF: predicated region fallthrough
CT: control target
= control target key end

     0   :  { %s1193_s9 = smov 0   ;;  %s1195_s10 = smov 0   ;;  %s1554_s0 = inlined_call_operand.vmem [shape: f32[16,8,512], index: 0, kind: input, shape index: {}]   ;;  %s1555_s1 = inlined_call_operand.vmem [shape: bf16[128,512], index: 1, kind: input, shape index: {}]   ;;  %s1556_s2 = inlined_call_operand.vmem [shape: f32[16,8,128], index: 2, kind: output, shape index: {}]  }
   0x1   :  { %s1197_s11 = smov 0  }
   0x2 LB: > { %s21_s12 = sadd.s32 1, %s1170_s10  ;;  %p945_p0 = scmp.ge.s32.totalorder %s1174_s11, 1  ;;  %s1174_s11 = sphi %s1197_s11, %s12_s11   ;;  %s1170_s10 = sphi %s1195_s10, %s1558_s10   ;;  %s1166_s9 = sphi %s1193_s9, %s1557_s9  }
   0x3   : > { %p22_p1 = scmp.ge.s32.totalorder %s21_s12, 4  ;;  %p134_p2 = scmp.lt.s32.totalorder %s1174_s11, 5 }
   0x5   : > { %s1560_s12 = smov (%p22_p1, %s21_s12), 0  ;;  %p135_p3 = pnand %p945_p0, %p134_p2 }
   0x6   : > { %s946_s13 = sshll.u32 (!%p135_p3), %s1166_s9, 2  ;;  %p951_p5 = scmp.ne.s32.totalorder (!%p135_p3), %s1166_s9, 0 }
   0x7   : > { %138 = sbr.rel (%p135_p3) target bundleno = 1056 (0x420), region = 28  ;;  %p165_p4 = scmp.lt.s32.totalorder (!%p135_p3), %s946_s13, 15 }
   0xc   : > { %s1562_s13 = smov (!%p165_p4, %s946_s13), 15  ;;  %188 = sbr.rel (%p951_p5) target bundleno = 19 (0x13), region = 32 }
   0xd   : > { %s1013_s14 = sshll.u32 %s1562_s13, 5  ;;  %s950_s15 = sshll.u32 %s1562_s13, 3 }
   0xe   : > { %s1214_s18 = scalar_lea.vmem %s1554_s0, %s1013_s14  ;;  %s1219_s21 = scalar_lea.vmem %s1556_s2, %s950_s15 }
  0x11   : > { %v1176_v0 = vmov 0.0  }
  0x12   : > { %189 = vst [vmem:[#allocation2] sm:$0xff] %v1176_v0  ;;  %190 = vst [vmem:[#allocation3] sm:$0xff] %v1176_v0 }
  0x13 PF: > { %v1224_v1 = vld [vmem:[%s1555_s1 + $0xe4] ss:$16 sps:$4 sm:$0xff]   ;;  %v1229_v2 = vld [vmem:[%s1555_s1 + $0xe0] ss:$16 sps:$4 sm:$0xff]   ;;  %v1177_v3 = vmov 0   ;;  %v226_v38 = vld [vmem:[%s1214_s18 + $0x8] sm:$0xff] }
  0x14   : > { %422 = vmatprep.mubr.bf16.mxu0 %v1177_v3  ;;  %463 = vmatprep.mubr.bf16.mxu1 %v1177_v3  ;;  %v1237_v4 = vld [vmem:[%s1555_s1 + $0xc4] ss:$16 sps:$4 sm:$0xff]   ;;  %v1243_v5 = vld [vmem:[%s1555_s1 + $0xc0] ss:$16 sps:$4 sm:$0xff]   ;;  %v1254_v7 = vld [vmem:[%s1555_s1 + $0xec] ss:$16 sps:$4 sm:$0xff]  }
  0x15   : > { %390 = vmatprep.subr.bf16.mxu0 %v1224_v1  ;;  %v1249_v6 = vld [vmem:[%s1555_s1 + $0xa4] ss:$16 sps:$4 sm:$0xff]   ;;  %v1259_v8 = vld [vmem:[%s1555_s1 + $0xe8] ss:$16 sps:$4 sm:$0xff]   ;;  %v1265_v9 = vld [vmem:[%s1555_s1 + $0xa0] ss:$16 sps:$4 sm:$0xff]   ;;  %431 = vmatprep.subr.bf16.mxu1 %v1254_v7 }
  0x16   : > { %391 = vmatpush1.bf16.msra.mxu0 %v1229_v2  ;;  %v1272_v10 = vld [vmem:[%s1555_s1 + $0x84] ss:$16 sps:$4 sm:$0xff]   ;;  %432 = vmatpush1.bf16.msra.mxu1 %v1259_v8  ;;  %v1278_v11 = vld [vmem:[%s1555_s1 + $0xcc] ss:$16 sps:$4 sm:$0xff]   ;;  %v1283_v12 = vld [vmem:[%s1555_s1 + $0xc8] ss:$16 sps:$4 sm:$0xff]  }
  0x17   : > { %392 = vmatprep.subr.bf16.mxu0 %v1237_v4  ;;  %433 = vmatprep.subr.bf16.mxu1 %v1278_v11  ;;  %v1290_v13 = vld [vmem:[%s1555_s1 + $0x80] ss:$16 sps:$4 sm:$0xff]   ;;  %v1295_v14 = vld [vmem:[%s1555_s1 + $0x64] ss:$16 sps:$4 sm:$0xff]   ;;  %v1300_v15 = vld [vmem:[%s1555_s1 + $0xac] ss:$16 sps:$4 sm:$0xff]  }
  0x18   : > { %v1307_v16 = vld [vmem:[%s1555_s1 + $0xa8] ss:$16 sps:$4 sm:$0xff]   ;;  %v1313_v17 = vld [vmem:[%s1555_s1 + $0x8c] ss:$16 sps:$4 sm:$0xff]   ;;  %v1319_v18 = vld [vmem:[%s1555_s1 + $0x60] ss:$16 sps:$4 sm:$0xff]  }
  0x19   : > { %v1325_v19 = vld [vmem:[%s1555_s1 + $0x44] ss:$16 sps:$4 sm:$0xff]   ;;  %v1331_v20 = vld [vmem:[%s1555_s1 + $0x88] ss:$16 sps:$4 sm:$0xff]   ;;  %v1337_v21 = vld [vmem:[%s1555_s1 + $0x6c] ss:$16 sps:$4 sm:$0xff]  }
  0x1a   : > { %393 = vmatpush1.bf16.msra.mxu0 %v1243_v5  ;;  %434 = vmatpush1.bf16.msra.mxu1 %v1283_v12  ;;  %v1342_v22 = vld [vmem:[%s1555_s1 + $0x40] ss:$16 sps:$4 sm:$0xff]   ;;  %v1348_v23 = vld [vmem:[%s1555_s1 + $0x24] ss:$16 sps:$4 sm:$0xff]   ;;  %v1355_v24 = vld [vmem:[%s1555_s1 + $0x68] ss:$16 sps:$4 sm:$0xff]  }
  0x1b   : > { %394 = vmatprep.subr.bf16.mxu0 %v1249_v6  ;;  %435 = vmatprep.subr.bf16.mxu1 %v1300_v15  ;;  %v1361_v25 = vld [vmem:[%s1555_s1 + $0x4c] ss:$16 sps:$4 sm:$0xff]   ;;  %v1367_v26 = vld [vmem:[%s1555_s1 + $0x20] ss:$16 sps:$4 sm:$0xff]   ;;  %v1373_v27 = vld [vmem:[%s1555_s1 + $0x4] ss:$16 sps:$4 sm:$0xff]  }
  0x1c   : > { %v1379_v28 = vld [vmem:[%s1555_s1 + $0x48] ss:$16 sps:$4 sm:$0xff]   ;;  %v1385_v29 = vld [vmem:[%s1555_s1 + $0x2c] ss:$16 sps:$4 sm:$0xff]   ;;  %v1391_v30 = vld [vmem:[%s1555_s1] ss:$16 sps:$4 sm:$0xff]  }
  0x1d   : > { %v223_v31 = vld [vmem:[#allocation2] sm:$0xff]  ;;  %v1398_v32 = vld [vmem:[%s1555_s1 + $0x28] ss:$16 sps:$4 sm:$0xff]   ;;  %v1404_v33 = vld [vmem:[%s1555_s1 + $0xc] ss:$16 sps:$4 sm:$0xff]  }
  0x1e   : > { %395 = vmatpush1.bf16.msra.mxu0 %v1265_v9  ;;  %436 = vmatpush1.bf16.msra.mxu1 %v1307_v16  ;;  %v229_v34 = vpack.c.bf16 %v223_v31, %v223_v31  ;;  %v1411_v35 = vld [vmem:[%s1555_s1 + $0x8] ss:$16 sps:$4 sm:$0xff]   ;;  %v225_v36 = vld [vmem:[%s1214_s18] sm:$0xff]  ;;  %v227_v51 = vld [vmem:[%s1214_s18 + $0x10] sm:$0xff] }
  0x1f   : > { %396 = vmatprep.subr.bf16.mxu0 %v1272_v10  ;;  %437 = vmatprep.subr.bf16.mxu1 %v1313_v17  ;;  %v228_v48 = vld [vmem:[%s1214_s18 + $0x18] sm:$0xff]  ;;  %v224_v62 = vld [vmem:[#allocation3] sm:$0xff] }
  0x22   : > { %397 = vmatpush1.bf16.msra.mxu0 %v1290_v13  ;;  %438 = vmatpush1.bf16.msra.mxu1 %v1331_v20 }
  0x23   : > { %398 = vmatprep.subr.bf16.mxu0 %v1295_v14  ;;  %439 = vmatprep.subr.bf16.mxu1 %v1337_v21 }
  0x26   : > { %399 = vmatpush1.bf16.msra.mxu0 %v1319_v18  ;;  %440 = vmatpush1.bf16.msra.mxu1 %v1355_v24 }
  0x27   : > { %400 = vmatprep.subr.bf16.mxu0 %v1325_v19  ;;  %441 = vmatprep.subr.bf16.mxu1 %v1361_v25 }
  0x2a   : > { %401 = vmatpush1.bf16.msra.mxu0 %v1342_v22  ;;  %442 = vmatpush1.bf16.msra.mxu1 %v1379_v28 }
  0x2b   : > { %402 = vmatprep.subr.bf16.mxu0 %v1348_v23  ;;  %443 = vmatprep.subr.bf16.mxu1 %v1385_v29 }
  0x2e   : > { %403 = vmatpush1.bf16.msra.mxu0 %v1367_v26  ;;  %444 = vmatpush1.bf16.msra.mxu1 %v1398_v32 }
  0x2f   : > { %404 = vmatprep.subr.bf16.mxu0 %v1373_v27  ;;  %445 = vmatprep.subr.bf16.mxu1 %v1404_v33 }
  0x32   : > { %405 = vmatpush1.bf16.msra.mxu0 %v1391_v30  ;;  %446 = vmatpush1.bf16.msra.mxu1 %v1411_v35 }
  0x33   : > { %507 = vmatprep.subr.bf16.mxu0 %v1224_v1  ;;  %548 = vmatprep.subr.bf16.mxu1 %v1254_v7 }
  0x35   : > { %423 = vmatmul.mubr.bf16.vlgmr.msra.gmra.mxu0 %v229_v34  ;;  %464 = vmatmul.mubr.bf16.vlgmr.msra.gmra.mxu1 %v229_v34 }
  0x36   : > { %508 = vmatpush1.bf16.msra.mxu0 %v1229_v2  ;;  %539 = vmatprep.mubr.bf16.mxu0 %v1177_v3 }
  0x37   : > { %509 = vmatprep.subr.bf16.mxu0 %v1237_v4  ;;  %549 = vmatpush1.bf16.msra.mxu1 %v1259_v8 }
  0x38   : > { %550 = vmatprep.subr.bf16.mxu1 %v1278_v11  ;;  %580 = vmatprep.mubr.bf16.mxu1 %v1177_v3 }
  0x3a   : > { %510 = vmatpush1.bf16.msra.mxu0 %v1243_v5 }
  0x3b   : > { %511 = vmatprep.subr.bf16.mxu0 %v1249_v6  ;;  %551 = vmatpush1.bf16.msra.mxu1 %v1283_v12 }
  0x3c   : > { %552 = vmatprep.subr.bf16.mxu1 %v1300_v15 }
  0x3e   : > { %512 = vmatpush1.bf16.msra.mxu0 %v1265_v9 }
  0x3f   : > { %513 = vmatprep.subr.bf16.mxu0 %v1272_v10  ;;  %553 = vmatpush1.bf16.msra.mxu1 %v1307_v16 }
  0x40   : > { %554 = vmatprep.subr.bf16.mxu1 %v1313_v17 }
  0x42   : > { %514 = vmatpush1.bf16.msra.mxu0 %v1290_v13 }
  0x43   : > { %515 = vmatprep.subr.bf16.mxu0 %v1295_v14  ;;  %555 = vmatpush1.bf16.msra.mxu1 %v1331_v20 }
  0x44   : > { %556 = vmatprep.subr.bf16.mxu1 %v1337_v21 }
  0x46   : > { %516 = vmatpush1.bf16.msra.mxu0 %v1319_v18 }
  0x47   : > { %517 = vmatprep.subr.bf16.mxu0 %v1325_v19  ;;  %557 = vmatpush1.bf16.msra.mxu1 %v1355_v24 }
  0x48   : > { %558 = vmatprep.subr.bf16.mxu1 %v1361_v25 }
  0x4a   : > { %518 = vmatpush1.bf16.msra.mxu0 %v1342_v22 }
  0x4b   : > { %519 = vmatprep.subr.bf16.mxu0 %v1348_v23  ;;  %559 = vmatpush1.bf16.msra.mxu1 %v1379_v28 }
  0x4c   : > { %560 = vmatprep.subr.bf16.mxu1 %v1385_v29 }
  0x4e   : > { %520 = vmatpush1.bf16.msra.mxu0 %v1367_v26 }
  0x4f   : > { %521 = vmatprep.subr.bf16.mxu0 %v1373_v27  ;;  %561 = vmatpush1.bf16.msra.mxu1 %v1398_v32 }
  0x50   : > { %562 = vmatprep.subr.bf16.mxu1 %v1404_v33 }
  0x52   : > { %522 = vmatpush1.bf16.msra.mxu0 %v1391_v30 }
  0x53   : > { %625 = vmatprep.subr.bf16.mxu0 %v1224_v1  ;;  %563 = vmatpush1.bf16.msra.mxu1 %v1411_v35 }
  0x54   : > { %666 = vmatprep.subr.bf16.mxu1 %v1254_v7 }
  0xf5   : > { %v424_v37 = vpop.f32.mrf.mxu0  ;;  %v465_v45 = vpop.f32.mrf.mxu1 }
  0xf6   : > { %v472_v39 = vadd.f32 %v424_v37, %v225_v36  ;;  %v474_v53 = vadd.f32 %v465_v45, %v227_v51 }
  0xf7   : > { %v426_v40 = vpop.f32.mrf.mxu0  ;;  %v467_v47 = vpop.f32.mrf.mxu1 }
  0xf8   : > { %v984_v41 = vmul.f32 -1.442695, %v472_v39  ;;  %v473_v42 = vadd.f32 %v426_v40, %v226_v38  ;;  %v475_v52 = vadd.f32 %v467_v47, %v228_v48 }
  0xf9   : > { %v428_v43 = vpop.f32.mrf.mxu0  ;;  %v469_v49 = vpop.f32.mrf.mxu1 }
  0xfa   : > { %1088 = vpow2.f32 %v984_v41  ;;  %v985_v44 = vmul.f32 -1.442695, %v473_v42  ;;  %v986_v54 = vmul.f32 -1.442695, %v475_v52  ;;  %v987_v41 = vld [vmem:[%s1214_s18 + $0x20] sm:$0xff] }
  0xfb   : > { %v429_v46 = vpop.f32.mrf.mxu0  ;;  %v470_v50 = vpop.f32.mrf.mxu1 }
  0xfc   : > { %1090 = vpow2.f32 %v985_v44  ;;  %v988_v44 = vld [vmem:[%s1214_s18 + $0x28] sm:$0xff] }
  0xfd   : > { %1092 = vtanh.f32 %v474_v53 }
  0xfe   : > { %1094 = vpow2.f32 %v986_v54 }
 0x107   : > { %v1089_v55 = vpop.eup %1088 }
 0x108   : > { %v479_v56 = vadd.f32 1.0, %v1089_v55  ;;  %v989_v55 = vld [vmem:[%s1214_s18 + $0x30] sm:$0xff] }
 0x109   : > { %v1091_v57 = vpop.eup %1090 }
 0x10a   : > { %1096 = vrcp.f32 %v479_v56  ;;  %v485_v58 = vadd.f32 1.0, %v1091_v57  ;;  %v1093_v59 = vpop.eup %1092 }
 0x10b   : > { %v1095_v60 = vpop.eup %1094 }
 0x10c   : > { %1098 = vrcp.f32 %v485_v58  ;;  %v492_v0 = vadd.f32 1.0, %v1095_v60 }
 0x10e   : > { %1100 = vrcp.f32 %v492_v0 }
 0x117   : > { %v1097_v61 = vpop.eup %1096 }
 0x118   : > { %v496_v34 = vmul.f32 %v1097_v61, %v1093_v59 }
 0x119   : > { %v1099_v63 = vpop.eup %1098 }
 0x11a   : > { %v495_v31 = vmul.f32 %v1099_v63, %v224_v62 }
 0x11b   : > { %v1101_v37 = vpop.eup %1100 }
 0x11c   : > { %v1455_v36 = vadd.f32 %v496_v34, %v495_v31 }
 0x11e   : > { %1102 = vtanh.f32 %v1455_v36 }
 0x12b   : > { %v1103_v38 = vpop.eup %1102 }
 0x12c   : > { %v499_v39 = vmul.f32 %v1103_v38, %v1101_v37 }
 0x12e   : > { %500 = vst [vmem:[%s1219_s21] sm:$0xff] %v499_v39  ;;  %v506_v40 = vpack.c.bf16 %v499_v39, %v499_v39 }
 0x130   : > { %540 = vmatmul.mubr.bf16.vlgmr.msra.gmra.mxu0 %v506_v40  ;;  %581 = vmatmul.mubr.bf16.vlgmr.msra.gmra.mxu1 %v506_v40 }
 0x131   : > { %626 = vmatpush1.bf16.msra.mxu0 %v1229_v2  ;;  %667 = vmatpush1.bf16.msra.mxu1 %v1259_v8 }
 0x132   : > { %627 = vmatprep.subr.bf16.mxu0 %v1237_v4  ;;  %668 = vmatprep.subr.bf16.mxu1 %v1278_v11 }
 0x133   : > { %657 = vmatprep.mubr.bf16.mxu0 %v1177_v3  ;;  %698 = vmatprep.mubr.bf16.mxu1 %v1177_v3 }
 0x135   : > { %628 = vmatpush1.bf16.msra.mxu0 %v1243_v5  ;;  %669 = vmatpush1.bf16.msra.mxu1 %v1283_v12 }
 0x136   : > { %629 = vmatprep.subr.bf16.mxu0 %v1249_v6  ;;  %670 = vmatprep.subr.bf16.mxu1 %v1300_v15 }
 0x139   : > { %630 = vmatpush1.bf16.msra.mxu0 %v1265_v9  ;;  %671 = vmatpush1.bf16.msra.mxu1 %v1307_v16 }
 0x13a   : > { %631 = vmatprep.subr.bf16.mxu0 %v1272_v10  ;;  %672 = vmatprep.subr.bf16.mxu1 %v1313_v17 }
 0x13d   : > { %632 = vmatpush1.bf16.msra.mxu0 %v1290_v13  ;;  %673 = vmatpush1.bf16.msra.mxu1 %v1331_v20 }
 0x13e   : > { %633 = vmatprep.subr.bf16.mxu0 %v1295_v14  ;;  %674 = vmatprep.subr.bf16.mxu1 %v1337_v21 }
 0x141   : > { %634 = vmatpush1.bf16.msra.mxu0 %v1319_v18  ;;  %675 = vmatpush1.bf16.msra.mxu1 %v1355_v24 }
 0x142   : > { %635 = vmatprep.subr.bf16.mxu0 %v1325_v19  ;;  %676 = vmatprep.subr.bf16.mxu1 %v1361_v25 }
 0x145   : > { %636 = vmatpush1.bf16.msra.mxu0 %v1342_v22  ;;  %677 = vmatpush1.bf16.msra.mxu1 %v1379_v28 }
 0x146   : > { %637 = vmatprep.subr.bf16.mxu0 %v1348_v23  ;;  %678 = vmatprep.subr.bf16.mxu1 %v1385_v29 }
 0x149   : > { %638 = vmatpush1.bf16.msra.mxu0 %v1367_v26  ;;  %679 = vmatpush1.bf16.msra.mxu1 %v1398_v32 }
 0x14a   : > { %639 = vmatprep.subr.bf16.mxu0 %v1373_v27  ;;  %680 = vmatprep.subr.bf16.mxu1 %v1404_v33 }
 0x14d   : > { %640 = vmatpush1.bf16.msra.mxu0 %v1391_v30  ;;  %681 = vmatpush1.bf16.msra.mxu1 %v1411_v35 }
 0x14e   : > { %743 = vmatprep.subr.bf16.mxu0 %v1224_v1  ;;  %784 = vmatprep.subr.bf16.mxu1 %v1254_v7  ;;  %v990_v1 = vld [vmem:[%s1214_s18 + $0x38] sm:$0xff] }
 0x1f0   : > { %v541_v42 = vpop.f32.mrf.mxu0  ;;  %v582_v43 = vpop.f32.mrf.mxu1 }
 0x1f1   : > { %v589_v45 = vadd.f32 %v987_v41, %v541_v42  ;;  %v591_v58 = vadd.f32 %v989_v55, %v582_v43 }
 0x1f2   : > { %v543_v46 = vpop.f32.mrf.mxu0  ;;  %v584_v47 = vpop.f32.mrf.mxu1 }
 0x1f3   : > { %v991_v48 = vmul.f32 -1.442695, %v589_v45  ;;  %v590_v49 = vadd.f32 %v988_v44, %v543_v46  ;;  %v592_v7 = vadd.f32 %v990_v1, %v584_v47  ;;  %v1003_v47 = vld [vmem:[%s1214_s18 + $0x60] sm:$0xff] }
 0x1f4   : > { %v545_v50 = vpop.f32.mrf.mxu0  ;;  %v586_v51 = vpop.f32.mrf.mxu1 }
 0x1f5   : > { %1104 = vpow2.f32 %v991_v48  ;;  %v992_v52 = vmul.f32 -1.442695, %v590_v49  ;;  %v993_v56 = vmul.f32 -1.442695, %v592_v7  ;;  %v1004_v50 = vld [vmem:[%s1214_s18 + $0x68] sm:$0xff] }
 0x1f6   : > { %v546_v53 = vpop.f32.mrf.mxu0  ;;  %v587_v54 = vpop.f32.mrf.mxu1 }
 0x1f7   : > { %1106 = vpow2.f32 %v992_v52 }
 0x1f8   : > { %1108 = vpow2.f32 %v993_v56 }
 0x202   : > { %v1105_v57 = vpop.eup %1104 }
 0x203   : > { %v596_v59 = vadd.f32 1.0, %v1105_v57 }
 0x204   : > { %v1107_v60 = vpop.eup %1106 }
 0x205   : > { %1110 = vrcp.f32 %v596_v59  ;;  %v602_v61 = vadd.f32 1.0, %v1107_v60  ;;  %v1109_v62 = vpop.eup %1108  ;;  %v1006_v59 = vld [vmem:[%s1214_s18 + $0x78] sm:$0xff] }
 0x206   : > { %1112 = vtanh.f32 %v591_v58  ;;  %v609_v34 = vadd.f32 1.0, %v1109_v62 }
 0x207   : > { %1114 = vrcp.f32 %v602_v61  ;;  %v1005_v61 = vld [vmem:[%s1214_s18 + $0x70] sm:$0xff] }
 0x208   : > { %1116 = vrcp.f32 %v609_v34 }
 0x212   : > { %v1111_v63 = vpop.eup %1110 }
 0x213   : > { %v1113_v0 = vpop.eup %1112 }
 0x214   : > { %v1115_v31 = vpop.eup %1114  ;;  %v613_v37 = vmul.f32 %v1113_v0, %v1111_v63 }
 0x215   : > { %v612_v38 = vmul.f32 %v1115_v31, %v1455_v36  ;;  %v1117_v40 = vpop.eup %1116 }
 0x217   : > { %v1498_v39 = vadd.f32 %v613_v37, %v612_v38 }
 0x219   : > { %1118 = vtanh.f32 %v1498_v39 }
 0x226   : > { %v1119_v41 = vpop.eup %1118 }
 0x227   : > { %v616_v42 = vmul.f32 %v1119_v41, %v1117_v40 }
 0x229   : > { %994 = vst [vmem:[%s1219_s21 + $0x8] sm:$0xff] %v616_v42  ;;  %v624_v43 = vpack.c.bf16 %v616_v42, %v616_v42 }
 0x22b   : > { %658 = vmatmul.mubr.bf16.vlgmr.msra.gmra.mxu0 %v624_v43  ;;  %699 = vmatmul.mubr.bf16.vlgmr.msra.gmra.mxu1 %v624_v43 }
 0x22c   : > { %744 = vmatpush1.bf16.msra.mxu0 %v1229_v2  ;;  %785 = vmatpush1.bf16.msra.mxu1 %v1259_v8  ;;  %v995_v2 = vld [vmem:[%s1214_s18 + $0x40] sm:$0xff] }
 0x22d   : > { %745 = vmatprep.subr.bf16.mxu0 %v1237_v4  ;;  %786 = vmatprep.subr.bf16.mxu1 %v1278_v11 }
 0x22e   : > { %775 = vmatprep.mubr.bf16.mxu0 %v1177_v3  ;;  %816 = vmatprep.mubr.bf16.mxu1 %v1177_v3 }
 0x230   : > { %746 = vmatpush1.bf16.msra.mxu0 %v1243_v5  ;;  %787 = vmatpush1.bf16.msra.mxu1 %v1283_v12  ;;  %v996_v5 = vld [vmem:[%s1214_s18 + $0x48] sm:$0xff] }
 0x231   : > { %747 = vmatprep.subr.bf16.mxu0 %v1249_v6  ;;  %788 = vmatprep.subr.bf16.mxu1 %v1300_v15 }
 0x234   : > { %748 = vmatpush1.bf16.msra.mxu0 %v1265_v9  ;;  %789 = vmatpush1.bf16.msra.mxu1 %v1307_v16 }
 0x235   : > { %749 = vmatprep.subr.bf16.mxu0 %v1272_v10  ;;  %790 = vmatprep.subr.bf16.mxu1 %v1313_v17  ;;  %v998_v17 = vld [vmem:[%s1214_s18 + $0x58] sm:$0xff] }
 0x238   : > { %750 = vmatpush1.bf16.msra.mxu0 %v1290_v13  ;;  %791 = vmatpush1.bf16.msra.mxu1 %v1331_v20 }
 0x239   : > { %751 = vmatprep.subr.bf16.mxu0 %v1295_v14  ;;  %792 = vmatprep.subr.bf16.mxu1 %v1337_v21 }
 0x23c   : > { %752 = vmatpush1.bf16.msra.mxu0 %v1319_v18  ;;  %793 = vmatpush1.bf16.msra.mxu1 %v1355_v24 }
 0x23d   : > { %753 = vmatprep.subr.bf16.mxu0 %v1325_v19  ;;  %794 = vmatprep.subr.bf16.mxu1 %v1361_v25  ;;  %v997_v19 = vld [vmem:[%s1214_s18 + $0x50] sm:$0xff] }
 0x240   : > { %754 = vmatpush1.bf16.msra.mxu0 %v1342_v22  ;;  %795 = vmatpush1.bf16.msra.mxu1 %v1379_v28 }
 0x241   : > { %755 = vmatprep.subr.bf16.mxu0 %v1348_v23  ;;  %796 = vmatprep.subr.bf16.mxu1 %v1385_v29 }
 0x244   : > { %756 = vmatpush1.bf16.msra.mxu0 %v1367_v26  ;;  %797 = vmatpush1.bf16.msra.mxu1 %v1398_v32 }
 0x245   : > { %757 = vmatprep.subr.bf16.mxu0 %v1373_v27  ;;  %798 = vmatprep.subr.bf16.mxu1 %v1404_v33 }
 0x248   : > { %758 = vmatpush1.bf16.msra.mxu0 %v1391_v30  ;;  %799 = vmatpush1.bf16.msra.mxu1 %v1411_v35 }
 0x2eb   : > { %v659_v3 = vpop.f32.mrf.mxu0  ;;  %v700_v4 = vpop.f32.mrf.mxu1 }
 0x2ec   : > { %v707_v6 = vadd.f32 %v995_v2, %v659_v3  ;;  %v709_v22 = vadd.f32 %v997_v19, %v700_v4 }
 0x2ed   : > { %v661_v8 = vpop.f32.mrf.mxu0  ;;  %v702_v9 = vpop.f32.mrf.mxu1 }
 0x2ee   : > { %v999_v10 = vmul.f32 -1.442695, %v707_v6  ;;  %v708_v11 = vadd.f32 %v996_v5, %v661_v8  ;;  %v710_v18 = vadd.f32 %v998_v17, %v702_v9 }
 0x2ef   : > { %v663_v12 = vpop.f32.mrf.mxu0  ;;  %v704_v13 = vpop.f32.mrf.mxu1 }
 0x2f0   : > { %1120 = vpow2.f32 %v999_v10  ;;  %v1000_v14 = vmul.f32 -1.442695, %v708_v11  ;;  %v1001_v20 = vmul.f32 -1.442695, %v710_v18 }
 0x2f1   : > { %v664_v15 = vpop.f32.mrf.mxu0  ;;  %v705_v16 = vpop.f32.mrf.mxu1 }
 0x2f2   : > { %1122 = vpow2.f32 %v1000_v14 }
 0x2f3   : > { %1124 = vpow2.f32 %v1001_v20 }
 0x2fd   : > { %v1121_v21 = vpop.eup %1120 }
 0x2fe   : > { %v714_v23 = vadd.f32 1.0, %v1121_v21 }
 0x2ff   : > { %v1123_v24 = vpop.eup %1122 }
 0x300   : > { %1126 = vrcp.f32 %v714_v23  ;;  %v720_v25 = vadd.f32 1.0, %v1123_v24  ;;  %v1125_v26 = vpop.eup %1124 }
 0x301   : > { %1128 = vtanh.f32 %v709_v22  ;;  %v727_v30 = vadd.f32 1.0, %v1125_v26 }
 0x302   : > { %1130 = vrcp.f32 %v720_v25 }
 0x303   : > { %1132 = vrcp.f32 %v727_v30 }
 0x30d   : > { %v1127_v27 = vpop.eup %1126 }
 0x30e   : > { %v1129_v28 = vpop.eup %1128 }
 0x30f   : > { %v1131_v29 = vpop.eup %1130  ;;  %v731_v32 = vmul.f32 %v1129_v28, %v1127_v27 }
 0x310   : > { %v730_v33 = vmul.f32 %v1131_v29, %v1498_v39  ;;  %v1133_v36 = vpop.eup %1132 }
 0x312   : > { %v732_v35 = vadd.f32 %v731_v32, %v730_v33 }
 0x314   : > { %1134 = vtanh.f32 %v732_v35 }
 0x321   : > { %v1135_v44 = vpop.eup %1134 }
 0x322   : > { %v734_v45 = vmul.f32 %v1135_v44, %v1133_v36 }
 0x324   : > { %1002 = vst [vmem:[%s1219_s21 + $0x10] sm:$0xff] %v734_v45  ;;  %v742_v46 = vpack.c.bf16 %v734_v45, %v734_v45 }
 0x326   : > { %776 = vmatmul.mubr.bf16.vlgmr.msra.gmra.mxu0 %v742_v46  ;;  %817 = vmatmul.mubr.bf16.vlgmr.msra.gmra.mxu1 %v742_v46 }
 0x3e6   : > { %v777_v48 = vpop.f32.mrf.mxu0  ;;  %v818_v49 = vpop.f32.mrf.mxu1 }
 0x3e7   : > { %v825_v51 = vadd.f32 %v1003_v47, %v777_v48  ;;  %v827_v0 = vadd.f32 %v1005_v61, %v818_v49 }
 0x3e8   : > { %v779_v52 = vpop.f32.mrf.mxu0  ;;  %v820_v53 = vpop.f32.mrf.mxu1 }
 0x3e9   : > { %v1007_v54 = vmul.f32 -1.442695, %v825_v51  ;;  %v826_v1 = vadd.f32 %v1004_v50, %v779_v52  ;;  %v828_v60 = vadd.f32 %v1006_v59, %v820_v53 }
 0x3ea   : > { %v781_v7 = vpop.f32.mrf.mxu0  ;;  %v822_v55 = vpop.f32.mrf.mxu1 }
 0x3eb   : > { %1136 = vpow2.f32 %v1007_v54  ;;  %v1008_v56 = vmul.f32 -1.442695, %v826_v1  ;;  %v1009_v62 = vmul.f32 -1.442695, %v828_v60 }
 0x3ec   : > { %v782_v57 = vpop.f32.mrf.mxu0  ;;  %v823_v58 = vpop.f32.mrf.mxu1 }
 0x3ed   : > { %1138 = vpow2.f32 %v1008_v56 }
 0x3ee   : > { %1140 = vpow2.f32 %v1009_v62 }
 0x3f8   : > { %v1137_v63 = vpop.eup %1136 }
 0x3f9   : > { %v832_v31 = vadd.f32 1.0, %v1137_v63 }
 0x3fa   : > { %v1139_v34 = vpop.eup %1138 }
 0x3fb   : > { %1142 = vrcp.f32 %v832_v31  ;;  %v838_v37 = vadd.f32 1.0, %v1139_v34  ;;  %v1141_v38 = vpop.eup %1140 }
 0x3fc   : > { %1144 = vtanh.f32 %v827_v0  ;;  %v845_v42 = vadd.f32 1.0, %v1141_v38 }
 0x3fd   : > { %1146 = vrcp.f32 %v838_v37 }
 0x3fe   : > { %1148 = vrcp.f32 %v845_v42 }
 0x408   : > { %v1143_v39 = vpop.eup %1142 }
 0x409   : > { %v1145_v40 = vpop.eup %1144 }
 0x40a   : > { %v1147_v41 = vpop.eup %1146  ;;  %v849_v43 = vmul.f32 %v1145_v40, %v1143_v39 }
 0x40b   : > { %v848_v2 = vmul.f32 %v1147_v41, %v732_v35  ;;  %v1149_v4 = vpop.eup %1148 }
 0x40d   : > { %v850_v3 = vadd.f32 %v849_v43, %v848_v2 }
 0x40f   : > { %1150 = vtanh.f32 %v850_v3  ;;  %856 = vst [vmem:[#allocation3] sm:$0xff] %v850_v3 }
 0x41c   : > { %v1151_v5 = vpop.eup %1150 }
 0x41d   : > { %v852_v6 = vmul.f32 %v1151_v5, %v1149_v4 }
 0x41f   : > { %1010 = vst [vmem:[%s1219_s21 + $0x18] sm:$0xff] %v852_v6  ;;  %855 = vst [vmem:[#allocation2] sm:$0xff] %v852_v6 }
 0x420 PF: > { %s12_s11 = sadd.s32 1, %s1174_s11   ;;  %s1557_s9 = smov %s1170_s10 }
 0x421   : > { %p9_p6 = scmp.ge.s32.totalorder %s12_s11, 6   ;;  %s1558_s10 = smov %s1560_s12 }
 0x423   :  { %11 = sbr.rel (!%p9_p6) target bundleno = 2 (0x2), region = 68 }

// kernel: stage2_forward.10
= control target key start
LH: loop header
LB: loop body
LE: loop exit
PB: predicated region body
PF: predicated region fallthrough
CT: control target
= control target key end

     0   :  { %s799_s0 = inlined_call_operand.vmem [shape: s32[64], index: 0, kind: input, shape index: {}]   ;;  %s800_s1 = inlined_call_operand.vmem [shape: f32[128,128], index: 1, kind: input, shape index: {}]   ;;  %s801_s2 = inlined_call_operand.vmem [shape: f32[8,8,128], index: 2, kind: output, shape index: {}]  }
   0x1   :  { %s7_s11 = sshll.u32 %s799_s0, 4  ;;  %s8_s11 = int_to_ptr.vmem [resolvable:$true] %s7_s11 }
   0x2   :  { %s690_s12 = scalar_lea.vmem %s8_s11, 16  ;;  %p695_p1 = scmp.lt.s32.totalorder %s8_s11, %s8_s11 }
   0x3   :  { %p691_p0 = scmp.ne.s32.totalorder %s8_s11, %s690_s12  ;;  %p696_p2 = scmp.lt.s32.totalorder %s690_s12, %s690_s12 }
   0x5   :  { %p697_p3 = por %p696_p2, %p695_p1 }
   0x7   :  { %p698_p4 = pnand %p697_p3, %p691_p0 }
   0x9   :  { %701 = shalt.err (!%p698_p4)  }
   0xa   :  { %s728_s13 = smov [#allocation5]  }
   0xb   :  { %10 = dma.vmem_to_smem %s8_s11, 16, %s728_s13, [#allocation4] }
   0xc   :  { %706 = dma.done.wait [#allocation4], 16 }
   0xd   :  { %707 = vsyncadd [#allocation4], 4294967280 }
   0xe   :  { %12 = sfence }
   0xf   :  { %s747_s14 = smov 0  }
  0x10 LB: > { %p668_p5 = scmp.ge.s32.totalorder %s726_s14, 8  ;;  %s726_s14 = sphi %s747_s14, %s18_s14  }
  0x11   : > { %p50_p6 = scmp.lt.s32.totalorder (!%p668_p5), %s726_s14, 7  ;;  %s755_s0 = sshll.u32 (!%p668_p5), %s726_s14, 3 }
  0x12   : > { %43 = sbr.rel (%p668_p5) target bundleno = 115 (0x73), region = 12  ;;  %s55_s15 = sld [smem:[#allocation5 + %s755_s0]] (!%p668_p5) }
  0x17   : > { %s51_s16 = scalar_select %p50_p6, %s726_s14, 7 }
  0x18   : > { %s56_s23 = scalar_lea.vmem %s800_s1, %s55_s15 }
  0x19   : > { %s669_s17 = sshll.u32 %s51_s16, 3  ;;  %v75_v0 = vld [vmem:[%s56_s23] sm:$0x1] }
  0x1a   : > { %s762_s20 = scalar_lea.vmem %s801_s2, %s669_s17  ;;  %76 = vst [vmem:[#allocation2] sm:$0x1] %v75_v0 }
  0x1b   : > { %102 = vsyncadd [#allocation3], 16  ;;  %s103_s24 = sadd.s32 1, %s755_s0 }
  0x1c   : > { %s104_s25 = sld [smem:[#allocation5 + %s103_s24]] }
  0x22   : > { %s105_s28 = scalar_lea.vmem %s800_s1, %s104_s25 }
  0x23   : > { %v126_v1 = vld [vmem:[%s105_s28] sm:$0x1] }
  0x24   : > { %127 = vst [vmem:[#allocation2 + $0x1] sm:$0x1] %v126_v1 }
  0x25   : > { %153 = vsyncadd [#allocation3 + $0x1], 16  ;;  %s154_s29 = sadd.s32 2, %s755_s0 }
  0x26   : > { %s155_s30 = sld [smem:[#allocation5 + %s154_s29]] }
  0x2c   : > { %s156_s5 = scalar_lea.vmem %s800_s1, %s155_s30 }
  0x2d   : > { %v177_v2 = vld [vmem:[%s156_s5] sm:$0x1] }
  0x2e   : > { %178 = vst [vmem:[#allocation2 + $0x2] sm:$0x1] %v177_v2 }
  0x2f   : > { %204 = vsyncadd [#allocation3 + $0x2], 16  ;;  %s205_s6 = sadd.s32 3, %s755_s0 }
  0x30   : > { %s206_s7 = sld [smem:[#allocation5 + %s205_s6]] }
  0x36   : > { %s207_s10 = scalar_lea.vmem %s800_s1, %s206_s7 }
  0x37   : > { %v228_v3 = vld [vmem:[%s207_s10] sm:$0x1] }
  0x38   : > { %229 = vst [vmem:[#allocation2 + $0x3] sm:$0x1] %v228_v3 }
  0x39   : > { %255 = vsyncadd [#allocation3 + $0x3], 16  ;;  %s256_s11 = sadd.s32 4, %s755_s0 }
  0x3a   : > { %s257_s12 = sld [smem:[#allocation5 + %s256_s11]] }
  0x40   : > { %s258_s16 = scalar_lea.vmem %s800_s1, %s257_s12 }
  0x41   : > { %v279_v4 = vld [vmem:[%s258_s16] sm:$0x1] }
  0x42   : > { %280 = vst [vmem:[#allocation2 + $0x4] sm:$0x1] %v279_v4 }
  0x43   : > { %306 = vsyncadd [#allocation3 + $0x4], 16  ;;  %s307_s17 = sadd.s32 5, %s755_s0 }
  0x44   : > { %s308_s18 = sld [smem:[#allocation5 + %s307_s17]] }
  0x4a   : > { %s309_s22 = scalar_lea.vmem %s800_s1, %s308_s18 }
  0x4b   : > { %v330_v5 = vld [vmem:[%s309_s22] sm:$0x1] }
  0x4c   : > { %331 = vst [vmem:[#allocation2 + $0x5] sm:$0x1] %v330_v5 }
  0x4d   : > { %357 = vsyncadd [#allocation3 + $0x5], 16  ;;  %s358_s23 = sadd.s32 6, %s755_s0 }
  0x4e   : > { %s359_s24 = sld [smem:[#allocation5 + %s358_s23]] }
  0x54   : > { %s360_s27 = scalar_lea.vmem %s800_s1, %s359_s24 }
  0x55   : > { %v381_v6 = vld [vmem:[%s360_s27] sm:$0x1] }
  0x56   : > { %382 = vst [vmem:[#allocation2 + $0x6] sm:$0x1] %v381_v6 }
  0x57   : > { %408 = vsyncadd [#allocation3 + $0x6], 16  ;;  %s409_s28 = sadd.s32 7, %s755_s0 }
  0x58   : > { %s410_s29 = sld [smem:[#allocation5 + %s409_s28]] }
  0x5e   : > { %s411_s4 = scalar_lea.vmem %s800_s1, %s410_s29 }
  0x5f   : > { %v432_v7 = vld [vmem:[%s411_s4] sm:$0x1] }
  0x60   : > { %433 = vst [vmem:[#allocation2 + $0x7] sm:$0x1] %v432_v7 }
  0x61   : > { %459 = vsyncadd [#allocation3 + $0x7], 16 }
  0x62   : > { %708 = dma.done.wait [#allocation3], 16 }
  0x63   : > { %709 = vsyncadd [#allocation3], 4294967280 }
  0x64   : > { %710 = dma.done.wait [#allocation3 + $0x1], 16 }
  0x65   : > { %711 = vsyncadd [#allocation3 + $0x1], 4294967280 }
  0x66   : > { %712 = dma.done.wait [#allocation3 + $0x2], 16 }
  0x67   : > { %713 = vsyncadd [#allocation3 + $0x2], 4294967280 }
  0x68   : > { %714 = dma.done.wait [#allocation3 + $0x3], 16 }
  0x69   : > { %715 = vsyncadd [#allocation3 + $0x3], 4294967280 }
  0x6a   : > { %716 = dma.done.wait [#allocation3 + $0x4], 16 }
  0x6b   : > { %717 = vsyncadd [#allocation3 + $0x4], 4294967280 }
  0x6c   : > { %718 = dma.done.wait [#allocation3 + $0x5], 16 }
  0x6d   : > { %719 = vsyncadd [#allocation3 + $0x5], 4294967280 }
  0x6e   : > { %720 = dma.done.wait [#allocation3 + $0x6], 16 }
  0x6f   : > { %721 = vsyncadd [#allocation3 + $0x6], 4294967280 }
  0x70   : > { %722 = dma.done.wait [#allocation3 + $0x7], 16 }
  0x71   : > { %723 = vsyncadd [#allocation3 + $0x7], 4294967280  ;;  %v477_v8 = vld [vmem:[#allocation2] sm:$0xff] }
  0x72   : > { %478 = vst [vmem:[%s762_s20] sm:$0xff] %v477_v8 }
  0x73 PF: > { %s18_s14 = sadd.s32 1, %s726_s14  }
  0x74   : > { %p15_p7 = scmp.ge.s32.totalorder %s18_s14, 9  }
  0x76   :  { %17 = sbr.rel (!%p15_p7) target bundleno = 16 (0x10), region = 388 }
  0x7b   :  { %498 = vsyncmov [#allocation3] }
  0x7e   :  { %s499_s0 = vpop.sfrf %498 }
  0x7f   :  { %p673_p8 = scmp.ne.s32.totalorder %s499_s0, 0 }
  0x81   :  { %503 = shalt.err (%p673_p8)  }
  0x82   :  { %505 = vsyncmov [#allocation3 + $0x1] }
  0x85   :  { %s506_s5 = vpop.sfrf %505 }
  0x86   :  { %p674_p9 = scmp.ne.s32.totalorder %s506_s5, 0 }
  0x88   :  { %510 = shalt.err (%p674_p9)  }
  0x89   :  { %512 = vsyncmov [#allocation3 + $0x2] }
  0x8c   :  { %s513_s6 = vpop.sfrf %512 }
  0x8d   :  { %p675_p10 = scmp.ne.s32.totalorder %s513_s6, 0 }
  0x8f   :  { %517 = shalt.err (%p675_p10)  }
  0x90   :  { %519 = vsyncmov [#allocation3 + $0x3] }
  0x93   :  { %s520_s20 = vpop.sfrf %519 }
  0x94   :  { %p676_p11 = scmp.ne.s32.totalorder %s520_s20, 0 }
  0x96   :  { %524 = shalt.err (%p676_p11)  }
  0x97   :  { %526 = vsyncmov [#allocation3 + $0x4] }
  0x9a   :  { %s527_s7 = vpop.sfrf %526 }
  0x9b   :  { %p677_p12 = scmp.ne.s32.totalorder %s527_s7, 0 }
  0x9d   :  { %531 = shalt.err (%p677_p12)  }
  0x9e   :  { %533 = vsyncmov [#allocation3 + $0x5] }
  0xa1   :  { %s534_s1 = vpop.sfrf %533 }
  0xa2   :  { %p678_p13 = scmp.ne.s32.totalorder %s534_s1, 0 }
  0xa4   :  { %538 = shalt.err (%p678_p13)  }
  0xa5   :  { %540 = vsyncmov [#allocation3 + $0x6] }
  0xa8   :  { %s541_s2 = vpop.sfrf %540 }
  0xa9   :  { %p679_p0 = scmp.ne.s32.totalorder %s541_s2, 0 }
  0xab   :  { %545 = shalt.err (%p679_p0)  }
  0xac   :  { %547 = vsyncmov [#allocation3 + $0x7] }
  0xaf   :  { %s548_s14 = vpop.sfrf %547 }
  0xb0   :  { %p680_p1 = scmp.ne.s32.totalorder %s548_s14, 0 }
  0xb2   :  { %552 = shalt.err (%p680_p1)  }

// kernel: stage2_forward.15
= control target key start
LH: loop header
LB: loop body
LE: loop exit
PB: predicated region body
PF: predicated region fallthrough
CT: control target
= control target key end

     0   :  { %v504_v1 = vmov 0   ;;  %v61_v45 = vlaneseq  ;;  %s792_s1 = inlined_call_operand.vmem [shape: bf16[128,512], index: 1, kind: input, shape index: {}]   ;;  %s793_s0 = inlined_call_operand.vmem [shape: f32[64,128], index: 0, kind: input, shape index: {}]   ;;  %s794_s2 = inlined_call_operand.vmem [shape: f32[1,512], index: 2, kind: input, shape index: {}]   ;;  %s795_s3 = inlined_call_operand.vmem [shape: f32[64,512], index: 3, kind: output, shape index: {}]  }
   0x1   :  { %v456_v0 = vld [vmem:[%s792_s1 + $0xe4] ss:$16 sps:$4 sm:$0xff]   ;;  %273 = vmatprep.mubr.bf16.mxu0 %v504_v1  ;;  %346 = vmatprep.mubr.bf16.mxu1 %v504_v1  ;;  %v458_v2 = vld [vmem:[%s792_s1 + $0xec] ss:$16 sps:$4 sm:$0xff]   ;;  %v460_v3 = vld [vmem:[%s792_s1 + $0xe0] ss:$16 sps:$4 sm:$0xff]  }
   0x2   :  { %241 = vmatprep.subr.bf16.mxu0 %v456_v0  ;;  %v461_v4 = vld [vmem:[%s792_s1 + $0xe8] ss:$16 sps:$4 sm:$0xff]   ;;  %314 = vmatprep.subr.bf16.mxu1 %v458_v2  ;;  %v462_v5 = vld [vmem:[%s792_s1 + $0xc4] ss:$16 sps:$4 sm:$0xff]   ;;  %v464_v6 = vld [vmem:[%s792_s1 + $0xcc] ss:$16 sps:$4 sm:$0xff]  }
   0x3   :  { %242 = vmatpush1.bf16.msra.mxu0 %v460_v3  ;;  %315 = vmatpush1.bf16.msra.mxu1 %v461_v4  ;;  %v466_v7 = vld [vmem:[%s792_s1 + $0xc0] ss:$16 sps:$4 sm:$0xff]   ;;  %v467_v8 = vld [vmem:[%s792_s1 + $0xc8] ss:$16 sps:$4 sm:$0xff]   ;;  %v468_v9 = vld [vmem:[%s792_s1 + $0xa4] ss:$16 sps:$4 sm:$0xff]  }
   0x4   :  { %243 = vmatprep.subr.bf16.mxu0 %v462_v5  ;;  %316 = vmatprep.subr.bf16.mxu1 %v464_v6  ;;  %v470_v10 = vld [vmem:[%s792_s1 + $0xac] ss:$16 sps:$4 sm:$0xff]   ;;  %v472_v11 = vld [vmem:[%s792_s1 + $0xa0] ss:$16 sps:$4 sm:$0xff]   ;;  %v473_v12 = vld [vmem:[%s792_s1 + $0xa8] ss:$16 sps:$4 sm:$0xff]  }
   0x5   :  { %v474_v13 = vld [vmem:[%s792_s1 + $0x84] ss:$16 sps:$4 sm:$0xff]   ;;  %v476_v14 = vld [vmem:[%s792_s1 + $0x8c] ss:$16 sps:$4 sm:$0xff]   ;;  %v478_v15 = vld [vmem:[%s792_s1 + $0x80] ss:$16 sps:$4 sm:$0xff]  }
   0x6   :  { %v479_v16 = vld [vmem:[%s792_s1 + $0x88] ss:$16 sps:$4 sm:$0xff]   ;;  %v480_v17 = vld [vmem:[%s792_s1 + $0x64] ss:$16 sps:$4 sm:$0xff]   ;;  %v482_v18 = vld [vmem:[%s792_s1 + $0x6c] ss:$16 sps:$4 sm:$0xff]  }
   0x7   :  { %244 = vmatpush1.bf16.msra.mxu0 %v466_v7  ;;  %317 = vmatpush1.bf16.msra.mxu1 %v467_v8  ;;  %v484_v19 = vld [vmem:[%s792_s1 + $0x60] ss:$16 sps:$4 sm:$0xff]   ;;  %v485_v20 = vld [vmem:[%s792_s1 + $0x68] ss:$16 sps:$4 sm:$0xff]   ;;  %v486_v21 = vld [vmem:[%s792_s1 + $0x44] ss:$16 sps:$4 sm:$0xff]  }
   0x8   :  { %245 = vmatprep.subr.bf16.mxu0 %v468_v9  ;;  %318 = vmatprep.subr.bf16.mxu1 %v470_v10  ;;  %v488_v22 = vld [vmem:[%s792_s1 + $0x4c] ss:$16 sps:$4 sm:$0xff]   ;;  %v490_v23 = vld [vmem:[%s792_s1 + $0x40] ss:$16 sps:$4 sm:$0xff]   ;;  %v491_v24 = vld [vmem:[%s792_s1 + $0x48] ss:$16 sps:$4 sm:$0xff]  }
   0x9   :  { %v492_v25 = vld [vmem:[%s792_s1 + $0x24] ss:$16 sps:$4 sm:$0xff]   ;;  %v494_v26 = vld [vmem:[%s792_s1 + $0x2c] ss:$16 sps:$4 sm:$0xff]   ;;  %v496_v27 = vld [vmem:[%s792_s1 + $0x20] ss:$16 sps:$4 sm:$0xff]  }
   0xa   :  { %v497_v28 = vld [vmem:[%s792_s1 + $0x28] ss:$16 sps:$4 sm:$0xff]   ;;  %v498_v29 = vld [vmem:[%s792_s1 + $0x4] ss:$16 sps:$4 sm:$0xff]   ;;  %v500_v30 = vld [vmem:[%s792_s1 + $0xc] ss:$16 sps:$4 sm:$0xff]  }
   0xb   :  { %246 = vmatpush1.bf16.msra.mxu0 %v472_v11  ;;  %319 = vmatpush1.bf16.msra.mxu1 %v473_v12  ;;  %v502_v31 = vld [vmem:[%s792_s1] ss:$16 sps:$4 sm:$0xff]   ;;  %v503_v32 = vld [vmem:[%s792_s1 + $0x8] ss:$16 sps:$4 sm:$0xff]   ;;  %v62_v46 = vshrl.u32 %v61_v45, 7 }
   0xc   :  { %247 = vmatprep.subr.bf16.mxu0 %v474_v13  ;;  %320 = vmatprep.subr.bf16.mxu1 %v476_v14  ;;  %v15_v33 = vld [vmem:[%s793_s0] sm:$0xff]  ;;  %v16_v34 = vld [vmem:[%s793_s0 + $0x8] sm:$0xff]  ;;  %v17_v36 = vld [vmem:[%s793_s0 + $0x10] sm:$0xff] }
   0xd   :  { %v23_v35 = vpack.c.bf16 %v16_v34, %v15_v33  ;;  %v18_v37 = vld [vmem:[%s793_s0 + $0x18] sm:$0xff]  ;;  %v19_v39 = vld [vmem:[%s793_s0 + $0x20] sm:$0xff]  ;;  %v20_v40 = vld [vmem:[%s793_s0 + $0x28] sm:$0xff]  ;;  %v63_v47 = vsub.s32 0, %v62_v46  ;;  %v71_v48 = vsub.s32 2, %v62_v46  ;;  %v67_v50 = vsub.s32 1, %v62_v46 }
   0xe   :  { %v24_v38 = vpack.c.bf16 %v18_v37, %v17_v36  ;;  %v25_v41 = vpack.c.bf16 %v20_v40, %v19_v39  ;;  %v21_v42 = vld [vmem:[%s793_s0 + $0x30] sm:$0xff]  ;;  %v22_v43 = vld [vmem:[%s793_s0 + $0x38] sm:$0xff]  ;;  %v59_v49 = vld [vmem:[%s794_s2] sm:$0xf]  ;;  %v75_v51 = vsub.s32 3, %v62_v46 }
   0xf   :  { %248 = vmatpush1.bf16.msra.mxu0 %v478_v15  ;;  %321 = vmatpush1.bf16.msra.mxu1 %v479_v16  ;;  %v26_v44 = vpack.c.bf16 %v22_v43, %v21_v42  ;;  %v656_v52 = vrot.slane %v59_v49, %v63_v47  ;;  %v658_v53 = vrot.slane %v59_v49, %v71_v48 }
  0x10   :  { %249 = vmatprep.subr.bf16.mxu0 %v480_v17  ;;  %322 = vmatprep.subr.bf16.mxu1 %v482_v18  ;;  %v660_v54 = vrot.slane %v59_v49, %v67_v50  ;;  %v662_v55 = vrot.slane %v59_v49, %v75_v51 }
  0x13   :  { %250 = vmatpush1.bf16.msra.mxu0 %v484_v19  ;;  %323 = vmatpush1.bf16.msra.mxu1 %v485_v20 }
  0x14   :  { %251 = vmatprep.subr.bf16.mxu0 %v486_v21  ;;  %324 = vmatprep.subr.bf16.mxu1 %v488_v22 }
  0x17   :  { %252 = vmatpush1.bf16.msra.mxu0 %v490_v23  ;;  %325 = vmatpush1.bf16.msra.mxu1 %v491_v24 }
  0x18   :  { %253 = vmatprep.subr.bf16.mxu0 %v492_v25  ;;  %326 = vmatprep.subr.bf16.mxu1 %v494_v26 }
  0x1b   :  { %254 = vmatpush1.bf16.msra.mxu0 %v496_v27  ;;  %327 = vmatpush1.bf16.msra.mxu1 %v497_v28 }
  0x1c   :  { %255 = vmatprep.subr.bf16.mxu0 %v498_v29  ;;  %328 = vmatprep.subr.bf16.mxu1 %v500_v30 }
  0x1f   :  { %256 = vmatpush1.bf16.msra.mxu0 %v502_v31  ;;  %329 = vmatpush1.bf16.msra.mxu1 %v503_v32 }
  0x22   :  { %274 = vmatmul.mubr.bf16.vlgmr.msra.gmra.mxu0 %v23_v35  ;;  %347 = vmatmul.mubr.bf16.vlgmr.msra.gmra.mxu1 %v23_v35 }
  0x23   :  { %283 = vmatprep.mubr.bf16.mxu0 %v504_v1  ;;  %356 = vmatprep.mubr.bf16.mxu1 %v504_v1 }
  0x2a   :  { %284 = vmatmul.mubr.bf16.gmra.mxu0 %v24_v38  ;;  %357 = vmatmul.mubr.bf16.gmra.mxu1 %v24_v38 }
  0x2b   :  { %293 = vmatprep.mubr.bf16.mxu0 %v504_v1  ;;  %366 = vmatprep.mubr.bf16.mxu1 %v504_v1 }
  0x32   :  { %294 = vmatmul.mubr.bf16.gmra.mxu0 %v25_v41  ;;  %367 = vmatmul.mubr.bf16.gmra.mxu1 %v25_v41 }
  0x33   :  { %303 = vmatprep.mubr.bf16.mxu0 %v504_v1  ;;  %376 = vmatprep.mubr.bf16.mxu1 %v504_v1 }
  0x3a   :  { %304 = vmatmul.mubr.bf16.gmra.mxu0 %v26_v44  ;;  %377 = vmatmul.mubr.bf16.gmra.mxu1 %v26_v44 }
  0xe2   :  { %v275_v56 = vpop.f32.mrf.mxu0  ;;  %v348_v57 = vpop.f32.mrf.mxu1 }
  0xe3   :  { %v276_v58 = vadd.f32 %v275_v56, %v656_v52  ;;  %v349_v59 = vadd.f32 %v348_v57, %v658_v53 }
  0xe4   :  { %v277_v60 = vpop.f32.mrf.mxu0  ;;  %v350_v61 = vpop.f32.mrf.mxu1 }
  0xe5   :  { %387 = vst [vmem:[%s795_s3] sm:$0xff] %v276_v58  ;;  %389 = vst [vmem:[%s795_s3 + $0x10] sm:$0xff] %v349_v59  ;;  %v278_v62 = vadd.f32 %v277_v60, %v660_v54  ;;  %v351_v63 = vadd.f32 %v350_v61, %v662_v55 }
  0xe6   :  { %v279_v0 = vpop.f32.mrf.mxu0  ;;  %v352_v1 = vpop.f32.mrf.mxu1 }
  0xe7   :  { %388 = vst [vmem:[%s795_s3 + $0x8] sm:$0xff] %v278_v62  ;;  %390 = vst [vmem:[%s795_s3 + $0x18] sm:$0xff] %v351_v63  ;;  %v280_v2 = vadd.f32 %v279_v0, %v656_v52  ;;  %v353_v3 = vadd.f32 %v352_v1, %v658_v53 }
  0xe8   :  { %v281_v4 = vpop.f32.mrf.mxu0  ;;  %v354_v5 = vpop.f32.mrf.mxu1 }
  0xe9   :  { %391 = vst [vmem:[%s795_s3 + $0x20] sm:$0xff] %v280_v2  ;;  %393 = vst [vmem:[%s795_s3 + $0x30] sm:$0xff] %v353_v3  ;;  %v282_v6 = vadd.f32 %v281_v4, %v660_v54  ;;  %v355_v7 = vadd.f32 %v354_v5, %v662_v55 }
  0xea   :  { %v285_v8 = vpop.f32.mrf.mxu0  ;;  %v358_v9 = vpop.f32.mrf.mxu1 }
  0xeb   :  { %392 = vst [vmem:[%s795_s3 + $0x28] sm:$0xff] %v282_v6  ;;  %394 = vst [vmem:[%s795_s3 + $0x38] sm:$0xff] %v355_v7  ;;  %v286_v10 = vadd.f32 %v285_v8, %v656_v52  ;;  %v359_v11 = vadd.f32 %v358_v9, %v658_v53 }
  0xec   :  { %v287_v12 = vpop.f32.mrf.mxu0  ;;  %v360_v13 = vpop.f32.mrf.mxu1 }
  0xed   :  { %395 = vst [vmem:[%s795_s3 + $0x40] sm:$0xff] %v286_v10  ;;  %397 = vst [vmem:[%s795_s3 + $0x50] sm:$0xff] %v359_v11  ;;  %v288_v14 = vadd.f32 %v287_v12, %v660_v54  ;;  %v361_v15 = vadd.f32 %v360_v13, %v662_v55 }
  0xee   :  { %v289_v16 = vpop.f32.mrf.mxu0  ;;  %v362_v17 = vpop.f32.mrf.mxu1 }
  0xef   :  { %396 = vst [vmem:[%s795_s3 + $0x48] sm:$0xff] %v288_v14  ;;  %398 = vst [vmem:[%s795_s3 + $0x58] sm:$0xff] %v361_v15  ;;  %v290_v18 = vadd.f32 %v289_v16, %v656_v52  ;;  %v363_v19 = vadd.f32 %v362_v17, %v658_v53 }
  0xf0   :  { %v291_v20 = vpop.f32.mrf.mxu0  ;;  %v364_v21 = vpop.f32.mrf.mxu1 }
  0xf1   :  { %399 = vst [vmem:[%s795_s3 + $0x60] sm:$0xff] %v290_v18  ;;  %401 = vst [vmem:[%s795_s3 + $0x70] sm:$0xff] %v363_v19  ;;  %v292_v22 = vadd.f32 %v291_v20, %v660_v54  ;;  %v365_v23 = vadd.f32 %v364_v21, %v662_v55 }
  0xf2   :  { %v295_v24 = vpop.f32.mrf.mxu0  ;;  %v368_v25 = vpop.f32.mrf.mxu1 }
  0xf3   :  { %400 = vst [vmem:[%s795_s3 + $0x68] sm:$0xff] %v292_v22  ;;  %402 = vst [vmem:[%s795_s3 + $0x78] sm:$0xff] %v365_v23  ;;  %v296_v26 = vadd.f32 %v295_v24, %v656_v52  ;;  %v369_v27 = vadd.f32 %v368_v25, %v658_v53 }
  0xf4   :  { %v297_v28 = vpop.f32.mrf.mxu0  ;;  %v370_v29 = vpop.f32.mrf.mxu1 }
  0xf5   :  { %403 = vst [vmem:[%s795_s3 + $0x80] sm:$0xff] %v296_v26  ;;  %405 = vst [vmem:[%s795_s3 + $0x90] sm:$0xff] %v369_v27  ;;  %v298_v30 = vadd.f32 %v297_v28, %v660_v54  ;;  %v371_v31 = vadd.f32 %v370_v29, %v662_v55 }
  0xf6   :  { %v299_v32 = vpop.f32.mrf.mxu0  ;;  %v372_v33 = vpop.f32.mrf.mxu1 }
  0xf7   :  { %404 = vst [vmem:[%s795_s3 + $0x88] sm:$0xff] %v298_v30  ;;  %406 = vst [vmem:[%s795_s3 + $0x98] sm:$0xff] %v371_v31  ;;  %v300_v34 = vadd.f32 %v299_v32, %v656_v52  ;;  %v373_v35 = vadd.f32 %v372_v33, %v658_v53 }
  0xf8   :  { %v301_v36 = vpop.f32.mrf.mxu0  ;;  %v374_v37 = vpop.f32.mrf.mxu1 }
  0xf9   :  { %407 = vst [vmem:[%s795_s3 + $0xa0] sm:$0xff] %v300_v34  ;;  %409 = vst [vmem:[%s795_s3 + $0xb0] sm:$0xff] %v373_v35  ;;  %v302_v38 = vadd.f32 %v301_v36, %v660_v54  ;;  %v375_v39 = vadd.f32 %v374_v37, %v662_v55 }
  0xfa   :  { %v305_v40 = vpop.f32.mrf.mxu0  ;;  %v378_v41 = vpop.f32.mrf.mxu1 }
  0xfb   :  { %408 = vst [vmem:[%s795_s3 + $0xa8] sm:$0xff] %v302_v38  ;;  %410 = vst [vmem:[%s795_s3 + $0xb8] sm:$0xff] %v375_v39  ;;  %v306_v42 = vadd.f32 %v305_v40, %v656_v52  ;;  %v379_v43 = vadd.f32 %v378_v41, %v658_v53 }
  0xfc   :  { %v307_v44 = vpop.f32.mrf.mxu0  ;;  %v380_v45 = vpop.f32.mrf.mxu1 }
  0xfd   :  { %411 = vst [vmem:[%s795_s3 + $0xc0] sm:$0xff] %v306_v42  ;;  %413 = vst [vmem:[%s795_s3 + $0xd0] sm:$0xff] %v379_v43  ;;  %v308_v46 = vadd.f32 %v307_v44, %v660_v54  ;;  %v381_v47 = vadd.f32 %v380_v45, %v662_v55 }
  0xfe   :  { %v309_v48 = vpop.f32.mrf.mxu0  ;;  %v382_v49 = vpop.f32.mrf.mxu1 }
  0xff   :  { %412 = vst [vmem:[%s795_s3 + $0xc8] sm:$0xff] %v308_v46  ;;  %414 = vst [vmem:[%s795_s3 + $0xd8] sm:$0xff] %v381_v47  ;;  %v310_v50 = vadd.f32 %v309_v48, %v656_v52  ;;  %v383_v51 = vadd.f32 %v382_v49, %v658_v53 }
 0x100   :  { %v311_v56 = vpop.f32.mrf.mxu0  ;;  %v384_v57 = vpop.f32.mrf.mxu1 }
 0x101   :  { %415 = vst [vmem:[%s795_s3 + $0xe0] sm:$0xff] %v310_v50  ;;  %417 = vst [vmem:[%s795_s3 + $0xf0] sm:$0xff] %v383_v51  ;;  %v312_v58 = vadd.f32 %v311_v56, %v660_v54  ;;  %v385_v59 = vadd.f32 %v384_v57, %v662_v55 }
 0x103   :  { %416 = vst [vmem:[%s795_s3 + $0xe8] sm:$0xff] %v312_v58  ;;  %418 = vst [vmem:[%s795_s3 + $0xf8] sm:$0xff] %v385_v59 }

// kernel: stage2_forward.17
= control target key start
LH: loop header
LB: loop body
LE: loop exit
PB: predicated region body
PF: predicated region fallthrough
CT: control target
= control target key end

     0   :  { %s339_s1 = inlined_call_operand.vmem [shape: bf16[128,128], index: 1, kind: input, shape index: {}]   ;;  %s340_s0 = inlined_call_operand.vmem [shape: f32[64,128], index: 0, kind: input, shape index: {}]   ;;  %s341_s2 = inlined_call_operand.vmem [shape: f32[1,128], index: 2, kind: input, shape index: {}]   ;;  %s342_s3 = inlined_call_operand.vmem [shape: f32[64,128], index: 3, kind: output, shape index: {}]  }
   0x1   :  { %v236_v0 = vld [vmem:[%s339_s1 + $0x38] sm:$0xff]   ;;  %v237_v1 = vld [vmem:[%s339_s1 + $0x30] sm:$0xff]   ;;  %v238_v2 = vld [vmem:[%s339_s1 + $0x28] sm:$0xff]  }
   0x2   :  { %196 = vmatprep.subr.bf16.mxu0 %v236_v0  ;;  %220 = vmatprep.subr.bf16.mxu1 %v236_v0  ;;  %v239_v3 = vld [vmem:[%s339_s1 + $0x20] sm:$0xff]   ;;  %v16_v5 = vld [vmem:[%s340_s0 + $0x8] sm:$0xff]  ;;  %v240_v10 = vld [vmem:[%s339_s1 + $0x18] sm:$0xff]  }
   0x3   :  { %197 = vmatpush3.bf16.msra.mxu0 %v236_v0  ;;  %228 = vmatpush3.bf16.msra.mxu1 %v236_v0  ;;  %v15_v4 = vld [vmem:[%s340_s0] sm:$0xff]  ;;  %v20_v8 = vld [vmem:[%s340_s0 + $0x28] sm:$0xff]  ;;  %v241_v11 = vld [vmem:[%s339_s1 + $0x10] sm:$0xff]  }
   0x4   :  { %198 = vmatprep.subr.bf16.mxu0 %v237_v1  ;;  %221 = vmatprep.subr.bf16.mxu1 %v237_v1  ;;  %v19_v6 = vld [vmem:[%s340_s0 + $0x20] sm:$0xff]  ;;  %v23_v7 = vpack.c.bf16 %v16_v5, %v15_v4  ;;  %v242_v12 = vld [vmem:[%s339_s1 + $0x8] sm:$0xff]   ;;  %v17_v14 = vld [vmem:[%s340_s0 + $0x10] sm:$0xff] }
   0x5   :  { %v25_v9 = vpack.c.bf16 %v20_v8, %v19_v6  ;;  %v243_v13 = vld [vmem:[%s339_s1] sm:$0xff]   ;;  %v18_v15 = vld [vmem:[%s340_s0 + $0x18] sm:$0xff]  ;;  %v21_v16 = vld [vmem:[%s340_s0 + $0x30] sm:$0xff] }
   0x6   :  { %212 = vmatprep.mubr.bf16.mxu0 %v23_v7  ;;  %v22_v17 = vld [vmem:[%s340_s0 + $0x38] sm:$0xff]  ;;  %v24_v18 = vpack.c.bf16 %v18_v15, %v17_v14  ;;  %v175_v20 = vld [vmem:[%s341_s2] ss:$0 sm:$0xff] }
   0x7   :  { %199 = vmatpush3.bf16.msra.mxu0 %v237_v1  ;;  %229 = vmatpush3.bf16.msra.mxu1 %v237_v1  ;;  %v26_v19 = vpack.c.bf16 %v22_v17, %v21_v16 }
   0x8   :  { %200 = vmatprep.subr.bf16.mxu0 %v238_v2  ;;  %222 = vmatprep.subr.bf16.mxu1 %v238_v2 }
   0x9   :  { %216 = vmatprep.mubr.bf16.mxu1 %v25_v9 }
   0xb   :  { %201 = vmatpush3.bf16.msra.mxu0 %v238_v2  ;;  %230 = vmatpush3.bf16.msra.mxu1 %v238_v2 }
   0xc   :  { %202 = vmatprep.subr.bf16.mxu0 %v239_v3  ;;  %223 = vmatprep.subr.bf16.mxu1 %v239_v3 }
   0xf   :  { %203 = vmatpush3.bf16.msra.mxu0 %v239_v3  ;;  %231 = vmatpush3.bf16.msra.mxu1 %v239_v3 }
  0x10   :  { %204 = vmatprep.subr.bf16.mxu0 %v240_v10  ;;  %224 = vmatprep.subr.bf16.mxu1 %v240_v10 }
  0x13   :  { %205 = vmatpush3.bf16.msra.mxu0 %v240_v10  ;;  %232 = vmatpush3.bf16.msra.mxu1 %v240_v10 }
  0x14   :  { %206 = vmatprep.subr.bf16.mxu0 %v241_v11  ;;  %225 = vmatprep.subr.bf16.mxu1 %v241_v11 }
  0x17   :  { %207 = vmatpush3.bf16.msra.mxu0 %v241_v11  ;;  %233 = vmatpush3.bf16.msra.mxu1 %v241_v11 }
  0x18   :  { %208 = vmatprep.subr.bf16.mxu0 %v242_v12  ;;  %226 = vmatprep.subr.bf16.mxu1 %v242_v12 }
  0x1b   :  { %209 = vmatpush3.bf16.msra.mxu0 %v242_v12  ;;  %234 = vmatpush3.bf16.msra.mxu1 %v242_v12 }
  0x1c   :  { %210 = vmatprep.subr.bf16.mxu0 %v243_v13  ;;  %227 = vmatprep.subr.bf16.mxu1 %v243_v13 }
  0x1f   :  { %211 = vmatpush3.bf16.msra.mxu0 %v243_v13  ;;  %235 = vmatpush3.bf16.msra.mxu1 %v243_v13 }
  0x22   :  { %213 = vmatmul.mubr.bf16.vlgmr.msra.gmra.mxu0 %v24_v18  ;;  %217 = vmatmul.mubr.bf16.vlgmr.msra.gmra.mxu1 %v26_v19 }
  0xe2   :  { %v214_v21 = vpop.f32.mrf.mxu0  ;;  %v218_v22 = vpop.f32.mrf.mxu1 }
  0xe3   :  { %v141_v23 = vadd.f32 %v214_v21, %v175_v20  ;;  %v157_v24 = vadd.f32 %v218_v22, %v175_v20 }
  0xe4   :  { %v132_v25 = vpop.f32.mrf.mxu0  ;;  %v148_v26 = vpop.f32.mrf.mxu1 }
  0xe5   :  { %165 = vst [vmem:[%s342_s3 + $0x10] sm:$0xff] %v141_v23  ;;  %169 = vst [vmem:[%s342_s3 + $0x30] sm:$0xff] %v157_v24  ;;  %v133_v27 = vadd.f32 %v175_v20, %v132_v25  ;;  %v149_v28 = vadd.f32 %v175_v20, %v148_v26 }
  0xe6   :  { %v215_v29 = vpop.f32.mrf.mxu0  ;;  %v219_v30 = vpop.f32.mrf.mxu1 }
  0xe7   :  { %163 = vst [vmem:[%s342_s3] sm:$0xff] %v133_v27  ;;  %167 = vst [vmem:[%s342_s3 + $0x20] sm:$0xff] %v149_v28  ;;  %v144_v31 = vadd.f32 %v215_v29, %v175_v20  ;;  %v160_v32 = vadd.f32 %v219_v30, %v175_v20 }
  0xe8   :  { %v135_v33 = vpop.f32.mrf.mxu0  ;;  %v151_v34 = vpop.f32.mrf.mxu1 }
  0xe9   :  { %166 = vst [vmem:[%s342_s3 + $0x18] sm:$0xff] %v144_v31  ;;  %170 = vst [vmem:[%s342_s3 + $0x38] sm:$0xff] %v160_v32  ;;  %v136_v35 = vadd.f32 %v175_v20, %v135_v33  ;;  %v152_v36 = vadd.f32 %v175_v20, %v151_v34 }
  0xeb   :  { %164 = vst [vmem:[%s342_s3 + $0x8] sm:$0xff] %v136_v35  ;;  %168 = vst [vmem:[%s342_s3 + $0x28] sm:$0xff] %v152_v36 }

// kernel: stage2_forward.19
= control target key start
LH: loop header
LB: loop body
LE: loop exit
PB: predicated region body
PF: predicated region fallthrough
CT: control target
= control target key end

     0   :  { %s1015_s0 = inlined_call_operand.vmem [shape: s32[8], index: 0, kind: input, shape index: {}]   ;;  %s1016_s1 = inlined_call_operand.vmem [shape: f32[8,8,128], index: 1, kind: input, shape index: {}]   ;;  %s1017_s2 = inlined_call_operand.vmem [shape: f32[8,16,128], index: 2, kind: input, shape index: {}]   ;;  %s1018_s3 = inlined_call_operand.vmem [shape: f32[8,16,128], index: 3, kind: input, shape index: {}]   ;;  %s1019_s4 = inlined_call_operand.vmem [shape: f32[1,128], index: 4, kind: input, shape index: {}]   ;;  %s1020_s5 = inlined_call_operand.vmem [shape: f32[8,8,128], index: 5, kind: output, shape index: {}]  }
   0x1   :  { %s10_s20 = sshll.u32 %s1015_s0, 4  ;;  %s11_s20 = int_to_ptr.vmem [resolvable:$true] %s10_s20 }
   0x2   :  { %s811_s21 = scalar_lea.vmem %s11_s20, 16  ;;  %p816_p1 = scmp.lt.s32.totalorder %s11_s20, %s11_s20 }
   0x3   :  { %p812_p0 = scmp.ne.s32.totalorder %s11_s20, %s811_s21  ;;  %p817_p2 = scmp.lt.s32.totalorder %s811_s21, %s811_s21 }
   0x5   :  { %p818_p3 = por %p817_p2, %p816_p1 }
   0x7   :  { %p819_p4 = pnand %p818_p3, %p812_p0 }
   0x9   :  { %822 = shalt.err (!%p819_p4)  }
   0xa   :  { %s849_s22 = smov [#allocation3]  }
   0xb   :  { %13 = dma.vmem_to_smem %s11_s20, 16, %s849_s22, [#allocation2] }
   0xc   :  { %835 = dma.done.wait [#allocation2], 16 }
   0xd   :  { %836 = vsyncadd [#allocation2], 4294967280 }
   0xe   :  { %15 = sfence }
   0xf   :  { %s886_s23 = smov 0   ;;  %s888_s24 = smov 0  }
  0x10   :  { %s890_s25 = smov 0  }
  0x11 LB: > { %s33_s0 = sadd.s32 1, %s843_s24  ;;  %p725_p5 = scmp.ge.s32.totalorder %s847_s25, 1  ;;  %s847_s25 = sphi %s890_s25, %s21_s25   ;;  %s843_s24 = sphi %s888_s24, %s1022_s24   ;;  %s839_s23 = sphi %s886_s23, %s1021_s23  }
  0x12   : > { %p35_p6 = scmp.ge.s32.totalorder %s33_s0, 8  ;;  %p207_p7 = scmp.lt.s32.totalorder %s847_s25, 9 }
  0x14   : > { %s1024_s0 = smov (%p35_p6, %s33_s0), 0  ;;  %p208_p8 = pnand %p725_p5, %p207_p7 }
  0x15   : > { %p247_p9 = scmp.lt.s32.totalorder (!%p208_p8), %s839_s23, 7  ;;  %s452_s12 = sld [smem:[#allocation3 + %s839_s23]] (!%p208_p8) }
  0x16   : > { %211 = sbr.rel (%p208_p8) target bundleno = 744 (0x2e8), region = 36 }
  0x1b   : > { %v281_v0 = vlaneseq  ;;  %v850_v1 = vmov 1966171168   ;;  %s908_s26 = scalar_select %p247_p9, %s839_s23, 7  ;;  %v942_v40 = vld [vmem:[%s1019_s4] ss:$0 sm:$0xff]  ;;  %vm482_vm0 = vcmask 130112  }
  0x1c   : > { %v279_v2 = vunpack.c.l.s4 %v850_v1  ;;  %vm547_vm1 = vcmask 1041409   ;;  %vm549_vm2 = vcmask 1042434   ;;  %vm551_vm3 = vcmask 1043459  }
  0x1d   : > { %v910_v3 = vshrl.u32 %v281_v0, 7  ;;  %v912_v4 = vand.u32 127, %v281_v0  ;;  %s726_s27 = sshll.u32 %s908_s26, 3  ;;  %s736_s28 = sshll.u32 %s908_s26, 4  ;;  %vm553_vm4 = vcmask 1044484   ;;  %vm555_vm5 = vcmask 1045509  }
  0x1e   : > { %v280_v5 = vunpack.c.0.s8 %v279_v2  ;;  %s253_s6 = scalar_lea.vmem %s1016_s1, %s726_s27  ;;  %s258_s9 = scalar_lea.vmem %s1017_s2, %s736_s28  ;;  %vm557_vm6 = vcmask 1046534   ;;  %vm559_vm7 = vcmask 1047559   ;;  %vm563_vm9 = vcmask 130048  }
  0x1f   : > { %v918_v6 = vsub.s32 %v912_v4, %v910_v3  ;;  %v272_v8 = vld [vmem:[%s253_s6] sm:$0xff]  ;;  %v328_v10 = vsub.s32 0, %v910_v3  ;;  %v932_v16 = vld [vmem:[%s258_s9 + $0x8] sm:$0xff]  ;;  %s263_s15 = scalar_lea.vmem %s1018_s3, %s736_s28  ;;  %vm852_vm10 = vmmov 0   ;;  %s270_s18 = scalar_lea.vmem %s1020_s5, %s726_s27 }
  0x20   : > { %v283_v7 = vsub.s32 %v280_v5, %v910_v3  ;;  %v277_v11 = vcombine.high %v272_v8, %v272_v8  ;;  %v273_v15 = vld [vmem:[%s258_s9] sm:$0xff]  ;;  %v477_v5 = vadd.s32 4294967288, %v912_v4 }
  0x22   : > { %v284_v9 = vrot.slane %v272_v8, %v283_v7  ;;  %v291_v14 = vrot.slane %v277_v11, %v283_v7 }
  0x24   : > { %v300_v12 = vrot.slane %v284_v9, %v283_v7  ;;  %v292_v13 = vcombine.high %v284_v9, %v284_v9  ;;  %v307_v20 = vrot.slane %v291_v14, %v283_v7  ;;  %v293_v27 = vcombine.high %v291_v14, %v291_v14 }
  0x25   : > { %v958_v9 = vsub.s32 %v477_v5, %v910_v3 }
  0x26   : > { %v329_v17 = vrot.slane %v300_v12, %v328_v10  ;;  %v314_v18 = vrot.slane %v292_v13, %v283_v7  ;;  %v322_v19 = vcombine.high %v300_v12, %v300_v12  ;;  %v345_v25 = vrot.slane %v307_v20, %v328_v10 }
  0x27   : > { %v321_v34 = vrot.slane %v293_v27, %v283_v7  ;;  %v323_v36 = vcombine.high %v307_v20, %v307_v20 }
  0x28   : > { %v366_v21 = vadd.f32 %v329_v17, %v273_v15  ;;  %v333_v22 = vrot.slane %v314_v18, %v328_v10  ;;  %v367_v23 = vadd.f32 %v329_v17, %v932_v16  ;;  %v337_v24 = vrot.slane %v322_v19, %v328_v10 }
  0x29   : > { %v324_v26 = vcombine.high %v314_v18, %v314_v18  ;;  %v374_v32 = vadd.f32 %v345_v25, %v273_v15  ;;  %v375_v35 = vadd.f32 %v345_v25, %v932_v16  ;;  %v349_v38 = vrot.slane %v321_v34, %v328_v10 }
  0x2a   : > { %775 = vtanh.f32 %v366_v21  ;;  %v368_v28 = vadd.f32 %v333_v22, %v273_v15  ;;  %v369_v29 = vadd.f32 %v333_v22, %v932_v16  ;;  %v370_v30 = vadd.f32 %v337_v24, %v273_v15 }
  0x2b   : > { %777 = vtanh.f32 %v367_v23  ;;  %v371_v31 = vadd.f32 %v337_v24, %v932_v16  ;;  %v341_v33 = vrot.slane %v324_v26, %v328_v10  ;;  %v353_v41 = vrot.slane %v323_v36, %v328_v10 }
  0x2c   : > { %779 = vtanh.f32 %v368_v28  ;;  %v376_v42 = vadd.f32 %v349_v38, %v273_v15  ;;  %v325_v43 = vcombine.high %v321_v34, %v321_v34  ;;  %v377_v47 = vadd.f32 %v349_v38, %v932_v16 }
  0x2d   : > { %781 = vtanh.f32 %v369_v29  ;;  %v372_v37 = vadd.f32 %v341_v33, %v273_v15  ;;  %v373_v39 = vadd.f32 %v341_v33, %v932_v16  ;;  %v378_v49 = vadd.f32 %v353_v41, %v273_v15 }
  0x2e   : > { %783 = vtanh.f32 %v370_v30  ;;  %v357_v53 = vrot.slane %v325_v43, %v328_v10  ;;  %v379_v56 = vadd.f32 %v353_v41, %v932_v16 }
  0x2f   : > { %785 = vtanh.f32 %v371_v31 }
  0x30   : > { %787 = vtanh.f32 %v374_v32  ;;  %v380_v59 = vadd.f32 %v357_v53, %v273_v15  ;;  %v381_v62 = vadd.f32 %v357_v53, %v932_v16 }
  0x31   : > { %789 = vtanh.f32 %v375_v35 }
  0x32   : > { %791 = vtanh.f32 %v372_v37 }
  0x33   : > { %793 = vtanh.f32 %v373_v39 }
  0x34   : > { %795 = vtanh.f32 %v376_v42 }
  0x35   : > { %797 = vtanh.f32 %v377_v47 }
  0x36   : > { %799 = vtanh.f32 %v378_v49 }
  0x37   : > { %v776_v44 = vpop.eup %775  ;;  %801 = vtanh.f32 %v379_v56 }
  0x38   : > { %v778_v45 = vpop.eup %777  ;;  %v404_v46 = vmul.f32 %v776_v44, %v942_v40  ;;  %803 = vtanh.f32 %v380_v59 }
  0x39   : > { %v780_v48 = vpop.eup %779  ;;  %v405_v52 = vmul.f32 %v778_v45, %v942_v40  ;;  %805 = vtanh.f32 %v381_v62 }
  0x3a   : > { %v782_v50 = vpop.eup %781  ;;  %420 = vadd.xlane.f32.xlu0 %v404_v46  ;;  %v406_v51 = vmul.f32 %v780_v48, %v942_v40 }
  0x3b   : > { %v784_v54 = vpop.eup %783  ;;  %v407_v55 = vmul.f32 %v782_v50, %v942_v40 }
  0x3c   : > { %424 = vadd.xlane.f32.xlu1 %v406_v51  ;;  %v786_v57 = vpop.eup %785  ;;  %v408_v58 = vmul.f32 %v784_v54, %v942_v40 }
  0x3d   : > { %v788_v60 = vpop.eup %787  ;;  %v409_v61 = vmul.f32 %v786_v57, %v942_v40 }
  0x3e   : > { %422 = vadd.xlane.f32.xlu0 %v405_v52  ;;  %v790_v63 = vpop.eup %789  ;;  %v412_v0 = vmul.f32 %v788_v60, %v942_v40 }
  0x3f   : > { %v792_v1 = vpop.eup %791  ;;  %v413_v2 = vmul.f32 %v790_v63, %v942_v40 }
  0x40   : > { %426 = vadd.xlane.f32.xlu1 %v407_v55  ;;  %v794_v7 = vpop.eup %793  ;;  %v410_v8 = vmul.f32 %v792_v1, %v942_v40 }
  0x41   : > { %v796_v10 = vpop.eup %795  ;;  %v411_v11 = vmul.f32 %v794_v7, %v942_v40 }
  0x42   : > { %428 = vadd.xlane.f32.xlu0 %v408_v58  ;;  %v798_v12 = vpop.eup %797  ;;  %v414_v13 = vmul.f32 %v796_v10, %v942_v40 }
  0x43   : > { %v800_v14 = vpop.eup %799  ;;  %v415_v15 = vmul.f32 %v798_v12, %v942_v40 }
  0x44   : > { %430 = vadd.xlane.f32.xlu1 %v409_v61  ;;  %v802_v16 = vpop.eup %801  ;;  %v416_v17 = vmul.f32 %v800_v14, %v942_v40 }
  0x45   : > { %v804_v18 = vpop.eup %803  ;;  %v417_v3 = vmul.f32 %v802_v16, %v942_v40  ;;  %v577_v16 = vld [vmem:[%s263_s15 + $0x8] sm:$0xff] }
  0x46   : > { %436 = vadd.xlane.f32.xlu0 %v412_v0  ;;  %v806_v19 = vpop.eup %805  ;;  %v418_v20 = vmul.f32 %v804_v18, %v942_v40  ;;  %v455_v0 = vstv %s452_s12 }
  0x47   : > { %v419_v21 = vmul.f32 %v806_v19, %v942_v40  ;;  %vm456_vm8 = vcmp.ge.s32.totalorder %v912_v4, %v455_v0  ;;  %v851_v4 = vmov 0.0  }
  0x48   : > { %438 = vadd.xlane.f32.xlu1 %v413_v2  ;;  %740 = vmatprep.subr.bf16.mxu0 %v851_v4 }
  0x49   : > { %742 = vmatprep.mubr.msk.bf16.mxu0 %vm852_vm10, %v851_v4 }
  0x4a   : > { %432 = vadd.xlane.f32.xlu0 %v410_v8 }
  0x4c   : > { %434 = vadd.xlane.f32.xlu1 %v411_v11 }
  0x4e   : > { %440 = vadd.xlane.f32.xlu0 %v414_v13 }
  0x50   : > { %442 = vadd.xlane.f32.xlu1 %v415_v15 }
  0x52   : > { %444 = vadd.xlane.f32.xlu0 %v416_v17 }
  0x54   : > { %446 = vadd.xlane.f32.xlu1 %v417_v3 }
  0x56   : > { %448 = vadd.xlane.f32.xlu0 %v418_v20 }
  0x58   : > { %450 = vadd.xlane.f32.xlu1 %v419_v21 }
  0xc3   : > { %v421_v22 = vpop.xlane.xlu0 %420 }
  0xc4   : > { %v476_v25 = vrot.slane %v421_v22, %v918_v6 }
  0xc5   : > { %v425_v23 = vpop.xlane.xlu1 %424 }
  0xc6   : > { %v487_v28 = vrot.slane %v425_v23, %v918_v6 }
  0xc7   : > { %v423_v24 = vpop.xlane.xlu0 %422 }
  0xc8   : > { %v481_v26 = vrot.slane %v423_v24, %v958_v9 }
  0xc9   : > { %v427_v27 = vpop.xlane.xlu1 %426 }
  0xca   : > { %v483_v29 = vsel %vm482_vm0, %v481_v26, %v476_v25  ;;  %v491_v30 = vrot.slane %v427_v27, %v958_v9 }
  0xcb   : > { %v429_v31 = vpop.xlane.xlu0 %428 }
  0xcc   : > { %v492_v32 = vsel %vm482_vm0, %v491_v30, %v487_v28  ;;  %v496_v33 = vrot.slane %v429_v31, %v918_v6 }
  0xcd   : > { %v548_v34 = vsel %vm547_vm1, %v492_v32, %v483_v29  ;;  %v431_v35 = vpop.xlane.xlu1 %430 }
  0xce   : > { %v500_v36 = vrot.slane %v431_v35, %v958_v9 }
  0xcf   : > { %v437_v37 = vpop.xlane.xlu0 %436 }
  0xd0   : > { %v501_v38 = vsel %vm482_vm0, %v500_v36, %v496_v33  ;;  %v514_v39 = vrot.slane %v437_v37, %v918_v6 }
  0xd1   : > { %v550_v40 = vsel %vm549_vm2, %v501_v38, %v548_v34  ;;  %v439_v41 = vpop.xlane.xlu1 %438 }
  0xd2   : > { %v518_v42 = vrot.slane %v439_v41, %v958_v9 }
  0xd3   : > { %v433_v43 = vpop.xlane.xlu0 %432 }
  0xd4   : > { %v519_v44 = vsel %vm482_vm0, %v518_v42, %v514_v39  ;;  %v505_v45 = vrot.slane %v433_v43, %v918_v6 }
  0xd5   : > { %v435_v46 = vpop.xlane.xlu1 %434 }
  0xd6   : > { %v509_v47 = vrot.slane %v435_v46, %v958_v9 }
  0xd7   : > { %v441_v48 = vpop.xlane.xlu0 %440 }
  0xd8   : > { %v510_v49 = vsel %vm482_vm0, %v509_v47, %v505_v45  ;;  %v523_v50 = vrot.slane %v441_v48, %v918_v6 }
  0xd9   : > { %v552_v51 = vsel %vm551_vm3, %v510_v49, %v550_v40  ;;  %v443_v52 = vpop.xlane.xlu1 %442 }
  0xda   : > { %v527_v53 = vrot.slane %v443_v52, %v958_v9  ;;  %v554_v54 = vsel %vm553_vm4, %v519_v44, %v552_v51 }
  0xdb   : > { %v445_v55 = vpop.xlane.xlu0 %444 }
  0xdc   : > { %v528_v56 = vsel %vm482_vm0, %v527_v53, %v523_v50  ;;  %v532_v57 = vrot.slane %v445_v55, %v918_v6 }
  0xdd   : > { %v447_v58 = vpop.xlane.xlu1 %446  ;;  %v556_v59 = vsel %vm555_vm5, %v528_v56, %v554_v54 }
  0xde   : > { %v536_v60 = vrot.slane %v447_v58, %v958_v9 }
  0xdf   : > { %v449_v61 = vpop.xlane.xlu0 %448 }
  0xe0   : > { %v537_v62 = vsel %vm482_vm0, %v536_v60, %v532_v57  ;;  %v541_v63 = vrot.slane %v449_v61, %v918_v6 }
  0xe1   : > { %v451_v1 = vpop.xlane.xlu1 %450  ;;  %v558_v2 = vsel %vm557_vm6, %v537_v62, %v556_v59 }
  0xe2   : > { %v545_v5 = vrot.slane %v451_v1, %v958_v9  ;;  %v576_v9 = vld [vmem:[%s263_s15] sm:$0xff] }
  0xe3   : > { %v578_v17 = vpack.c.bf16 %v577_v16, %v576_v9 }
  0xe4   : > { %v546_v7 = vsel %vm482_vm0, %v545_v5, %v541_v63 }
  0xe5   : > { %v560_v8 = vsel %vm559_vm7, %v546_v7, %v558_v2  ;;  %741 = vmatpush3.bf16.msra.mxu0 %v578_v17 }
  0xe6   : > { %v562_v10 = vsel %vm456_vm8, -65504.0, %v560_v8 }
  0xe7   : > { %v564_v11 = vsel %vm563_vm9, %v562_v10, -inf }
  0xe8   : > { %565 = vmax.xlane.f32.xlu0 %v564_v11 }
 0x171   : > { %v566_v12 = vpop.xlane.xlu0 %565 }
 0x172   : > { %v567_v13 = vsub.f32 %v562_v10, %v566_v12 }
 0x174   : > { %v568_v6 = vmul.f32 1.442695, %v567_v13 }
 0x176   : > { %807 = vpow2.f32 %v568_v6 }
 0x183   : > { %v808_v14 = vpop.eup %807 }
 0x184   : > { %v570_v15 = vsel %vm563_vm9, %v808_v14, 0.0 }
 0x185   : > { %571 = vadd.xlane.f32.xlu1 %v570_v15 }
 0x20e   : > { %v572_v18 = vpop.xlane.xlu1 %571 }
 0x20f   : > { %809 = vrcp.f32 %v572_v18 }
 0x21c   : > { %v810_v3 = vpop.eup %809 }
 0x21d   : > { %v574_v19 = vmul.f32 %v810_v3, %v808_v14 }
 0x21f   : > { %v575_v20 = vpack.c.bf16 %v574_v19, %v574_v19 }
 0x221   : > { %743 = vmatmul.mubr.msk.bf16.vlgmr.msra.gmra.mxu0 %vm563_vm9, %v575_v20 }
 0x2e1   : > { %v616_v21 = vpop.f32.mrf.mxu0 }
 0x2e2   : > { %622 = vst [vmem:[%s270_s18] sm:$0xff] %v616_v21 }
 0x2e3   : > { %v744_v22 = vpop.f32.mrf.mxu0 }
 0x2e5   : > { %v619_v23 = vpop.f32.mrf.mxu0 }
 0x2e7   : > { %v745_v24 = vpop.f32.mrf.mxu0 }
 0x2e8 PF: > { %s21_s25 = sadd.s32 1, %s847_s25   ;;  %s1021_s23 = smov %s843_s24 }
 0x2e9   : > { %p18_p10 = scmp.ge.s32.totalorder %s21_s25, 10   ;;  %s1022_s24 = smov %s1024_s0 }
 0x2eb   :  { %20 = sbr.rel (!%p18_p10) target bundleno = 17 (0x11), region = 72 }

// kernel: stage2_forward.16
= control target key start
LH: loop header
LB: loop body
LE: loop exit
PB: predicated region body
PF: predicated region fallthrough
CT: control target
= control target key end

     0   :  { %s1193_s9 = smov 0   ;;  %s1195_s10 = smov 0   ;;  %s1554_s0 = inlined_call_operand.vmem [shape: f32[8,8,512], index: 0, kind: input, shape index: {}]   ;;  %s1555_s1 = inlined_call_operand.vmem [shape: bf16[128,512], index: 1, kind: input, shape index: {}]   ;;  %s1556_s2 = inlined_call_operand.vmem [shape: f32[8,8,128], index: 2, kind: output, shape index: {}]  }
   0x1   :  { %s1197_s11 = smov 0  }
   0x2 LB: > { %s21_s12 = sadd.s32 1, %s1170_s10  ;;  %p945_p0 = scmp.ge.s32.totalorder %s1174_s11, 1  ;;  %s1174_s11 = sphi %s1197_s11, %s12_s11   ;;  %s1170_s10 = sphi %s1195_s10, %s1558_s10   ;;  %s1166_s9 = sphi %s1193_s9, %s1557_s9  }
   0x3   : > { %p22_p1 = scmp.ge.s32.totalorder %s21_s12, 2  ;;  %p134_p2 = scmp.lt.s32.totalorder %s1174_s11, 3 }
   0x5   : > { %s1560_s12 = smov (%p22_p1, %s21_s12), 0  ;;  %p135_p3 = pnand %p945_p0, %p134_p2 }
   0x6   : > { %s946_s13 = sshll.u32 (!%p135_p3), %s1166_s9, 2  ;;  %p951_p5 = scmp.ne.s32.totalorder (!%p135_p3), %s1166_s9, 0 }
   0x7   : > { %138 = sbr.rel (%p135_p3) target bundleno = 1056 (0x420), region = 28  ;;  %p165_p4 = scmp.lt.s32.totalorder (!%p135_p3), %s946_s13, 7 }
   0xc   : > { %s1562_s13 = smov (!%p165_p4, %s946_s13), 7  ;;  %188 = sbr.rel (%p951_p5) target bundleno = 19 (0x13), region = 32 }
   0xd   : > { %s1013_s14 = sshll.u32 %s1562_s13, 5  ;;  %s950_s15 = sshll.u32 %s1562_s13, 3 }
   0xe   : > { %s1214_s18 = scalar_lea.vmem %s1554_s0, %s1013_s14  ;;  %s1219_s21 = scalar_lea.vmem %s1556_s2, %s950_s15 }
  0x11   : > { %v1176_v0 = vmov 0.0  }
  0x12   : > { %189 = vst [vmem:[#allocation2] sm:$0xff] %v1176_v0  ;;  %190 = vst [vmem:[#allocation3] sm:$0xff] %v1176_v0 }
  0x13 PF: > { %v1224_v1 = vld [vmem:[%s1555_s1 + $0xe4] ss:$16 sps:$4 sm:$0xff]   ;;  %v1229_v2 = vld [vmem:[%s1555_s1 + $0xe0] ss:$16 sps:$4 sm:$0xff]   ;;  %v1177_v3 = vmov 0   ;;  %v226_v38 = vld [vmem:[%s1214_s18 + $0x8] sm:$0xff] }
  0x14   : > { %422 = vmatprep.mubr.bf16.mxu0 %v1177_v3  ;;  %463 = vmatprep.mubr.bf16.mxu1 %v1177_v3  ;;  %v1237_v4 = vld [vmem:[%s1555_s1 + $0xc4] ss:$16 sps:$4 sm:$0xff]   ;;  %v1243_v5 = vld [vmem:[%s1555_s1 + $0xc0] ss:$16 sps:$4 sm:$0xff]   ;;  %v1254_v7 = vld [vmem:[%s1555_s1 + $0xec] ss:$16 sps:$4 sm:$0xff]  }
  0x15   : > { %390 = vmatprep.subr.bf16.mxu0 %v1224_v1  ;;  %v1249_v6 = vld [vmem:[%s1555_s1 + $0xa4] ss:$16 sps:$4 sm:$0xff]   ;;  %v1259_v8 = vld [vmem:[%s1555_s1 + $0xe8] ss:$16 sps:$4 sm:$0xff]   ;;  %v1265_v9 = vld [vmem:[%s1555_s1 + $0xa0] ss:$16 sps:$4 sm:$0xff]   ;;  %431 = vmatprep.subr.bf16.mxu1 %v1254_v7 }
  0x16   : > { %391 = vmatpush1.bf16.msra.mxu0 %v1229_v2  ;;  %v1272_v10 = vld [vmem:[%s1555_s1 + $0x84] ss:$16 sps:$4 sm:$0xff]   ;;  %432 = vmatpush1.bf16.msra.mxu1 %v1259_v8  ;;  %v1278_v11 = vld [vmem:[%s1555_s1 + $0xcc] ss:$16 sps:$4 sm:$0xff]   ;;  %v1283_v12 = vld [vmem:[%s1555_s1 + $0xc8] ss:$16 sps:$4 sm:$0xff]  }
  0x17   : > { %392 = vmatprep.subr.bf16.mxu0 %v1237_v4  ;;  %433 = vmatprep.subr.bf16.mxu1 %v1278_v11  ;;  %v1290_v13 = vld [vmem:[%s1555_s1 + $0x80] ss:$16 sps:$4 sm:$0xff]   ;;  %v1295_v14 = vld [vmem:[%s1555_s1 + $0x64] ss:$16 sps:$4 sm:$0xff]   ;;  %v1300_v15 = vld [vmem:[%s1555_s1 + $0xac] ss:$16 sps:$4 sm:$0xff]  }
  0x18   : > { %v1307_v16 = vld [vmem:[%s1555_s1 + $0xa8] ss:$16 sps:$4 sm:$0xff]   ;;  %v1313_v17 = vld [vmem:[%s1555_s1 + $0x8c] ss:$16 sps:$4 sm:$0xff]   ;;  %v1319_v18 = vld [vmem:[%s1555_s1 + $0x60] ss:$16 sps:$4 sm:$0xff]  }
  0x19   : > { %v1325_v19 = vld [vmem:[%s1555_s1 + $0x44] ss:$16 sps:$4 sm:$0xff]   ;;  %v1331_v20 = vld [vmem:[%s1555_s1 + $0x88] ss:$16 sps:$4 sm:$0xff]   ;;  %v1337_v21 = vld [vmem:[%s1555_s1 + $0x6c] ss:$16 sps:$4 sm:$0xff]  }
  0x1a   : > { %393 = vmatpush1.bf16.msra.mxu0 %v1243_v5  ;;  %434 = vmatpush1.bf16.msra.mxu1 %v1283_v12  ;;  %v1342_v22 = vld [vmem:[%s1555_s1 + $0x40] ss:$16 sps:$4 sm:$0xff]   ;;  %v1348_v23 = vld [vmem:[%s1555_s1 + $0x24] ss:$16 sps:$4 sm:$0xff]   ;;  %v1355_v24 = vld [vmem:[%s1555_s1 + $0x68] ss:$16 sps:$4 sm:$0xff]  }
  0x1b   : > { %394 = vmatprep.subr.bf16.mxu0 %v1249_v6  ;;  %435 = vmatprep.subr.bf16.mxu1 %v1300_v15  ;;  %v1361_v25 = vld [vmem:[%s1555_s1 + $0x4c] ss:$16 sps:$4 sm:$0xff]   ;;  %v1367_v26 = vld [vmem:[%s1555_s1 + $0x20] ss:$16 sps:$4 sm:$0xff]   ;;  %v1373_v27 = vld [vmem:[%s1555_s1 + $0x4] ss:$16 sps:$4 sm:$0xff]  }
  0x1c   : > { %v1379_v28 = vld [vmem:[%s1555_s1 + $0x48] ss:$16 sps:$4 sm:$0xff]   ;;  %v1385_v29 = vld [vmem:[%s1555_s1 + $0x2c] ss:$16 sps:$4 sm:$0xff]   ;;  %v1391_v30 = vld [vmem:[%s1555_s1] ss:$16 sps:$4 sm:$0xff]  }
  0x1d   : > { %v223_v31 = vld [vmem:[#allocation2] sm:$0xff]  ;;  %v1398_v32 = vld [vmem:[%s1555_s1 + $0x28] ss:$16 sps:$4 sm:$0xff]   ;;  %v1404_v33 = vld [vmem:[%s1555_s1 + $0xc] ss:$16 sps:$4 sm:$0xff]  }
  0x1e   : > { %395 = vmatpush1.bf16.msra.mxu0 %v1265_v9  ;;  %436 = vmatpush1.bf16.msra.mxu1 %v1307_v16  ;;  %v229_v34 = vpack.c.bf16 %v223_v31, %v223_v31  ;;  %v1411_v35 = vld [vmem:[%s1555_s1 + $0x8] ss:$16 sps:$4 sm:$0xff]   ;;  %v225_v36 = vld [vmem:[%s1214_s18] sm:$0xff]  ;;  %v227_v51 = vld [vmem:[%s1214_s18 + $0x10] sm:$0xff] }
  0x1f   : > { %396 = vmatprep.subr.bf16.mxu0 %v1272_v10  ;;  %437 = vmatprep.subr.bf16.mxu1 %v1313_v17  ;;  %v228_v48 = vld [vmem:[%s1214_s18 + $0x18] sm:$0xff]  ;;  %v224_v62 = vld [vmem:[#allocation3] sm:$0xff] }
  0x22   : > { %397 = vmatpush1.bf16.msra.mxu0 %v1290_v13  ;;  %438 = vmatpush1.bf16.msra.mxu1 %v1331_v20 }
  0x23   : > { %398 = vmatprep.subr.bf16.mxu0 %v1295_v14  ;;  %439 = vmatprep.subr.bf16.mxu1 %v1337_v21 }
  0x26   : > { %399 = vmatpush1.bf16.msra.mxu0 %v1319_v18  ;;  %440 = vmatpush1.bf16.msra.mxu1 %v1355_v24 }
  0x27   : > { %400 = vmatprep.subr.bf16.mxu0 %v1325_v19  ;;  %441 = vmatprep.subr.bf16.mxu1 %v1361_v25 }
  0x2a   : > { %401 = vmatpush1.bf16.msra.mxu0 %v1342_v22  ;;  %442 = vmatpush1.bf16.msra.mxu1 %v1379_v28 }
  0x2b   : > { %402 = vmatprep.subr.bf16.mxu0 %v1348_v23  ;;  %443 = vmatprep.subr.bf16.mxu1 %v1385_v29 }
  0x2e   : > { %403 = vmatpush1.bf16.msra.mxu0 %v1367_v26  ;;  %444 = vmatpush1.bf16.msra.mxu1 %v1398_v32 }
  0x2f   : > { %404 = vmatprep.subr.bf16.mxu0 %v1373_v27  ;;  %445 = vmatprep.subr.bf16.mxu1 %v1404_v33 }
  0x32   : > { %405 = vmatpush1.bf16.msra.mxu0 %v1391_v30  ;;  %446 = vmatpush1.bf16.msra.mxu1 %v1411_v35 }
  0x33   : > { %507 = vmatprep.subr.bf16.mxu0 %v1224_v1  ;;  %548 = vmatprep.subr.bf16.mxu1 %v1254_v7 }
  0x35   : > { %423 = vmatmul.mubr.bf16.vlgmr.msra.gmra.mxu0 %v229_v34  ;;  %464 = vmatmul.mubr.bf16.vlgmr.msra.gmra.mxu1 %v229_v34 }
  0x36   : > { %508 = vmatpush1.bf16.msra.mxu0 %v1229_v2  ;;  %539 = vmatprep.mubr.bf16.mxu0 %v1177_v3 }
  0x37   : > { %509 = vmatprep.subr.bf16.mxu0 %v1237_v4  ;;  %549 = vmatpush1.bf16.msra.mxu1 %v1259_v8 }
  0x38   : > { %550 = vmatprep.subr.bf16.mxu1 %v1278_v11  ;;  %580 = vmatprep.mubr.bf16.mxu1 %v1177_v3 }
  0x3a   : > { %510 = vmatpush1.bf16.msra.mxu0 %v1243_v5 }
  0x3b   : > { %511 = vmatprep.subr.bf16.mxu0 %v1249_v6  ;;  %551 = vmatpush1.bf16.msra.mxu1 %v1283_v12 }
  0x3c   : > { %552 = vmatprep.subr.bf16.mxu1 %v1300_v15 }
  0x3e   : > { %512 = vmatpush1.bf16.msra.mxu0 %v1265_v9 }
  0x3f   : > { %513 = vmatprep.subr.bf16.mxu0 %v1272_v10  ;;  %553 = vmatpush1.bf16.msra.mxu1 %v1307_v16 }
  0x40   : > { %554 = vmatprep.subr.bf16.mxu1 %v1313_v17 }
  0x42   : > { %514 = vmatpush1.bf16.msra.mxu0 %v1290_v13 }
  0x43   : > { %515 = vmatprep.subr.bf16.mxu0 %v1295_v14  ;;  %555 = vmatpush1.bf16.msra.mxu1 %v1331_v20 }
  0x44   : > { %556 = vmatprep.subr.bf16.mxu1 %v1337_v21 }
  0x46   : > { %516 = vmatpush1.bf16.msra.mxu0 %v1319_v18 }
  0x47   : > { %517 = vmatprep.subr.bf16.mxu0 %v1325_v19  ;;  %557 = vmatpush1.bf16.msra.mxu1 %v1355_v24 }
  0x48   : > { %558 = vmatprep.subr.bf16.mxu1 %v1361_v25 }
  0x4a   : > { %518 = vmatpush1.bf16.msra.mxu0 %v1342_v22 }
  0x4b   : > { %519 = vmatprep.subr.bf16.mxu0 %v1348_v23  ;;  %559 = vmatpush1.bf16.msra.mxu1 %v1379_v28 }
  0x4c   : > { %560 = vmatprep.subr.bf16.mxu1 %v1385_v29 }
  0x4e   : > { %520 = vmatpush1.bf16.msra.mxu0 %v1367_v26 }
  0x4f   : > { %521 = vmatprep.subr.bf16.mxu0 %v1373_v27  ;;  %561 = vmatpush1.bf16.msra.mxu1 %v1398_v32 }
  0x50   : > { %562 = vmatprep.subr.bf16.mxu1 %v1404_v33 }
  0x52   : > { %522 = vmatpush1.bf16.msra.mxu0 %v1391_v30 }
  0x53   : > { %625 = vmatprep.subr.bf16.mxu0 %v1224_v1  ;;  %563 = vmatpush1.bf16.msra.mxu1 %v1411_v35 }
  0x54   : > { %666 = vmatprep.subr.bf16.mxu1 %v1254_v7 }
  0xf5   : > { %v424_v37 = vpop.f32.mrf.mxu0  ;;  %v465_v45 = vpop.f32.mrf.mxu1 }
  0xf6   : > { %v472_v39 = vadd.f32 %v424_v37, %v225_v36  ;;  %v474_v53 = vadd.f32 %v465_v45, %v227_v51 }
  0xf7   : > { %v426_v40 = vpop.f32.mrf.mxu0  ;;  %v467_v47 = vpop.f32.mrf.mxu1 }
  0xf8   : > { %v984_v41 = vmul.f32 -1.442695, %v472_v39  ;;  %v473_v42 = vadd.f32 %v426_v40, %v226_v38  ;;  %v475_v52 = vadd.f32 %v467_v47, %v228_v48 }
  0xf9   : > { %v428_v43 = vpop.f32.mrf.mxu0  ;;  %v469_v49 = vpop.f32.mrf.mxu1 }
  0xfa   : > { %1088 = vpow2.f32 %v984_v41  ;;  %v985_v44 = vmul.f32 -1.442695, %v473_v42  ;;  %v986_v54 = vmul.f32 -1.442695, %v475_v52  ;;  %v987_v41 = vld [vmem:[%s1214_s18 + $0x20] sm:$0xff] }
  0xfb   : > { %v429_v46 = vpop.f32.mrf.mxu0  ;;  %v470_v50 = vpop.f32.mrf.mxu1 }
  0xfc   : > { %1090 = vpow2.f32 %v985_v44  ;;  %v988_v44 = vld [vmem:[%s1214_s18 + $0x28] sm:$0xff] }
  0xfd   : > { %1092 = vtanh.f32 %v474_v53 }
  0xfe   : > { %1094 = vpow2.f32 %v986_v54 }
 0x107   : > { %v1089_v55 = vpop.eup %1088 }
 0x108   : > { %v479_v56 = vadd.f32 1.0, %v1089_v55  ;;  %v989_v55 = vld [vmem:[%s1214_s18 + $0x30] sm:$0xff] }
 0x109   : > { %v1091_v57 = vpop.eup %1090 }
 0x10a   : > { %1096 = vrcp.f32 %v479_v56  ;;  %v485_v58 = vadd.f32 1.0, %v1091_v57  ;;  %v1093_v59 = vpop.eup %1092 }
 0x10b   : > { %v1095_v60 = vpop.eup %1094 }
 0x10c   : > { %1098 = vrcp.f32 %v485_v58  ;;  %v492_v0 = vadd.f32 1.0, %v1095_v60 }
 0x10e   : > { %1100 = vrcp.f32 %v492_v0 }
 0x117   : > { %v1097_v61 = vpop.eup %1096 }
 0x118   : > { %v496_v34 = vmul.f32 %v1097_v61, %v1093_v59 }
 0x119   : > { %v1099_v63 = vpop.eup %1098 }
 0x11a   : > { %v495_v31 = vmul.f32 %v1099_v63, %v224_v62 }
 0x11b   : > { %v1101_v37 = vpop.eup %1100 }
 0x11c   : > { %v1455_v36 = vadd.f32 %v496_v34, %v495_v31 }
 0x11e   : > { %1102 = vtanh.f32 %v1455_v36 }
 0x12b   : > { %v1103_v38 = vpop.eup %1102 }
 0x12c   : > { %v499_v39 = vmul.f32 %v1103_v38, %v1101_v37 }
 0x12e   : > { %500 = vst [vmem:[%s1219_s21] sm:$0xff] %v499_v39  ;;  %v506_v40 = vpack.c.bf16 %v499_v39, %v499_v39 }
 0x130   : > { %540 = vmatmul.mubr.bf16.vlgmr.msra.gmra.mxu0 %v506_v40  ;;  %581 = vmatmul.mubr.bf16.vlgmr.msra.gmra.mxu1 %v506_v40 }
 0x131   : > { %626 = vmatpush1.bf16.msra.mxu0 %v1229_v2  ;;  %667 = vmatpush1.bf16.msra.mxu1 %v1259_v8 }
 0x132   : > { %627 = vmatprep.subr.bf16.mxu0 %v1237_v4  ;;  %668 = vmatprep.subr.bf16.mxu1 %v1278_v11 }
 0x133   : > { %657 = vmatprep.mubr.bf16.mxu0 %v1177_v3  ;;  %698 = vmatprep.mubr.bf16.mxu1 %v1177_v3 }
 0x135   : > { %628 = vmatpush1.bf16.msra.mxu0 %v1243_v5  ;;  %669 = vmatpush1.bf16.msra.mxu1 %v1283_v12 }
 0x136   : > { %629 = vmatprep.subr.bf16.mxu0 %v1249_v6  ;;  %670 = vmatprep.subr.bf16.mxu1 %v1300_v15 }
 0x139   : > { %630 = vmatpush1.bf16.msra.mxu0 %v1265_v9  ;;  %671 = vmatpush1.bf16.msra.mxu1 %v1307_v16 }
 0x13a   : > { %631 = vmatprep.subr.bf16.mxu0 %v1272_v10  ;;  %672 = vmatprep.subr.bf16.mxu1 %v1313_v17 }
 0x13d   : > { %632 = vmatpush1.bf16.msra.mxu0 %v1290_v13  ;;  %673 = vmatpush1.bf16.msra.mxu1 %v1331_v20 }
 0x13e   : > { %633 = vmatprep.subr.bf16.mxu0 %v1295_v14  ;;  %674 = vmatprep.subr.bf16.mxu1 %v1337_v21 }
 0x141   : > { %634 = vmatpush1.bf16.msra.mxu0 %v1319_v18  ;;  %675 = vmatpush1.bf16.msra.mxu1 %v1355_v24 }
 0x142   : > { %635 = vmatprep.subr.bf16.mxu0 %v1325_v19  ;;  %676 = vmatprep.subr.bf16.mxu1 %v1361_v25 }
 0x145   : > { %636 = vmatpush1.bf16.msra.mxu0 %v1342_v22  ;;  %677 = vmatpush1.bf16.msra.mxu1 %v1379_v28 }
 0x146   : > { %637 = vmatprep.subr.bf16.mxu0 %v1348_v23  ;;  %678 = vmatprep.subr.bf16.mxu1 %v1385_v29 }
 0x149   : > { %638 = vmatpush1.bf16.msra.mxu0 %v1367_v26  ;;  %679 = vmatpush1.bf16.msra.mxu1 %v1398_v32 }
 0x14a   : > { %639 = vmatprep.subr.bf16.mxu0 %v1373_v27  ;;  %680 = vmatprep.subr.bf16.mxu1 %v1404_v33 }
 0x14d   : > { %640 = vmatpush1.bf16.msra.mxu0 %v1391_v30  ;;  %681 = vmatpush1.bf16.msra.mxu1 %v1411_v35 }
 0x14e   : > { %743 = vmatprep.subr.bf16.mxu0 %v1224_v1  ;;  %784 = vmatprep.subr.bf16.mxu1 %v1254_v7  ;;  %v990_v1 = vld [vmem:[%s1214_s18 + $0x38] sm:$0xff] }
 0x1f0   : > { %v541_v42 = vpop.f32.mrf.mxu0  ;;  %v582_v43 = vpop.f32.mrf.mxu1 }
 0x1f1   : > { %v589_v45 = vadd.f32 %v987_v41, %v541_v42  ;;  %v591_v58 = vadd.f32 %v989_v55, %v582_v43 }
 0x1f2   : > { %v543_v46 = vpop.f32.mrf.mxu0  ;;  %v584_v47 = vpop.f32.mrf.mxu1 }
 0x1f3   : > { %v991_v48 = vmul.f32 -1.442695, %v589_v45  ;;  %v590_v49 = vadd.f32 %v988_v44, %v543_v46  ;;  %v592_v7 = vadd.f32 %v990_v1, %v584_v47  ;;  %v1003_v47 = vld [vmem:[%s1214_s18 + $0x60] sm:$0xff] }
 0x1f4   : > { %v545_v50 = vpop.f32.mrf.mxu0  ;;  %v586_v51 = vpop.f32.mrf.mxu1 }
 0x1f5   : > { %1104 = vpow2.f32 %v991_v48  ;;  %v992_v52 = vmul.f32 -1.442695, %v590_v49  ;;  %v993_v56 = vmul.f32 -1.442695, %v592_v7  ;;  %v1004_v50 = vld [vmem:[%s1214_s18 + $0x68] sm:$0xff] }
 0x1f6   : > { %v546_v53 = vpop.f32.mrf.mxu0  ;;  %v587_v54 = vpop.f32.mrf.mxu1 }
 0x1f7   : > { %1106 = vpow2.f32 %v992_v52 }
 0x1f8   : > { %1108 = vpow2.f32 %v993_v56 }
 0x202   : > { %v1105_v57 = vpop.eup %1104 }
 0x203   : > { %v596_v59 = vadd.f32 1.0, %v1105_v57 }
 0x204   : > { %v1107_v60 = vpop.eup %1106 }
 0x205   : > { %1110 = vrcp.f32 %v596_v59  ;;  %v602_v61 = vadd.f32 1.0, %v1107_v60  ;;  %v1109_v62 = vpop.eup %1108  ;;  %v1006_v59 = vld [vmem:[%s1214_s18 + $0x78] sm:$0xff] }
 0x206   : > { %1112 = vtanh.f32 %v591_v58  ;;  %v609_v34 = vadd.f32 1.0, %v1109_v62 }
 0x207   : > { %1114 = vrcp.f32 %v602_v61  ;;  %v1005_v61 = vld [vmem:[%s1214_s18 + $0x70] sm:$0xff] }
 0x208   : > { %1116 = vrcp.f32 %v609_v34 }
 0x212   : > { %v1111_v63 = vpop.eup %1110 }
 0x213   : > { %v1113_v0 = vpop.eup %1112 }
 0x214   : > { %v1115_v31 = vpop.eup %1114  ;;  %v613_v37 = vmul.f32 %v1113_v0, %v1111_v63 }
 0x215   : > { %v612_v38 = vmul.f32 %v1115_v31, %v1455_v36  ;;  %v1117_v40 = vpop.eup %1116 }
 0x217   : > { %v1498_v39 = vadd.f32 %v613_v37, %v612_v38 }
 0x219   : > { %1118 = vtanh.f32 %v1498_v39 }
 0x226   : > { %v1119_v41 = vpop.eup %1118 }
 0x227   : > { %v616_v42 = vmul.f32 %v1119_v41, %v1117_v40 }
 0x229   : > { %994 = vst [vmem:[%s1219_s21 + $0x8] sm:$0xff] %v616_v42  ;;  %v624_v43 = vpack.c.bf16 %v616_v42, %v616_v42 }
 0x22b   : > { %658 = vmatmul.mubr.bf16.vlgmr.msra.gmra.mxu0 %v624_v43  ;;  %699 = vmatmul.mubr.bf16.vlgmr.msra.gmra.mxu1 %v624_v43 }
 0x22c   : > { %744 = vmatpush1.bf16.msra.mxu0 %v1229_v2  ;;  %785 = vmatpush1.bf16.msra.mxu1 %v1259_v8  ;;  %v995_v2 = vld [vmem:[%s1214_s18 + $0x40] sm:$0xff] }
 0x22d   : > { %745 = vmatprep.subr.bf16.mxu0 %v1237_v4  ;;  %786 = vmatprep.subr.bf16.mxu1 %v1278_v11 }
 0x22e   : > { %775 = vmatprep.mubr.bf16.mxu0 %v1177_v3  ;;  %816 = vmatprep.mubr.bf16.mxu1 %v1177_v3 }
 0x230   : > { %746 = vmatpush1.bf16.msra.mxu0 %v1243_v5  ;;  %787 = vmatpush1.bf16.msra.mxu1 %v1283_v12  ;;  %v996_v5 = vld [vmem:[%s1214_s18 + $0x48] sm:$0xff] }
 0x231   : > { %747 = vmatprep.subr.bf16.mxu0 %v1249_v6  ;;  %788 = vmatprep.subr.bf16.mxu1 %v1300_v15 }
 0x234   : > { %748 = vmatpush1.bf16.msra.mxu0 %v1265_v9  ;;  %789 = vmatpush1.bf16.msra.mxu1 %v1307_v16 }
 0x235   : > { %749 = vmatprep.subr.bf16.mxu0 %v1272_v10  ;;  %790 = vmatprep.subr.bf16.mxu1 %v1313_v17  ;;  %v998_v17 = vld [vmem:[%s1214_s18 + $0x58] sm:$0xff] }
 0x238   : > { %750 = vmatpush1.bf16.msra.mxu0 %v1290_v13  ;;  %791 = vmatpush1.bf16.msra.mxu1 %v1331_v20 }
 0x239   : > { %751 = vmatprep.subr.bf16.mxu0 %v1295_v14  ;;  %792 = vmatprep.subr.bf16.mxu1 %v1337_v21 }
 0x23c   : > { %752 = vmatpush1.bf16.msra.mxu0 %v1319_v18  ;;  %793 = vmatpush1.bf16.msra.mxu1 %v1355_v24 }
 0x23d   : > { %753 = vmatprep.subr.bf16.mxu0 %v1325_v19  ;;  %794 = vmatprep.subr.bf16.mxu1 %v1361_v25  ;;  %v997_v19 = vld [vmem:[%s1214_s18 + $0x50] sm:$0xff] }
 0x240   : > { %754 = vmatpush1.bf16.msra.mxu0 %v1342_v22  ;;  %795 = vmatpush1.bf16.msra.mxu1 %v1379_v28 }
 0x241   : > { %755 = vmatprep.subr.bf16.mxu0 %v1348_v23  ;;  %796 = vmatprep.subr.bf16.mxu1 %v1385_v29 }
 0x244   : > { %756 = vmatpush1.bf16.msra.mxu0 %v1367_v26  ;;  %797 = vmatpush1.bf16.msra.mxu1 %v1398_v32 }
 0x245   : > { %757 = vmatprep.subr.bf16.mxu0 %v1373_v27  ;;  %798 = vmatprep.subr.bf16.mxu1 %v1404_v33 }
 0x248   : > { %758 = vmatpush1.bf16.msra.mxu0 %v1391_v30  ;;  %799 = vmatpush1.bf16.msra.mxu1 %v1411_v35 }
 0x2eb   : > { %v659_v3 = vpop.f32.mrf.mxu0  ;;  %v700_v4 = vpop.f32.mrf.mxu1 }
 0x2ec   : > { %v707_v6 = vadd.f32 %v995_v2, %v659_v3  ;;  %v709_v22 = vadd.f32 %v997_v19, %v700_v4 }
 0x2ed   : > { %v661_v8 = vpop.f32.mrf.mxu0  ;;  %v702_v9 = vpop.f32.mrf.mxu1 }
 0x2ee   : > { %v999_v10 = vmul.f32 -1.442695, %v707_v6  ;;  %v708_v11 = vadd.f32 %v996_v5, %v661_v8  ;;  %v710_v18 = vadd.f32 %v998_v17, %v702_v9 }
 0x2ef   : > { %v663_v12 = vpop.f32.mrf.mxu0  ;;  %v704_v13 = vpop.f32.mrf.mxu1 }
 0x2f0   : > { %1120 = vpow2.f32 %v999_v10  ;;  %v1000_v14 = vmul.f32 -1.442695, %v708_v11  ;;  %v1001_v20 = vmul.f32 -1.442695, %v710_v18 }
 0x2f1   : > { %v664_v15 = vpop.f32.mrf.mxu0  ;;  %v705_v16 = vpop.f32.mrf.mxu1 }
 0x2f2   : > { %1122 = vpow2.f32 %v1000_v14 }
 0x2f3   : > { %1124 = vpow2.f32 %v1001_v20 }
 0x2fd   : > { %v1121_v21 = vpop.eup %1120 }
 0x2fe   : > { %v714_v23 = vadd.f32 1.0, %v1121_v21 }
 0x2ff   : > { %v1123_v24 = vpop.eup %1122 }
 0x300   : > { %1126 = vrcp.f32 %v714_v23  ;;  %v720_v25 = vadd.f32 1.0, %v1123_v24  ;;  %v1125_v26 = vpop.eup %1124 }
 0x301   : > { %1128 = vtanh.f32 %v709_v22  ;;  %v727_v30 = vadd.f32 1.0, %v1125_v26 }
 0x302   : > { %1130 = vrcp.f32 %v720_v25 }
 0x303   : > { %1132 = vrcp.f32 %v727_v30 }
 0x30d   : > { %v1127_v27 = vpop.eup %1126 }
 0x30e   : > { %v1129_v28 = vpop.eup %1128 }
 0x30f   : > { %v1131_v29 = vpop.eup %1130  ;;  %v731_v32 = vmul.f32 %v1129_v28, %v1127_v27 }
 0x310   : > { %v730_v33 = vmul.f32 %v1131_v29, %v1498_v39  ;;  %v1133_v36 = vpop.eup %1132 }
 0x312   : > { %v732_v35 = vadd.f32 %v731_v32, %v730_v33 }
 0x314   : > { %1134 = vtanh.f32 %v732_v35 }
 0x321   : > { %v1135_v44 = vpop.eup %1134 }
 0x322   : > { %v734_v45 = vmul.f32 %v1135_v44, %v1133_v36 }
 0x324   : > { %1002 = vst [vmem:[%s1219_s21 + $0x10] sm:$0xff] %v734_v45  ;;  %v742_v46 = vpack.c.bf16 %v734_v45, %v734_v45 }
 0x326   : > { %776 = vmatmul.mubr.bf16.vlgmr.msra.gmra.mxu0 %v742_v46  ;;  %817 = vmatmul.mubr.bf16.vlgmr.msra.gmra.mxu1 %v742_v46 }
 0x3e6   : > { %v777_v48 = vpop.f32.mrf.mxu0  ;;  %v818_v49 = vpop.f32.mrf.mxu1 }
 0x3e7   : > { %v825_v51 = vadd.f32 %v1003_v47, %v777_v48  ;;  %v827_v0 = vadd.f32 %v1005_v61, %v818_v49 }
 0x3e8   : > { %v779_v52 = vpop.f32.mrf.mxu0  ;;  %v820_v53 = vpop.f32.mrf.mxu1 }
 0x3e9   : > { %v1007_v54 = vmul.f32 -1.442695, %v825_v51  ;;  %v826_v1 = vadd.f32 %v1004_v50, %v779_v52  ;;  %v828_v60 = vadd.f32 %v1006_v59, %v820_v53 }
 0x3ea   : > { %v781_v7 = vpop.f32.mrf.mxu0  ;;  %v822_v55 = vpop.f32.mrf.mxu1 }
 0x3eb   : > { %1136 = vpow2.f32 %v1007_v54  ;;  %v1008_v56 = vmul.f32 -1.442695, %v826_v1  ;;  %v1009_v62 = vmul.f32 -1.442695, %v828_v60 }
 0x3ec   : > { %v782_v57 = vpop.f32.mrf.mxu0  ;;  %v823_v58 = vpop.f32.mrf.mxu1 }
 0x3ed   : > { %1138 = vpow2.f32 %v1008_v56 }
 0x3ee   : > { %1140 = vpow2.f32 %v1009_v62 }
 0x3f8   : > { %v1137_v63 = vpop.eup %1136 }
 0x3f9   : > { %v832_v31 = vadd.f32 1.0, %v1137_v63 }
 0x3fa   : > { %v1139_v34 = vpop.eup %1138 }
 0x3fb   : > { %1142 = vrcp.f32 %v832_v31  ;;  %v838_v37 = vadd.f32 1.0, %v1139_v34  ;;  %v1141_v38 = vpop.eup %1140 }
 0x3fc   : > { %1144 = vtanh.f32 %v827_v0  ;;  %v845_v42 = vadd.f32 1.0, %v1141_v38 }
 0x3fd   : > { %1146 = vrcp.f32 %v838_v37 }
 0x3fe   : > { %1148 = vrcp.f32 %v845_v42 }
 0x408   : > { %v1143_v39 = vpop.eup %1142 }
 0x409   : > { %v1145_v40 = vpop.eup %1144 }
 0x40a   : > { %v1147_v41 = vpop.eup %1146  ;;  %v849_v43 = vmul.f32 %v1145_v40, %v1143_v39 }
 0x40b   : > { %v848_v2 = vmul.f32 %v1147_v41, %v732_v35  ;;  %v1149_v4 = vpop.eup %1148 }
 0x40d   : > { %v850_v3 = vadd.f32 %v849_v43, %v848_v2 }
 0x40f   : > { %1150 = vtanh.f32 %v850_v3  ;;  %856 = vst [vmem:[#allocation3] sm:$0xff] %v850_v3 }
 0x41c   : > { %v1151_v5 = vpop.eup %1150 }
 0x41d   : > { %v852_v6 = vmul.f32 %v1151_v5, %v1149_v4 }
 0x41f   : > { %1010 = vst [vmem:[%s1219_s21 + $0x18] sm:$0xff] %v852_v6  ;;  %855 = vst [vmem:[#allocation2] sm:$0xff] %v852_v6 }
 0x420 PF: > { %s12_s11 = sadd.s32 1, %s1174_s11   ;;  %s1557_s9 = smov %s1170_s10 }
 0x421   : > { %p9_p6 = scmp.ge.s32.totalorder %s12_s11, 4   ;;  %s1558_s10 = smov %s1560_s12 }
 0x423   :  { %11 = sbr.rel (!%p9_p6) target bundleno = 2 (0x2), region = 68 }

</bundles_post_ra>
